<compile_context>
chip_gen: v5e
topology: v5e:2x2
jax: 0.10.0
libtpu: 0.0.40
codegen_flags: <defaults>
</compile_context>

<pallas_src>
import functools
import math

import jax
import jax.numpy as jnp
from jax import lax
from jax.experimental import pallas as pl
from jax.experimental.pallas import tpu as pltpu


# -----------------------------------------------------------------------------
# Hardware queries (guarded; safe defaults if unavailable)
# -----------------------------------------------------------------------------
def _vmem_capacity_bytes():
    try:
        cap = getattr(pltpu.get_tpu_info(), "vmem_capacity_bytes", None)
        if cap:
            return int(cap)
    except Exception:
        pass
    return 64 * 1024 * 1024          # conservative default (v7x per-TC VMEM)


def _num_tensorcores():
    try:
        d = jax.devices()[0]
        n = getattr(d, "num_cores", None)
        if n:
            return int(n)
        kind = str(getattr(d, "device_kind", "")).lower()
        if any(t in kind for t in ("v4", "v5p", "v7", "7x")):
            return 2                 # megacore / dual-TensorCore chips
    except Exception:
        pass
    return 1                         # v5e / v6e: single TensorCore


# -----------------------------------------------------------------------------
# Pallas kernel: W_BLK windows of fused cross attention per grid step
# -----------------------------------------------------------------------------
def _window_cross_attn_kernel(x1_ref, x2_ref, wq_ref, bq_ref, wk_ref, bk_ref,
                              o1_ref, o2_ref, q_scr, k_scr,
                              *, n_tok, n_valid, w_blk, unroll):
    """Fused windowed cross attention for W_BLK windows per grid step.

    Layouts (channels on sublanes, tokens/windows on lanes => lane-dense I/O):
      x1_ref, x2_ref : (C, W_BLK*N)  bf16
      wq_ref, wk_ref : (C, C)        bf16  (attention scale pre-folded into wq)
      bq_ref, bk_ref : (C, 1)        f32   (scale pre-folded into bq)
      o1_ref, o2_ref : (C, W_BLK*N)  f32
      q_scr, k_scr   : (C, W_BLK*N)  bf16  VMEM scratch
    """
    # One weight-stationary projection matmul per stream per grid step
    # (all W_BLK windows fused on the lane axis; no per-window weight re-push).
    q_scr[...] = (jnp.dot(wq_ref[...], x1_ref[...],
                          preferred_element_type=jnp.float32)
                  + bq_ref[...]).astype(jnp.bfloat16)
    k_scr[...] = (jnp.dot(wk_ref[...], x2_ref[...],
                          preferred_element_type=jnp.float32)
                  + bk_ref[...]).astype(jnp.bfloat16)

    # Hoisted loop invariants (JAX does not CSE broadcasts inside the loop).
    ones8 = jnp.ones((8, n_tok), jnp.bfloat16)              # MXU row-sum helper
    if n_valid < n_tok:
        # Additive bias masking lane-padded key tokens (keys live on sublanes
        # of the transposed logits tile).
        key_ids = lax.broadcasted_iota(jnp.int32, (n_tok, 1), 0)
        key_bias = jnp.where(key_ids < n_valid, 0.0, -1e30).astype(jnp.float32)
    else:
        key_bias = None

    def body(w, carry):
        off = pl.multiple_of(w * n_tok, 128)
        qw = q_scr[:, pl.ds(off, n_tok)]                    # (C, Nq) bf16
        kw = k_scr[:, pl.ds(off, n_tok)]                    # (C, Nk) bf16

        # Transposed attention tile: keys on sublanes, queries on lanes, so the
        # softmax max / denominator come out directly as (1, Nq) lane vectors.
        #   logits_t[m, n] = K[m] . (scale * Q[n])
        logits_t = lax.dot_general(kw, qw, (((0,), (0,)), ((), ())),
                                   preferred_element_type=jnp.float32)  # (Nk, Nq)
        if key_bias is not None:
            logits_t = logits_t + key_bias

        mx = jnp.max(logits_t, axis=0, keepdims=True)       # (1, Nq)
        # Unnormalized probabilities straight to bf16 for the PV matmuls;
        # normalization is deferred to the (C, Nq) outputs.
        p_t = jnp.exp(logits_t - mx).astype(jnp.bfloat16)   # (Nk, Nq)

        # Per-query softmax denominators via a tiny MXU matmul (exact f32
        # accumulation of the bf16 probs; no XLU reduce / relayout needed).
        den = lax.dot_general(ones8, p_t, (((1,), (0,)), ((), ())),
                              preferred_element_type=jnp.float32)       # (8, Nq)
        inv = pl.reciprocal(den[0:1, :], approx=True)       # (1, Nq)

        x1w = x1_ref[:, pl.ds(off, n_tok)]                  # (C, Nk) bf16
        x2w = x2_ref[:, pl.ds(off, n_tok)]
        o1 = lax.dot_general(x1w, p_t, (((1,), (0,)), ((), ())),
                             preferred_element_type=jnp.float32)        # (C, Nq)
        o2 = lax.dot_general(x2w, p_t, (((1,), (0,)), ((), ())),
                             preferred_element_type=jnp.float32)
        # Deferred normalization on the small (C, Nq) tiles; lane-dense stores.
        o1_ref[:, pl.ds(off, n_tok)] = o1 * inv
        o2_ref[:, pl.ds(off, n_tok)] = o2 * inv
        return carry

    lax.fori_loop(0, w_blk, body, 0, unroll=unroll)


def _choose_w_blk(nw, c, n_tok, vmem_cap, num_cores=1, target=8):
    """Windows per grid step: a divisor of nw (no wasted padded windows) that
    amortizes the ~0.35us per-step overhead while staying inside a per-chip
    VMEM budget; only dual-TC chips keep >= 2 grid steps for core balance."""
    if nw <= 1:
        return 1
    per_win = c * n_tok * (2 * 2 * 2      # x1+x2 bf16, double-buffered
                           + 2 * 2 * 4    # o1+o2 f32, double-buffered
                           + 2 * 2)       # q/k bf16 scratch
    fixed = n_tok * n_tok * (4 + 2) * 2 + (2 << 20)   # live logits/p tiles + slack
    budget = vmem_cap // 3
    cap = max(1, (budget - fixed) // per_win) if budget > fixed else 1
    tgt = int(max(1, min(target, cap, nw)))
    divisors = [d for d in range(1, nw + 1) if nw % d == 0]
    wblk = max(d for d in divisors if d <= tgt)
    if num_cores >= 2:
        while wblk > 1 and nw // wblk < 2:
            smaller = [d for d in divisors if d < wblk]
            if not smaller:
                break
            wblk = max(smaller)
    return wblk


def _window_cross_attn(x1w, x2w, wq, bq, wk, bk, *, n_tok, n_valid, wblk, vmem_cap):
    """x1w/x2w: (C, nw*n_tok) bf16 -> (o1, o2): (C, nw*n_tok) f32."""
    c, total = x1w.shape
    nw = total // n_tok
    grid = (nw // wblk,)
    blk_lane = wblk * n_tok

    # Cap the unroll of the window loop (full unroll only for small N).
    unroll = True if n_tok <= 256 else 2

    # VMEM budget: double-buffered in/out blocks, q/k scratch, live attention
    # tiles, weights, plus slack — clamped against the per-chip capacity.
    in_blk = 2 * c * blk_lane * 2
    out_blk = 2 * c * blk_lane * 4
    scratch = 2 * c * blk_lane * 2
    live = n_tok * n_tok * (4 + 2) * 2
    weights = 2 * (c * c * 2 + c * 4)
    need = 2 * (in_blk + out_blk) + scratch + live + weights + (2 << 20)
    vmem_limit = int(min(max(2 * need, 32 << 20), int(0.6 * vmem_cap)))
    vmem_limit = max(vmem_limit, need)

    kernel = functools.partial(_window_cross_attn_kernel,
                               n_tok=n_tok, n_valid=n_valid,
                               w_blk=wblk, unroll=unroll)

    data_spec = pl.BlockSpec((c, blk_lane), lambda i: (0, i))
    w_spec = pl.BlockSpec((c, c), lambda i: (0, 0))
    b_spec = pl.BlockSpec((c, 1), lambda i: (0, 0))

    return pl.pallas_call(
        kernel,
        out_shape=(jax.ShapeDtypeStruct((c, total), jnp.float32),
                   jax.ShapeDtypeStruct((c, total), jnp.float32)),
        grid_spec=pltpu.PrefetchScalarGridSpec(
            num_scalar_prefetch=0,
            grid=grid,
            in_specs=[data_spec, data_spec, w_spec, b_spec, w_spec, b_spec],
            out_specs=(data_spec, data_spec),
            scratch_shapes=[pltpu.VMEM((c, blk_lane), jnp.bfloat16),
                            pltpu.VMEM((c, blk_lane), jnp.bfloat16)],
        ),
        compiler_params=pltpu.CompilerParams(
            dimension_semantics=("parallel",),
            vmem_limit_bytes=vmem_limit),
    )(x1w, x2w, wq, bq, wk, bk)


# -----------------------------------------------------------------------------
# Module-level wrapper (layout glue: padding, window partition, un-partition)
# -----------------------------------------------------------------------------
class AdaptiveWindowedCrossAttentionPallas:
    def __init__(self, dim, min_window=6, num_heads=4, key=None):
        self.dim = dim
        self.min_window = min_window
        self.num_heads = num_heads
        # num_heads only enters via the scale (no head split), as in the spec.
        self.scale = (dim // num_heads) ** (-0.5)

        if key is None:
            key = jax.random.PRNGKey(42)
        k1, k2, k3, k4 = jax.random.split(key, 4)
        bound = 1.0 / math.sqrt(dim)
        # nn.Linear convention: weight is (out, in).
        self.wq = jax.random.uniform(k1, (dim, dim), jnp.float32, -bound, bound)
        self.bq = jax.random.uniform(k2, (dim,), jnp.float32, -bound, bound)
        self.wk = jax.random.uniform(k3, (dim, dim), jnp.float32, -bound, bound)
        self.bk = jax.random.uniform(k4, (dim,), jnp.float32, -bound, bound)

        # Kernel-side parameters: attention scale folded into the Q projection
        # (removes the (N, N) `* scale` pass), weights in bf16 for the MXU.
        self.wq_s = (self.wq * self.scale).astype(jnp.bfloat16)
        self.bq_s = (self.bq * self.scale).reshape(dim, 1).astype(jnp.float32)
        self.wk_b = self.wk.astype(jnp.bfloat16)
        self.bk_b = self.bk.reshape(dim, 1).astype(jnp.float32)

    def get_window_size(self, H, W):
        return max(math.gcd(H, W), self.min_window)

    @staticmethod
    def _pad_input(x, ws):
        B, C, H, W = x.shape
        pad_h = (ws - H % ws) % ws
        pad_w = (ws - W % ws) % ws
        if pad_h > 0 or pad_w > 0:
            # TODO(synk): reflect padding requires pad_h < H and pad_w < W
            # (same constraint as F.pad(..., mode='reflect') in the spec).
            x = jnp.pad(x, ((0, 0), (0, 0), (0, pad_h), (0, pad_w)), mode="reflect")
        return x, pad_h, pad_w

    @staticmethod
    def _unpad(x, pad_h, pad_w):
        if pad_h > 0:
            x = x[:, :, :-pad_h, :]
        if pad_w > 0:
            x = x[:, :, :, :-pad_w]
        return x

    @staticmethod
    def _window_partition(x, ws, n_tok):
        # (B, C, Hp, Wp) -> (C, nw*n_tok): channels on sublanes, all windows
        # stacked on the lane axis (tokens contiguous per window, zero-padded
        # from ws*ws up to n_tok lanes so blocks stay 128-aligned).
        B, C, Hp, Wp = x.shape
        nH, nW = Hp // ws, Wp // ws
        x = x.reshape(B, C, nH, ws, nW, ws)
        x = jnp.transpose(x, (1, 0, 2, 4, 3, 5))           # (C, B, nH, nW, ws, ws)
        x = x.reshape(C, B * nH * nW, ws * ws)
        if n_tok > ws * ws:
            x = jnp.pad(x, ((0, 0), (0, 0), (0, n_tok - ws * ws)))
        return x.reshape(C, B * nH * nW * n_tok)

    @staticmethod
    def _window_unpartition(o, B, C, Hp, Wp, ws, n_tok):
        # (C, nw*n_tok) -> (B, C, Hp, Wp)
        nH, nW = Hp // ws, Wp // ws
        o = o.reshape(C, B * nH * nW, n_tok)[:, :, : ws * ws]
        o = o.reshape(C, B, nH, nW, ws, ws)
        o = jnp.transpose(o, (1, 0, 2, 4, 3, 5))           # (B, C, nH, ws, nW, ws)
        return o.reshape(B, C, Hp, Wp)

    def __call__(self, x1, x2):
        B, C, H, W = x1.shape
        ws = self.get_window_size(H, W)
        x1p, pad_h, pad_w = self._pad_input(x1, ws)
        x2p, _, _ = self._pad_input(x2, ws)
        _, _, Hp, Wp = x1p.shape

        nw = B * (Hp // ws) * (Wp // ws)
        n_valid = ws * ws
        n_tok = max(128, ((n_valid + 127) // 128) * 128)   # lane-align tokens

        # Separate streams (no host-side concat -> no extra HBM round-trip).
        x1w = self._window_partition(x1p.astype(jnp.bfloat16), ws, n_tok)
        x2w = self._window_partition(x2p.astype(jnp.bfloat16), ws, n_tok)

        vmem_cap = _vmem_capacity_bytes()
        wblk = _choose_w_blk(nw, C, n_tok, vmem_cap, _num_tensorcores())

        o1w, o2w = _window_cross_attn(
            x1w, x2w, self.wq_s, self.bq_s, self.wk_b, self.bk_b,
            n_tok=n_tok, n_valid=n_valid, wblk=wblk, vmem_cap=vmem_cap)

        o1 = self._window_unpartition(o1w, B, C, Hp, Wp, ws, n_tok)
        o2 = self._window_unpartition(o2w, B, C, Hp, Wp, ws, n_tok)
        return self._unpad(o1, pad_h, pad_w), self._unpad(o2, pad_h, pad_w)


# -----------------------------------------------------------------------------
# Pure-JAX f32 reference (mirrors the PyTorch forward) for a correctness check
# -----------------------------------------------------------------------------
def _reference(mod, x1, x2):
    B, C, H, W = x1.shape
    ws = mod.get_window_size(H, W)
    x1p, pad_h, pad_w = mod._pad_input(x1, ws)
    x2p, _, _ = mod._pad_input(x2, ws)
    _, _, Hp, Wp = x1p.shape
    nH, nW = Hp // ws, Wp // ws

    def part(x):                                           # token-major, like PyTorch
        x = x.reshape(B, C, nH, ws, nW, ws)
        x = jnp.transpose(x, (0, 2, 4, 3, 5, 1))
        return x.reshape(B * nH * nW, ws * ws, C)

    x1w, x2w = part(x1p), part(x2p)
    Q = x1w @ mod.wq.T + mod.bq
    K = x2w @ mod.wk.T + mod.bk
    attn = jnp.einsum("bnc,bmc->bnm", Q, K) * mod.scale
    attn = jax.nn.softmax(attn, axis=-1)
    o1w = attn @ x1w
    o2w = attn @ x2w

    def unpart(w):
        x = w.reshape(B, nH, nW, ws, ws, C)
        x = jnp.transpose(x, (0, 5, 1, 3, 2, 4))
        return x.reshape(B, C, Hp, Wp)

    return (mod._unpad(unpart(o1w), pad_h, pad_w),
            mod._unpad(unpart(o2w), pad_h, pad_w))


if __name__ == "__main__":
    key = jax.random.PRNGKey(0)
    kx1, kx2, kp = jax.random.split(key, 3)

    mod = AdaptiveWindowedCrossAttentionPallas(dim=32, min_window=6, num_heads=4, key=kp)

    # Case 1: B=4, C=32, H=W=16 -> ws=16, N=256 (lane-aligned), 4 windows.
    B, C, H, W = 4, 32, 16, 16
    x1 = jax.random.normal(kx1, (B, C, H, W), jnp.float32)
    x2 = jax.random.normal(kx2, (B, C, H, W), jnp.float32)
    o1, o2 = mod(x1, x2)
    jax.block_until_ready((o1, o2))
    r1, r2 = _reference(mod, x1, x2)
    assert o1.shape == (B, C, H, W) and o2.shape == (B, C, H, W)
    err1 = float(jnp.max(jnp.abs(o1 - r1)) / (jnp.max(jnp.abs(r1)) + 1e-6))
    err2 = float(jnp.max(jnp.abs(o2 - r2)) / (jnp.max(jnp.abs(r2)) + 1e-6))
    assert err1 < 5e-2 and err2 < 5e-2, (err1, err2)

    # Case 2: B=2, C=32, H=10, W=9 -> ws=min_window=6 (gcd=1), reflect padding
    # to 12x12 and 36-token windows lane-padded to 128 with key masking.
    B2, H2, W2 = 2, 10, 9
    y1 = jax.random.normal(jax.random.PRNGKey(1), (B2, C, H2, W2), jnp.float32)
    y2 = jax.random.normal(jax.random.PRNGKey(2), (B2, C, H2, W2), jnp.float32)
    p1, p2 = mod(y1, y2)
    jax.block_until_ready((p1, p2))
    q1, q2 = _reference(mod, y1, y2)
    assert p1.shape == (B2, C, H2, W2) and p2.shape == (B2, C, H2, W2)
    e1 = float(jnp.max(jnp.abs(p1 - q1)) / (jnp.max(jnp.abs(q1)) + 1e-6))
    e2 = float(jnp.max(jnp.abs(p2 - q2)) / (jnp.max(jnp.abs(q2)) + 1e-6))
    assert e1 < 5e-2 and e2 < 5e-2, (e1, e2)

    print("KERNEL_OK")
</pallas_src>

<mosaic_0001>
module attributes {stable_mosaic.version = 11 : i64} {
  func.func @_window_cross_attn_kernel(%arg0: i32, %arg1: memref<32x1024xbf16, #tpu.memory_space<vmem>>, %arg2: memref<32x1024xbf16, #tpu.memory_space<vmem>>, %arg3: memref<32x32xbf16, #tpu.memory_space<vmem>>, %arg4: memref<32x1xf32, #tpu.memory_space<vmem>>, %arg5: memref<32x32xbf16, #tpu.memory_space<vmem>>, %arg6: memref<32x1xf32, #tpu.memory_space<vmem>>, %arg7: memref<32x1024xf32, #tpu.memory_space<vmem>>, %arg8: memref<32x1024xf32, #tpu.memory_space<vmem>>, %arg9: memref<32x1024xbf16, #tpu.memory_space<vmem>>, %arg10: memref<32x1024xbf16, #tpu.memory_space<vmem>>) attributes {dimension_semantics = [#tpu.dimension_semantics<parallel>], iteration_bounds = array<i64: 1>, scalar_prefetch = 0 : i64, scratch_operands = 2 : i64, tpu.core_type = #tpu.core_type<tc>, window_params = [{transform_indices = @transform_0, window_bounds = array<i64: 32, 1024>}, {transform_indices = @transform_1, window_bounds = array<i64: 32, 1024>}, {pipeline_mode = #tpu.pipeline_mode<synchronous>, transform_indices = @transform_2, window_bounds = array<i64: 32, 32>}, {pipeline_mode = #tpu.pipeline_mode<synchronous>, transform_indices = @transform_3, window_bounds = array<i64: 32, 1>}, {pipeline_mode = #tpu.pipeline_mode<synchronous>, transform_indices = @transform_4, window_bounds = array<i64: 32, 32>}, {pipeline_mode = #tpu.pipeline_mode<synchronous>, transform_indices = @transform_5, window_bounds = array<i64: 32, 1>}, {transform_indices = @transform_6, window_bounds = array<i64: 32, 1024>}, {transform_indices = @transform_7, window_bounds = array<i64: 32, 1024>}]} {
    %c0 = arith.constant 0 : index
    %c0_0 = arith.constant 0 : index
    %0 = vector.load %arg3[%c0, %c0_0] : memref<32x32xbf16, #tpu.memory_space<vmem>>, vector<32x32xbf16>
    %c0_1 = arith.constant 0 : index
    %c0_2 = arith.constant 0 : index
    %1 = vector.load %arg1[%c0_1, %c0_2] : memref<32x1024xbf16, #tpu.memory_space<vmem>>, vector<32x1024xbf16>
    %cst = arith.constant dense<0.000000e+00> : vector<32x1024xf32>
    %2 = tpu.matmul %0, %1, %cst {dimension_numbers = #tpu.dot_dimension_numbers<[1], [0], [0], [1], [0, 0, 1, 1], [], []>} : vector<32x32xbf16>, vector<32x1024xbf16>, vector<32x1024xf32> -> vector<32x1024xf32>
    %c0_3 = arith.constant 0 : index
    %c0_4 = arith.constant 0 : index
    %3 = vector.load %arg4[%c0_3, %c0_4] : memref<32x1xf32, #tpu.memory_space<vmem>>, vector<32x1xf32>
    %4 = vector.broadcast %3 : vector<32x1xf32> to vector<32x1024xf32>
    %5 = arith.addf %2, %4 : vector<32x1024xf32>
    %6 = arith.truncf %5 : vector<32x1024xf32> to vector<32x1024xbf16>
    %c0_5 = arith.constant 0 : index
    %c0_6 = arith.constant 0 : index
    %7 = vector.load %arg9[%c0_5, %c0_6] : memref<32x1024xbf16, #tpu.memory_space<vmem>>, vector<32x1024xbf16>
    tpu.vector_store %arg9[%c0_5, %c0_6], %6 {strides = array<i32>} : memref<32x1024xbf16, #tpu.memory_space<vmem>>, vector<32x1024xbf16>,
    %c0_7 = arith.constant 0 : index
    %c0_8 = arith.constant 0 : index
    %8 = vector.load %arg5[%c0_7, %c0_8] : memref<32x32xbf16, #tpu.memory_space<vmem>>, vector<32x32xbf16>
    %c0_9 = arith.constant 0 : index
    %c0_10 = arith.constant 0 : index
    %9 = vector.load %arg2[%c0_9, %c0_10] : memref<32x1024xbf16, #tpu.memory_space<vmem>>, vector<32x1024xbf16>
    %cst_11 = arith.constant dense<0.000000e+00> : vector<32x1024xf32>
    %10 = tpu.matmul %8, %9, %cst_11 {dimension_numbers = #tpu.dot_dimension_numbers<[1], [0], [0], [1], [0, 0, 1, 1], [], []>} : vector<32x32xbf16>, vector<32x1024xbf16>, vector<32x1024xf32> -> vector<32x1024xf32>
    %c0_12 = arith.constant 0 : index
    %c0_13 = arith.constant 0 : index
    %11 = vector.load %arg6[%c0_12, %c0_13] : memref<32x1xf32, #tpu.memory_space<vmem>>, vector<32x1xf32>
    %12 = vector.broadcast %11 : vector<32x1xf32> to vector<32x1024xf32>
    %13 = arith.addf %10, %12 : vector<32x1024xf32>
    %14 = arith.truncf %13 : vector<32x1024xf32> to vector<32x1024xbf16>
    %c0_14 = arith.constant 0 : index
    %c0_15 = arith.constant 0 : index
    %15 = vector.load %arg10[%c0_14, %c0_15] : memref<32x1024xbf16, #tpu.memory_space<vmem>>, vector<32x1024xbf16>
    tpu.vector_store %arg10[%c0_14, %c0_15], %14 {strides = array<i32>} : memref<32x1024xbf16, #tpu.memory_space<vmem>>, vector<32x1024xbf16>,
    %cst_16 = arith.constant 1.000000e+00 : bf16
    %16 = vector.broadcast %cst_16 : bf16 to vector<8x256xbf16>
    %c0_i32 = arith.constant 0 : i32
    %c256_i32 = arith.constant 256 : i32
    %17 = arith.muli %c0_i32, %c256_i32 : i32
    %18 = tpu.assume_multiple %17, 128 : i32
    %c0_17 = arith.constant 0 : index
    %19 = arith.index_cast %18 : i32 to index
    %20 = vector.load %arg9[%c0_17, %19] : memref<32x1024xbf16, #tpu.memory_space<vmem>>, vector<32x256xbf16>
    %c0_18 = arith.constant 0 : index
    %21 = arith.index_cast %18 : i32 to index
    %22 = vector.load %arg10[%c0_18, %21] : memref<32x1024xbf16, #tpu.memory_space<vmem>>, vector<32x256xbf16>
    %cst_19 = arith.constant dense<0.000000e+00> : vector<256x256xf32>
    %23 = tpu.matmul %22, %20, %cst_19 {dimension_numbers = #tpu.dot_dimension_numbers<[0], [0], [1], [1], [0, 1, 1, 1], [], []>} : vector<32x256xbf16>, vector<32x256xbf16>, vector<256x256xf32> -> vector<256x256xf32>
    %cst_20 = arith.constant dense<0xFF800000> : vector<256xf32>
    %24 = vector.multi_reduction <maximumf>, %23, %cst_20 [0] : vector<256x256xf32> to vector<256xf32>
    %25 = vector.shape_cast %24 : vector<256xf32> to vector<1x256xf32>
    %26 = vector.broadcast %25 : vector<1x256xf32> to vector<256x256xf32>
    %27 = arith.subf %23, %26 : vector<256x256xf32>
    %28 = math.exp %27 : vector<256x256xf32>
    %29 = arith.truncf %28 : vector<256x256xf32> to vector<256x256xbf16>
    %cst_21 = arith.constant dense<0.000000e+00> : vector<8x256xf32>
    %30 = tpu.matmul %16, %29, %cst_21 {dimension_numbers = #tpu.dot_dimension_numbers<[1], [0], [0], [1], [0, 0, 1, 1], [], []>} : vector<8x256xbf16>, vector<256x256xbf16>, vector<8x256xf32> -> vector<8x256xf32>
    %31 = vector.extract_strided_slice %30 {offsets = [0, 0], sizes = [1, 256], strides = [1, 1]} : vector<8x256xf32> to vector<1x256xf32>
    %32 = tpu.reciprocal %31 {approx = true} : vector<1x256xf32> -> vector<1x256xf32>
    %c0_22 = arith.constant 0 : index
    %33 = arith.index_cast %18 : i32 to index
    %34 = vector.load %arg1[%c0_22, %33] : memref<32x1024xbf16, #tpu.memory_space<vmem>>, vector<32x256xbf16>
    %c0_23 = arith.constant 0 : index
    %35 = arith.index_cast %18 : i32 to index
    %36 = vector.load %arg2[%c0_23, %35] : memref<32x1024xbf16, #tpu.memory_space<vmem>>, vector<32x256xbf16>
    %cst_24 = arith.constant dense<0.000000e+00> : vector<32x256xf32>
    %37 = tpu.matmul %34, %29, %cst_24 {dimension_numbers = #tpu.dot_dimension_numbers<[1], [0], [0], [1], [0, 0, 1, 1], [], []>} : vector<32x256xbf16>, vector<256x256xbf16>, vector<32x256xf32> -> vector<32x256xf32>
    %cst_25 = arith.constant dense<0.000000e+00> : vector<32x256xf32>
    %38 = tpu.matmul %36, %29, %cst_25 {dimension_numbers = #tpu.dot_dimension_numbers<[1], [0], [0], [1], [0, 0, 1, 1], [], []>} : vector<32x256xbf16>, vector<256x256xbf16>, vector<32x256xf32> -> vector<32x256xf32>
    %39 = vector.broadcast %32 : vector<1x256xf32> to vector<32x256xf32>
    %40 = arith.mulf %37, %39 : vector<32x256xf32>
    %c0_26 = arith.constant 0 : index
    %41 = arith.index_cast %18 : i32 to index
    %42 = vector.load %arg7[%c0_26, %41] : memref<32x1024xf32, #tpu.memory_space<vmem>>, vector<32x256xf32>
    tpu.vector_store %arg7[%c0_26, %41], %40 {strides = array<i32>} : memref<32x1024xf32, #tpu.memory_space<vmem>>, vector<32x256xf32>,
    %43 = vector.broadcast %32 : vector<1x256xf32> to vector<32x256xf32>
    %44 = arith.mulf %38, %43 : vector<32x256xf32>
    %c0_27 = arith.constant 0 : index
    %45 = arith.index_cast %18 : i32 to index
    %46 = vector.load %arg8[%c0_27, %45] : memref<32x1024xf32, #tpu.memory_space<vmem>>, vector<32x256xf32>
    tpu.vector_store %arg8[%c0_27, %45], %44 {strides = array<i32>} : memref<32x1024xf32, #tpu.memory_space<vmem>>, vector<32x256xf32>,
    %c1_i32 = arith.constant 1 : i32
    %c256_i32_28 = arith.constant 256 : i32
    %47 = arith.muli %c1_i32, %c256_i32_28 : i32
    %48 = tpu.assume_multiple %47, 128 : i32
    %c0_29 = arith.constant 0 : index
    %49 = arith.index_cast %48 : i32 to index
    %50 = vector.load %arg9[%c0_29, %49] : memref<32x1024xbf16, #tpu.memory_space<vmem>>, vector<32x256xbf16>
    %c0_30 = arith.constant 0 : index
    %51 = arith.index_cast %48 : i32 to index
    %52 = vector.load %arg10[%c0_30, %51] : memref<32x1024xbf16, #tpu.memory_space<vmem>>, vector<32x256xbf16>
    %cst_31 = arith.constant dense<0.000000e+00> : vector<256x256xf32>
    %53 = tpu.matmul %52, %50, %cst_31 {dimension_numbers = #tpu.dot_dimension_numbers<[0], [0], [1], [1], [0, 1, 1, 1], [], []>} : vector<32x256xbf16>, vector<32x256xbf16>, vector<256x256xf32> -> vector<256x256xf32>
    %cst_32 = arith.constant dense<0xFF800000> : vector<256xf32>
    %54 = vector.multi_reduction <maximumf>, %53, %cst_32 [0] : vector<256x256xf32> to vector<256xf32>
    %55 = vector.shape_cast %54 : vector<256xf32> to vector<1x256xf32>
    %56 = vector.broadcast %55 : vector<1x256xf32> to vector<256x256xf32>
    %57 = arith.subf %53, %56 : vector<256x256xf32>
    %58 = math.exp %57 : vector<256x256xf32>
    %59 = arith.truncf %58 : vector<256x256xf32> to vector<256x256xbf16>
    %cst_33 = arith.constant dense<0.000000e+00> : vector<8x256xf32>
    %60 = tpu.matmul %16, %59, %cst_33 {dimension_numbers = #tpu.dot_dimension_numbers<[1], [0], [0], [1], [0, 0, 1, 1], [], []>} : vector<8x256xbf16>, vector<256x256xbf16>, vector<8x256xf32> -> vector<8x256xf32>
    %61 = vector.extract_strided_slice %60 {offsets = [0, 0], sizes = [1, 256], strides = [1, 1]} : vector<8x256xf32> to vector<1x256xf32>
    %62 = tpu.reciprocal %61 {approx = true} : vector<1x256xf32> -> vector<1x256xf32>
    %c0_34 = arith.constant 0 : index
    %63 = arith.index_cast %48 : i32 to index
    %64 = vector.load %arg1[%c0_34, %63] : memref<32x1024xbf16, #tpu.memory_space<vmem>>, vector<32x256xbf16>
    %c0_35 = arith.constant 0 : index
    %65 = arith.index_cast %48 : i32 to index
    %66 = vector.load %arg2[%c0_35, %65] : memref<32x1024xbf16, #tpu.memory_space<vmem>>, vector<32x256xbf16>
    %cst_36 = arith.constant dense<0.000000e+00> : vector<32x256xf32>
    %67 = tpu.matmul %64, %59, %cst_36 {dimension_numbers = #tpu.dot_dimension_numbers<[1], [0], [0], [1], [0, 0, 1, 1], [], []>} : vector<32x256xbf16>, vector<256x256xbf16>, vector<32x256xf32> -> vector<32x256xf32>
    %cst_37 = arith.constant dense<0.000000e+00> : vector<32x256xf32>
    %68 = tpu.matmul %66, %59, %cst_37 {dimension_numbers = #tpu.dot_dimension_numbers<[1], [0], [0], [1], [0, 0, 1, 1], [], []>} : vector<32x256xbf16>, vector<256x256xbf16>, vector<32x256xf32> -> vector<32x256xf32>
    %69 = vector.broadcast %62 : vector<1x256xf32> to vector<32x256xf32>
    %70 = arith.mulf %67, %69 : vector<32x256xf32>
    %c0_38 = arith.constant 0 : index
    %71 = arith.index_cast %48 : i32 to index
    %72 = vector.load %arg7[%c0_38, %71] : memref<32x1024xf32, #tpu.memory_space<vmem>>, vector<32x256xf32>
    tpu.vector_store %arg7[%c0_38, %71], %70 {strides = array<i32>} : memref<32x1024xf32, #tpu.memory_space<vmem>>, vector<32x256xf32>,
    %73 = vector.broadcast %62 : vector<1x256xf32> to vector<32x256xf32>
    %74 = arith.mulf %68, %73 : vector<32x256xf32>
    %c0_39 = arith.constant 0 : index
    %75 = arith.index_cast %48 : i32 to index
    %76 = vector.load %arg8[%c0_39, %75] : memref<32x1024xf32, #tpu.memory_space<vmem>>, vector<32x256xf32>
    tpu.vector_store %arg8[%c0_39, %75], %74 {strides = array<i32>} : memref<32x1024xf32, #tpu.memory_space<vmem>>, vector<32x256xf32>,
    %c2_i32 = arith.constant 2 : i32
    %c256_i32_40 = arith.constant 256 : i32
    %77 = arith.muli %c2_i32, %c256_i32_40 : i32
    %78 = tpu.assume_multiple %77, 128 : i32
    %c0_41 = arith.constant 0 : index
    %79 = arith.index_cast %78 : i32 to index
    %80 = vector.load %arg9[%c0_41, %79] : memref<32x1024xbf16, #tpu.memory_space<vmem>>, vector<32x256xbf16>
    %c0_42 = arith.constant 0 : index
    %81 = arith.index_cast %78 : i32 to index
    %82 = vector.load %arg10[%c0_42, %81] : memref<32x1024xbf16, #tpu.memory_space<vmem>>, vector<32x256xbf16>
    %cst_43 = arith.constant dense<0.000000e+00> : vector<256x256xf32>
    %83 = tpu.matmul %82, %80, %cst_43 {dimension_numbers = #tpu.dot_dimension_numbers<[0], [0], [1], [1], [0, 1, 1, 1], [], []>} : vector<32x256xbf16>, vector<32x256xbf16>, vector<256x256xf32> -> vector<256x256xf32>
    %cst_44 = arith.constant dense<0xFF800000> : vector<256xf32>
    %84 = vector.multi_reduction <maximumf>, %83, %cst_44 [0] : vector<256x256xf32> to vector<256xf32>
    %85 = vector.shape_cast %84 : vector<256xf32> to vector<1x256xf32>
    %86 = vector.broadcast %85 : vector<1x256xf32> to vector<256x256xf32>
    %87 = arith.subf %83, %86 : vector<256x256xf32>
    %88 = math.exp %87 : vector<256x256xf32>
    %89 = arith.truncf %88 : vector<256x256xf32> to vector<256x256xbf16>
    %cst_45 = arith.constant dense<0.000000e+00> : vector<8x256xf32>
    %90 = tpu.matmul %16, %89, %cst_45 {dimension_numbers = #tpu.dot_dimension_numbers<[1], [0], [0], [1], [0, 0, 1, 1], [], []>} : vector<8x256xbf16>, vector<256x256xbf16>, vector<8x256xf32> -> vector<8x256xf32>
    %91 = vector.extract_strided_slice %90 {offsets = [0, 0], sizes = [1, 256], strides = [1, 1]} : vector<8x256xf32> to vector<1x256xf32>
    %92 = tpu.reciprocal %91 {approx = true} : vector<1x256xf32> -> vector<1x256xf32>
    %c0_46 = arith.constant 0 : index
    %93 = arith.index_cast %78 : i32 to index
    %94 = vector.load %arg1[%c0_46, %93] : memref<32x1024xbf16, #tpu.memory_space<vmem>>, vector<32x256xbf16>
    %c0_47 = arith.constant 0 : index
    %95 = arith.index_cast %78 : i32 to index
    %96 = vector.load %arg2[%c0_47, %95] : memref<32x1024xbf16, #tpu.memory_space<vmem>>, vector<32x256xbf16>
    %cst_48 = arith.constant dense<0.000000e+00> : vector<32x256xf32>
    %97 = tpu.matmul %94, %89, %cst_48 {dimension_numbers = #tpu.dot_dimension_numbers<[1], [0], [0], [1], [0, 0, 1, 1], [], []>} : vector<32x256xbf16>, vector<256x256xbf16>, vector<32x256xf32> -> vector<32x256xf32>
    %cst_49 = arith.constant dense<0.000000e+00> : vector<32x256xf32>
    %98 = tpu.matmul %96, %89, %cst_49 {dimension_numbers = #tpu.dot_dimension_numbers<[1], [0], [0], [1], [0, 0, 1, 1], [], []>} : vector<32x256xbf16>, vector<256x256xbf16>, vector<32x256xf32> -> vector<32x256xf32>
    %99 = vector.broadcast %92 : vector<1x256xf32> to vector<32x256xf32>
    %100 = arith.mulf %97, %99 : vector<32x256xf32>
    %c0_50 = arith.constant 0 : index
    %101 = arith.index_cast %78 : i32 to index
    %102 = vector.load %arg7[%c0_50, %101] : memref<32x1024xf32, #tpu.memory_space<vmem>>, vector<32x256xf32>
    tpu.vector_store %arg7[%c0_50, %101], %100 {strides = array<i32>} : memref<32x1024xf32, #tpu.memory_space<vmem>>, vector<32x256xf32>,
    %103 = vector.broadcast %92 : vector<1x256xf32> to vector<32x256xf32>
    %104 = arith.mulf %98, %103 : vector<32x256xf32>
    %c0_51 = arith.constant 0 : index
    %105 = arith.index_cast %78 : i32 to index
    %106 = vector.load %arg8[%c0_51, %105] : memref<32x1024xf32, #tpu.memory_space<vmem>>, vector<32x256xf32>
    tpu.vector_store %arg8[%c0_51, %105], %104 {strides = array<i32>} : memref<32x1024xf32, #tpu.memory_space<vmem>>, vector<32x256xf32>,
    %c3_i32 = arith.constant 3 : i32
    %c256_i32_52 = arith.constant 256 : i32
    %107 = arith.muli %c3_i32, %c256_i32_52 : i32
    %108 = tpu.assume_multiple %107, 128 : i32
    %c0_53 = arith.constant 0 : index
    %109 = arith.index_cast %108 : i32 to index
    %110 = vector.load %arg9[%c0_53, %109] : memref<32x1024xbf16, #tpu.memory_space<vmem>>, vector<32x256xbf16>
    %c0_54 = arith.constant 0 : index
    %111 = arith.index_cast %108 : i32 to index
    %112 = vector.load %arg10[%c0_54, %111] : memref<32x1024xbf16, #tpu.memory_space<vmem>>, vector<32x256xbf16>
    %cst_55 = arith.constant dense<0.000000e+00> : vector<256x256xf32>
    %113 = tpu.matmul %112, %110, %cst_55 {dimension_numbers = #tpu.dot_dimension_numbers<[0], [0], [1], [1], [0, 1, 1, 1], [], []>} : vector<32x256xbf16>, vector<32x256xbf16>, vector<256x256xf32> -> vector<256x256xf32>
    %cst_56 = arith.constant dense<0xFF800000> : vector<256xf32>
    %114 = vector.multi_reduction <maximumf>, %113, %cst_56 [0] : vector<256x256xf32> to vector<256xf32>
    %115 = vector.shape_cast %114 : vector<256xf32> to vector<1x256xf32>
    %116 = vector.broadcast %115 : vector<1x256xf32> to vector<256x256xf32>
    %117 = arith.subf %113, %116 : vector<256x256xf32>
    %118 = math.exp %117 : vector<256x256xf32>
    %119 = arith.truncf %118 : vector<256x256xf32> to vector<256x256xbf16>
    %cst_57 = arith.constant dense<0.000000e+00> : vector<8x256xf32>
    %120 = tpu.matmul %16, %119, %cst_57 {dimension_numbers = #tpu.dot_dimension_numbers<[1], [0], [0], [1], [0, 0, 1, 1], [], []>} : vector<8x256xbf16>, vector<256x256xbf16>, vector<8x256xf32> -> vector<8x256xf32>
    %121 = vector.extract_strided_slice %120 {offsets = [0, 0], sizes = [1, 256], strides = [1, 1]} : vector<8x256xf32> to vector<1x256xf32>
    %122 = tpu.reciprocal %121 {approx = true} : vector<1x256xf32> -> vector<1x256xf32>
    %c0_58 = arith.constant 0 : index
    %123 = arith.index_cast %108 : i32 to index
    %124 = vector.load %arg1[%c0_58, %123] : memref<32x1024xbf16, #tpu.memory_space<vmem>>, vector<32x256xbf16>
    %c0_59 = arith.constant 0 : index
    %125 = arith.index_cast %108 : i32 to index
    %126 = vector.load %arg2[%c0_59, %125] : memref<32x1024xbf16, #tpu.memory_space<vmem>>, vector<32x256xbf16>
    %cst_60 = arith.constant dense<0.000000e+00> : vector<32x256xf32>
    %127 = tpu.matmul %124, %119, %cst_60 {dimension_numbers = #tpu.dot_dimension_numbers<[1], [0], [0], [1], [0, 0, 1, 1], [], []>} : vector<32x256xbf16>, vector<256x256xbf16>, vector<32x256xf32> -> vector<32x256xf32>
    %cst_61 = arith.constant dense<0.000000e+00> : vector<32x256xf32>
    %128 = tpu.matmul %126, %119, %cst_61 {dimension_numbers = #tpu.dot_dimension_numbers<[1], [0], [0], [1], [0, 0, 1, 1], [], []>} : vector<32x256xbf16>, vector<256x256xbf16>, vector<32x256xf32> -> vector<32x256xf32>
    %129 = vector.broadcast %122 : vector<1x256xf32> to vector<32x256xf32>
    %130 = arith.mulf %127, %129 : vector<32x256xf32>
    %c0_62 = arith.constant 0 : index
    %131 = arith.index_cast %108 : i32 to index
    %132 = vector.load %arg7[%c0_62, %131] : memref<32x1024xf32, #tpu.memory_space<vmem>>, vector<32x256xf32>
    tpu.vector_store %arg7[%c0_62, %131], %130 {strides = array<i32>} : memref<32x1024xf32, #tpu.memory_space<vmem>>, vector<32x256xf32>,
    %133 = vector.broadcast %122 : vector<1x256xf32> to vector<32x256xf32>
    %134 = arith.mulf %128, %133 : vector<32x256xf32>
    %c0_63 = arith.constant 0 : index
    %135 = arith.index_cast %108 : i32 to index
    %136 = vector.load %arg8[%c0_63, %135] : memref<32x1024xf32, #tpu.memory_space<vmem>>, vector<32x256xf32>
    tpu.vector_store %arg8[%c0_63, %135], %134 {strides = array<i32>} : memref<32x1024xf32, #tpu.memory_space<vmem>>, vector<32x256xf32>,
    %c4_i32 = arith.constant 4 : i32
    return
  }
  func.func @transform_0(%arg0: i32) -> (i32, i32) {
    %c0_i32 = arith.constant 0 : i32
    %c0_i32_0 = arith.constant 0 : i32
    return %c0_i32, %arg0 : i32, i32
  }
  func.func @transform_1(%arg0: i32) -> (i32, i32) {
    %c0_i32 = arith.constant 0 : i32
    %c0_i32_0 = arith.constant 0 : i32
    return %c0_i32, %arg0 : i32, i32
  }
  func.func @transform_2(%arg0: i32) -> (i32, i32) {
    %c0_i32 = arith.constant 0 : i32
    %c0_i32_0 = arith.constant 0 : i32
    %c0_i32_1 = arith.constant 0 : i32
    return %c0_i32, %c0_i32_0 : i32, i32
  }
  func.func @transform_3(%arg0: i32) -> (i32, i32) {
    %c0_i32 = arith.constant 0 : i32
    %c0_i32_0 = arith.constant 0 : i32
    %c0_i32_1 = arith.constant 0 : i32
    return %c0_i32, %c0_i32_0 : i32, i32
  }
  func.func @transform_4(%arg0: i32) -> (i32, i32) {
    %c0_i32 = arith.constant 0 : i32
    %c0_i32_0 = arith.constant 0 : i32
    %c0_i32_1 = arith.constant 0 : i32
    return %c0_i32, %c0_i32_0 : i32, i32
  }
  func.func @transform_5(%arg0: i32) -> (i32, i32) {
    %c0_i32 = arith.constant 0 : i32
    %c0_i32_0 = arith.constant 0 : i32
    %c0_i32_1 = arith.constant 0 : i32
    return %c0_i32, %c0_i32_0 : i32, i32
  }
  func.func @transform_6(%arg0: i32) -> (i32, i32) {
    %c0_i32 = arith.constant 0 : i32
    %c0_i32_0 = arith.constant 0 : i32
    return %c0_i32, %arg0 : i32, i32
  }
  func.func @transform_7(%arg0: i32) -> (i32, i32) {
    %c0_i32 = arith.constant 0 : i32
    %c0_i32_0 = arith.constant 0 : i32
    return %c0_i32, %arg0 : i32, i32
  }
}

</mosaic_0001>

<bundles_post_ra>
// kernel: tpu_custom_call.1
= control target key start
LH: loop header
LB: loop body
LE: loop exit
PB: predicated region body
PF: predicated region fallthrough
CT: control target
= control target key end

     0   :  { %13 = vsyncpa [#allocation5], 0  ;;  %s8095_s0 = inlined_call_operand.hbm [shape: bf16[32,1024], index: 0, kind: input, shape index: {}]   ;;  %s8096_s1 = inlined_call_operand.hbm [shape: bf16[32,1024], index: 1, kind: input, shape index: {}]   ;;  %s8097_s2 = inlined_call_operand.vmem [shape: bf16[32,32], index: 2, kind: input, shape index: {}]   ;;  %s8098_s3 = inlined_call_operand.vmem [shape: f32[32,1], index: 3, kind: input, shape index: {}]   ;;  %s8099_s4 = inlined_call_operand.vmem [shape: bf16[32,32], index: 4, kind: input, shape index: {}]   ;;  %s8100_s5 = inlined_call_operand.vmem [shape: f32[32,1], index: 5, kind: input, shape index: {}]   ;;  %s8101_s6 = inlined_call_operand.hbm [shape: f32[32,1024], index: 6, kind: output, shape index: {0}]   ;;  %s8102_s7 = inlined_call_operand.hbm [shape: f32[32,1024], index: 7, kind: output, shape index: {1}]  }
   0x1   :  { %14 = vsyncpa [#allocation8], 0 }
   0x2   :  { %15 = vsyncpa [#allocation6], 0 }
   0x3   :  { %16 = vsyncpa [#allocation11], 0  ;;  %s21_s26 = sshll.u32 %s8095_s0, 4  ;;  %s5607_s27 = smov [#allocation4]   ;;  %s22_s26 = int_to_ptr.hbm [resolvable:$true] %s21_s26 }
   0x4   :  { %s23_s28 = sshll.u32 %s5607_s27, 4  ;;  %s34_s8 = sshll.u32 %s8096_s1, 4  ;;  %s24_s28 = int_to_ptr.vmem [resolvable:$true] %s23_s28  ;;  %s35_s8 = int_to_ptr.hbm [resolvable:$true] %s34_s8 }
   0x5   :  { %s5608_s9 = smov 512   ;;  %s5609_s10 = smov 32  }
   0x6   :  { %29 = dma.hbm_to_vmem [thread:$0]  %s22_s26, 2048, %s24_s28, [#allocation5], %s5608_s9, %s5608_s9, %s5609_s10  }
   0x7   :  { %s5610_s11 = smov [#allocation7]  }
   0x8   :  { %s36_s12 = sshll.u32 %s5610_s11, 4  ;;  %s37_s12 = int_to_ptr.vmem [resolvable:$true] %s36_s12 }
   0x9   :  { %42 = dma.hbm_to_vmem [thread:$0]  %s35_s8, 2048, %s37_s12, [#allocation8], %s5608_s9, %s5608_s9, %s5609_s10  }
   0xa   :  { %5599 = dma.done.wait [#allocation5], 2048  }
   0xb   :  { %5600 = vsyncadd [#allocation5], 4294965248 }
   0xc   :  { %5601 = dma.done.wait [#allocation8], 2048  }
   0xd   :  { %5602 = vsyncadd [#allocation8], 4294965248  ;;  %v5611_v0 = vmov 0   ;;  %v4344_v1 = vld [vmem:[#allocation4 + $0x40] sm:$0xf]  ;;  %v408_v27 = vld [vmem:[%s8100_s5 + $0x10] sm:$0xff] }
   0xe   :  { %4972 = vset.pattern.permute.xlu0 %v5611_v0  ;;  %4973 = vset.pattern.permute.xlu1 %v5611_v0  ;;  %v4876_v2 = vld [vmem:[#allocation4 + $0x5c] sm:$0xf0]  ;;  %v4872_v3 = vld [vmem:[#allocation4 + $0x44] sm:$0xf]  ;;  %v4352_v6 = vld [vmem:[#allocation4 + $0x48] sm:$0xf] }
   0xf   :  { %4974 = vset.pattern.permute.xlu2 %v5611_v0  ;;  %v4345_v4 = vor.u32 %v4876_v2, %v4344_v1  ;;  %v4346_v5 = vld [vmem:[#allocation4 + $0x60] sm:$0xf0]  ;;  %v4877_v7 = vld [vmem:[#allocation4 + $0x64] sm:$0xf0]  ;;  %v4873_v10 = vld [vmem:[#allocation4 + $0x4c] sm:$0xf]  ;;  %422 = vperm.xlu1 %4973, %v408_v27  }
  0x10   :  { %v4349_v8 = vor.u32 %v4872_v3, %v4346_v5  ;;  %v4353_v9 = vor.u32 %v4877_v7, %v4352_v6  ;;  %v4354_v11 = vld [vmem:[#allocation4 + $0x68] sm:$0xf0]  ;;  %v406_v12 = vld [vmem:[%s8100_s5] sm:$0xff]  ;;  %v4320_v19 = vld [vmem:[#allocation4 + $0x8] sm:$0xf]  ;;  %vm195_vm0 = vcmask 261120  }
  0x11   :  { %208 = vmatpush.bf16.msra.mxu0 %v4345_v4  ;;  %v4357_v13 = vor.u32 %v4873_v10, %v4354_v11  ;;  %412 = vperm.xlu0 %4972, %v406_v12   ;;  %v4312_v14 = vld [vmem:[#allocation4] sm:$0xf]  ;;  %v4864_v16 = vld [vmem:[#allocation4 + $0x4] sm:$0xf]  ;;  %v4869_v20 = vld [vmem:[#allocation4 + $0x24] sm:$0xf0] }
  0x12   :  { %v4868_v15 = vld [vmem:[#allocation4 + $0x1c] sm:$0xf0]  ;;  %227 = vmatpush.bf16.msra.mxu1 %v4349_v8  ;;  %246 = vmatpush.bf16.msra.mxu2 %v4353_v9  ;;  %v4314_v18 = vld [vmem:[#allocation4 + $0x20] sm:$0xf0]  ;;  %v4321_v22 = vor.u32 %v4869_v20, %v4320_v19  ;;  %v4865_v23 = vld [vmem:[#allocation4 + $0xc] sm:$0xf] }
  0x13   :  { %v4313_v17 = vor.u32 %v4868_v15, %v4312_v14  ;;  %265 = vmatpush.bf16.msra.mxu3 %v4357_v13  ;;  %v4317_v21 = vor.u32 %v4864_v16, %v4314_v18  ;;  %v4322_v24 = vld [vmem:[#allocation4 + $0x28] sm:$0xf0]  ;;  %v5669_v26 = vld [vmem:[%s8097_s2] sm:$0xff]  ;;  %v4360_v29 = vld [vmem:[#allocation4 + $0x50] sm:$0xf]  ;;  %s4270_s12 = sshll.u32 %s8101_s6, 4  ;;  %s4271_s12 = int_to_ptr.hbm [resolvable:$true] %s4270_s12 }
  0x14   :  { %v4325_v25 = vor.u32 %v4865_v23, %v4322_v24  ;;  %v407_v28 = vld [vmem:[%s8100_s5 + $0x8] sm:$0xff]  ;;  %v4878_v30 = vld [vmem:[#allocation4 + $0x6c] sm:$0xf0]  ;;  %v4874_v31 = vld [vmem:[#allocation4 + $0x54] sm:$0xf]  ;;  %s5614_s0 = smov 1024  }
  0x15   :  { %209 = vmatpush.bf16.msra.mxu0 %v4313_v17  ;;  %v4361_v32 = vor.u32 %v4878_v30, %v4360_v29  ;;  %v4362_v33 = vld [vmem:[#allocation4 + $0x70] sm:$0xf0]  ;;  %v4368_v34 = vld [vmem:[#allocation4 + $0x58] sm:$0xf]  ;;  %v4875_v39 = vld [vmem:[#allocation4 + $0x5c] sm:$0xf] }
  0x16   :  { %228 = vmatpush.bf16.msra.mxu1 %v4317_v21  ;;  %247 = vmatpush.bf16.msra.mxu2 %v4321_v22  ;;  %v4879_v35 = vld [vmem:[#allocation4 + $0x74] sm:$0xf0]  ;;  %v4365_v37 = vor.u32 %v4874_v31, %v4362_v33  ;;  %v4370_v40 = vld [vmem:[#allocation4 + $0x78] sm:$0xf0]  ;;  %v4328_v41 = vld [vmem:[#allocation4 + $0x10] sm:$0xf] }
  0x17   :  { %266 = vmatpush.bf16.msra.mxu3 %v4325_v25  ;;  %v409_v36 = vld [vmem:[%s8100_s5 + $0x18] sm:$0xff]  ;;  %v4369_v38 = vor.u32 %v4879_v35, %v4368_v34  ;;  %v4373_v42 = vor.u32 %v4875_v39, %v4370_v40  ;;  %v4870_v43 = vld [vmem:[#allocation4 + $0x2c] sm:$0xf0]  ;;  %v4866_v44 = vld [vmem:[#allocation4 + $0x14] sm:$0xf]  ;;  %s5615_s1 = smov 64  }
  0x18   :  { %4374 = vmatmul.msk.bf16.vlgmr.msra.gmra.mxu0 %vm195_vm0, %v5669_v26  ;;  %v4330_v45 = vld [vmem:[#allocation4 + $0x30] sm:$0xf0]  ;;  %v4336_v46 = vld [vmem:[#allocation4 + $0x18] sm:$0xf]  ;;  %v4867_v48 = vld [vmem:[#allocation4 + $0x1c] sm:$0xf]  ;;  %v4329_v49 = vor.u32 %v4870_v43, %v4328_v41  ;;  %427 = vperm.xlu1 %4973, %v409_v36  }
  0x19   :  { %4376 = vmatmul.msk.bf16.vlgmr.msra.gmra.mxu1 %vm195_vm0, %v5669_v26  ;;  %4378 = vmatmul.msk.bf16.vlgmr.msra.gmra.mxu2 %vm195_vm0, %v5669_v26  ;;  %v4871_v47 = vld [vmem:[#allocation4 + $0x34] sm:$0xf0]  ;;  %v4333_v50 = vor.u32 %v4866_v44, %v4330_v45  ;;  %v4338_v51 = vld [vmem:[#allocation4 + $0x38] sm:$0xf0]  ;;  %v81_v54 = vld [vmem:[%s8098_s3] sm:$0xff]  ;;  %s5616_s6 = smov [#allocation10]  }
  0x1a   :  { %4380 = vmatmul.msk.bf16.vlgmr.msra.gmra.mxu3 %vm195_vm0, %v5669_v26  ;;  %417 = vperm.xlu0 %4972, %v407_v28   ;;  %v4337_v52 = vor.u32 %v4871_v47, %v4336_v46  ;;  %v4341_v53 = vor.u32 %v4867_v48, %v4338_v51  ;;  %v82_v55 = vld [vmem:[%s8098_s3 + $0x8] sm:$0xff]  ;;  %v83_v57 = vld [vmem:[%s8098_s3 + $0x10] sm:$0xff]  ;;  %v4432_v58 = vld [vmem:[#allocation7 + $0x40] sm:$0xf]  ;;  %s4281_s13 = sshll.u32 %s5616_s6, 4  ;;  %s4283_s16 = sshll.u32 %s8102_s7, 4  ;;  %s4282_s13 = int_to_ptr.vmem [resolvable:$true] %s4281_s13  ;;  %s4284_s16 = int_to_ptr.hbm [resolvable:$true] %s4283_s16 }
  0x1b   :  { %284 = vmatpush.bf16.msrb.mxu0 %v4361_v32  ;;  %303 = vmatpush.bf16.msrb.mxu1 %v4365_v37  ;;  %v4863_v56 = vld [vmem:[%s8097_s2 + $0x8] sm:$0xff]  ;;  %v4894_v59 = vld [vmem:[#allocation7 + $0x5c] sm:$0xf0]  ;;  %v4890_v61 = vld [vmem:[#allocation7 + $0x44] sm:$0xf] }
  0x1c   :  { %322 = vmatpush.bf16.msrb.mxu2 %v4369_v38  ;;  %341 = vmatpush.bf16.msrb.mxu3 %v4373_v42  ;;  %v4433_v60 = vor.u32 %v4894_v59, %v4432_v58  ;;  %v4434_v62 = vld [vmem:[#allocation7 + $0x60] sm:$0xf0]  ;;  %v4440_v63 = vld [vmem:[#allocation7 + $0x48] sm:$0xf]  ;;  %v4891_v2 = vld [vmem:[#allocation7 + $0x4c] sm:$0xf] }
  0x1d   :  { %97 = vperm.xlu2 %4974, %v83_v57   ;;  %v4437_v0 = vor.u32 %v4890_v61, %v4434_v62  ;;  %v4895_v1 = vld [vmem:[#allocation7 + $0x64] sm:$0xf0]  ;;  %v4442_v3 = vld [vmem:[#allocation7 + $0x68] sm:$0xf0]  ;;  %v4400_v6 = vld [vmem:[#allocation7] sm:$0xf] }
  0x1e   :  { %v4441_v4 = vor.u32 %v4895_v1, %v4440_v63  ;;  %v4445_v5 = vor.u32 %v4891_v2, %v4442_v3  ;;  %v4886_v7 = vld [vmem:[#allocation7 + $0x1c] sm:$0xf0]  ;;  %v4882_v9 = vld [vmem:[#allocation7 + $0x4] sm:$0xf]  ;;  %v4408_v11 = vld [vmem:[#allocation7 + $0x8] sm:$0xf] }
  0x1f   :  { %285 = vmatpush.bf16.msrb.mxu0 %v4329_v49  ;;  %304 = vmatpush.bf16.msrb.mxu1 %v4333_v50  ;;  %v4401_v8 = vor.u32 %v4886_v7, %v4400_v6  ;;  %v4402_v10 = vld [vmem:[#allocation7 + $0x20] sm:$0xf0]  ;;  %v4887_v13 = vld [vmem:[#allocation7 + $0x24] sm:$0xf0]  ;;  %v4883_v14 = vld [vmem:[#allocation7 + $0xc] sm:$0xf] }
  0x20   :  { %323 = vmatpush.bf16.msrb.mxu2 %v4337_v52  ;;  %342 = vmatpush.bf16.msrb.mxu3 %v4341_v53  ;;  %v4405_v12 = vor.u32 %v4882_v9, %v4402_v10  ;;  %v4410_v15 = vld [vmem:[#allocation7 + $0x28] sm:$0xf0]  ;;  %v84_v16 = vld [vmem:[%s8098_s3 + $0x18] sm:$0xff]  ;;  %v4409_v17 = vor.u32 %v4887_v13, %v4408_v11  ;;  %v4448_v19 = vld [vmem:[#allocation7 + $0x50] sm:$0xf] }
  0x21   :  { %92 = vperm.xlu1 %4973, %v82_v55   ;;  %v4413_v18 = vor.u32 %v4883_v14, %v4410_v15  ;;  %v4896_v20 = vld [vmem:[#allocation7 + $0x6c] sm:$0xf0]  ;;  %v4892_v21 = vld [vmem:[#allocation7 + $0x54] sm:$0xf]  ;;  %v4456_v24 = vld [vmem:[#allocation7 + $0x58] sm:$0xf] }
  0x22   :  { %87 = vperm.xlu0 %4972, %v81_v54   ;;  %v4449_v22 = vor.u32 %v4896_v20, %v4448_v19  ;;  %v4450_v23 = vld [vmem:[#allocation7 + $0x70] sm:$0xf0]  ;;  %v4897_v25 = vld [vmem:[#allocation7 + $0x74] sm:$0xf0]  ;;  %v4893_v29 = vld [vmem:[#allocation7 + $0x5c] sm:$0xf] }
  0x23   :  { %532 = vmatpush.bf16.msra.mxu0 %v4433_v60  ;;  %551 = vmatpush.bf16.msra.mxu1 %v4437_v0  ;;  %v4453_v27 = vor.u32 %v4892_v21, %v4450_v23  ;;  %v4457_v28 = vor.u32 %v4897_v25, %v4456_v24  ;;  %v4458_v30 = vld [vmem:[#allocation7 + $0x78] sm:$0xf0]  ;;  %v4888_v32 = vld [vmem:[#allocation7 + $0x2c] sm:$0xf0]  ;;  %v4884_v33 = vld [vmem:[#allocation7 + $0x14] sm:$0xf] }
  0x24   :  { %570 = vmatpush.bf16.msra.mxu2 %v4441_v4  ;;  %589 = vmatpush.bf16.msra.mxu3 %v4445_v5  ;;  %v4461_v31 = vor.u32 %v4893_v29, %v4458_v30  ;;  %v4418_v34 = vld [vmem:[#allocation7 + $0x30] sm:$0xf0]  ;;  %v4424_v37 = vld [vmem:[#allocation7 + $0x18] sm:$0xf]  ;;  %v4885_v39 = vld [vmem:[#allocation7 + $0x1c] sm:$0xf] }
  0x25   :  { %102 = vperm.xlu2 %4974, %v84_v16   ;;  %v4421_v36 = vor.u32 %v4884_v33, %v4418_v34  ;;  %v4889_v38 = vld [vmem:[#allocation7 + $0x34] sm:$0xf0]  ;;  %v4426_v41 = vld [vmem:[#allocation7 + $0x38] sm:$0xf0]  ;;  %v4880_v43 = vld [vmem:[%s8099_s4] sm:$0xff] }
  0x26   :  { %v4425_v40 = vor.u32 %v4889_v38, %v4424_v37  ;;  %v4429_v42 = vor.u32 %v4885_v39, %v4426_v41  ;;  %v4881_v44 = vld [vmem:[%s8099_s4 + $0x8] sm:$0xff]  ;;  %s5613_s4 = smov [#allocation9]  }
  0x27   :  { %533 = vmatpush.bf16.msra.mxu0 %v4401_v8  ;;  %552 = vmatpush.bf16.msra.mxu1 %v4405_v12  ;;  %s4268_s9 = sshll.u32 %s5613_s4, 4  ;;  %s4269_s9 = int_to_ptr.vmem [resolvable:$true] %s4268_s9 }
  0x28   :  { %4375 = vmatmul.msk.bf16.gmra.mxu0 %vm195_vm0, %v4863_v56  ;;  %571 = vmatpush.bf16.msra.mxu2 %v4409_v17 }
  0x29   :  { %4377 = vmatmul.msk.bf16.gmra.mxu1 %vm195_vm0, %v4863_v56  ;;  %4379 = vmatmul.msk.bf16.gmra.mxu2 %vm195_vm0, %v4863_v56 }
  0x2a   :  { %4381 = vmatmul.msk.bf16.gmra.mxu3 %vm195_vm0, %v4863_v56 }
  0x2b   :  { %590 = vmatpush.bf16.msra.mxu3 %v4413_v18 }
  0x38   :  { %4382 = vmatmul.msk.bf16.vlgmr.msrb.gmra.mxu0 %vm195_vm0, %v5669_v26 }
  0x39   :  { %4384 = vmatmul.msk.bf16.vlgmr.msrb.gmra.mxu1 %vm195_vm0, %v5669_v26  ;;  %4386 = vmatmul.msk.bf16.vlgmr.msrb.gmra.mxu2 %vm195_vm0, %v5669_v26 }
  0x3a   :  { %4388 = vmatmul.msk.bf16.vlgmr.msrb.gmra.mxu3 %vm195_vm0, %v5669_v26  ;;  %v4416_v26 = vld [vmem:[#allocation7 + $0x10] sm:$0xf]  ;;  %608 = vmatpush.bf16.msrb.mxu0 %v4449_v22 }
  0x3b   :  { %627 = vmatpush.bf16.msrb.mxu1 %v4453_v27  ;;  %646 = vmatpush.bf16.msrb.mxu2 %v4457_v28  ;;  %v4417_v35 = vor.u32 %v4888_v32, %v4416_v26 }
  0x3c   :  { %665 = vmatpush.bf16.msrb.mxu3 %v4461_v31 }
  0x3e   :  { %609 = vmatpush.bf16.msrb.mxu0 %v4417_v35 }
  0x3f   :  { %628 = vmatpush.bf16.msrb.mxu1 %v4421_v36  ;;  %647 = vmatpush.bf16.msrb.mxu2 %v4425_v40 }
  0x40   :  { %666 = vmatpush.bf16.msrb.mxu3 %v4429_v42 }
  0x48   :  { %4383 = vmatmul.msk.bf16.gmra.mxu0 %vm195_vm0, %v4863_v56 }
  0x49   :  { %4385 = vmatmul.msk.bf16.gmra.mxu1 %vm195_vm0, %v4863_v56  ;;  %4387 = vmatmul.msk.bf16.gmra.mxu2 %vm195_vm0, %v4863_v56 }
  0x4a   :  { %4389 = vmatmul.msk.bf16.gmra.mxu3 %vm195_vm0, %v4863_v56 }
  0x58   :  { %4462 = vmatmul.msk.bf16.vlgmr.msra.gmra.mxu0 %vm195_vm0, %v4880_v43 }
  0x59   :  { %4464 = vmatmul.msk.bf16.vlgmr.msra.gmra.mxu1 %vm195_vm0, %v4880_v43  ;;  %4466 = vmatmul.msk.bf16.vlgmr.msra.gmra.mxu2 %vm195_vm0, %v4880_v43 }
  0x5a   :  { %4468 = vmatmul.msk.bf16.vlgmr.msra.gmra.mxu3 %vm195_vm0, %v4880_v43 }
  0x68   :  { %4463 = vmatmul.msk.bf16.gmra.mxu0 %vm195_vm0, %v4881_v44 }
  0x69   :  { %4465 = vmatmul.msk.bf16.gmra.mxu1 %vm195_vm0, %v4881_v44  ;;  %4467 = vmatmul.msk.bf16.gmra.mxu2 %vm195_vm0, %v4881_v44 }
  0x6a   :  { %4469 = vmatmul.msk.bf16.gmra.mxu3 %vm195_vm0, %v4881_v44 }
  0x77   :  { %v5759_v2 = vpop.permute.xlu2 %97 }
  0x78   :  { %4470 = vmatmul.msk.bf16.vlgmr.msrb.gmra.mxu0 %vm195_vm0, %v4880_v43 }
  0x79   :  { %4472 = vmatmul.msk.bf16.vlgmr.msrb.gmra.mxu1 %vm195_vm0, %v4880_v43  ;;  %4474 = vmatmul.msk.bf16.vlgmr.msrb.gmra.mxu2 %vm195_vm0, %v4880_v43 }
  0x7a   :  { %4476 = vmatmul.msk.bf16.vlgmr.msrb.gmra.mxu3 %vm195_vm0, %v4880_v43 }
  0x7f   :  { %v5765_v13 = vpop.permute.xlu2 %102 }
  0x81   :  { %v5739_v46 = vpop.permute.xlu1 %422 }
  0x83   :  { %v5737_v45 = vpop.permute.xlu0 %412 }
  0x88   :  { %4471 = vmatmul.msk.bf16.gmra.mxu0 %vm195_vm0, %v4881_v44 }
  0x89   :  { %4473 = vmatmul.msk.bf16.gmra.mxu1 %vm195_vm0, %v4881_v44  ;;  %4475 = vmatmul.msk.bf16.gmra.mxu2 %vm195_vm0, %v4881_v44 }
  0x8a   :  { %4477 = vmatmul.msk.bf16.gmra.mxu3 %vm195_vm0, %v4881_v44  ;;  %v5747_v48 = vpop.permute.xlu1 %427 }
  0x8c   :  { %v5745_v47 = vpop.permute.xlu0 %417 }
  0x93   :  { %v5753_v55 = vpop.permute.xlu1 %92 }
  0x94   :  { %v5749_v49 = vpop.permute.xlu0 %87 }
  0x95   :  { %v211_v50 = vpop.f32.mrf.mxu0 }
  0x96   :  { %v212_v51 = vadd.f32 %v211_v50, %v5749_v49  ;;  %v230_v52 = vpop.f32.mrf.mxu1 }
  0x97   :  { %v231_v53 = vadd.f32 %v230_v52, %v5749_v49 }
  0x99   :  { %v354_v54 = vpack.c.bf16 %v231_v53, %v212_v51 }
  0x9b   :  { %370 = vst [vmem:[#allocation2] sm:$0xff] %v354_v54 }
  0x9c   :  { %v249_v56 = vpop.f32.mrf.mxu2 }
  0x9d   :  { %v250_v57 = vadd.f32 %v249_v56, %v5749_v49  ;;  %v268_v58 = vpop.f32.mrf.mxu3  ;;  %v213_v59 = vpop.f32.mrf.mxu0 }
  0x9e   :  { %v269_v60 = vadd.f32 %v268_v58, %v5749_v49  ;;  %v214_v61 = vadd.f32 %v213_v59, %v5753_v55  ;;  %v232_v62 = vpop.f32.mrf.mxu1 }
  0x9f   :  { %v233_v63 = vadd.f32 %v232_v62, %v5753_v55 }
  0xa0   :  { %v355_v0 = vpack.c.bf16 %v269_v60, %v250_v57 }
  0xa1   :  { %v358_v1 = vpack.c.bf16 %v233_v63, %v214_v61 }
  0xa2   :  { %371 = vst [vmem:[#allocation2 + $0x8] sm:$0xff] %v355_v0  ;;  %v4496_v54 = vld [vmem:[#allocation2] sm:$0xf]  ;;  %v4898_v56 = vld [vmem:[#allocation2 + $0x4] sm:$0xf] }
  0xa3   :  { %374 = vst [vmem:[#allocation2 + $0x20] sm:$0xff] %v358_v1 }
  0xa4   :  { %v251_v3 = vpop.f32.mrf.mxu2 }
  0xa5   :  { %v252_v4 = vadd.f32 %v251_v3, %v5753_v55  ;;  %v270_v5 = vpop.f32.mrf.mxu3  ;;  %v216_v6 = vpop.f32.mrf.mxu0 }
  0xa6   :  { %v271_v7 = vadd.f32 %v270_v5, %v5753_v55  ;;  %v217_v8 = vadd.f32 %v216_v6, %v5759_v2  ;;  %v235_v9 = vpop.f32.mrf.mxu1 }
  0xa7   :  { %v236_v10 = vadd.f32 %v235_v9, %v5759_v2 }
  0xa8   :  { %v359_v11 = vpack.c.bf16 %v271_v7, %v252_v4 }
  0xa9   :  { %v362_v12 = vpack.c.bf16 %v236_v10, %v217_v8 }
  0xaa   :  { %375 = vst [vmem:[#allocation2 + $0x28] sm:$0xff] %v359_v11  ;;  %v4899_v41 = vld [vmem:[#allocation2 + $0x1c] sm:$0xf0]  ;;  %v4498_v42 = vld [vmem:[#allocation2 + $0x20] sm:$0xf0] }
  0xab   :  { %378 = vst [vmem:[#allocation2 + $0x40] sm:$0xff] %v362_v12  ;;  %v4497_v58 = vor.u32 %v4899_v41, %v4496_v54  ;;  %v4501_v59 = vor.u32 %v4898_v56, %v4498_v42 }
  0xac   :  { %v254_v14 = vpop.f32.mrf.mxu2 }
  0xad   :  { %v255_v15 = vadd.f32 %v254_v14, %v5759_v2  ;;  %v273_v16 = vpop.f32.mrf.mxu3  ;;  %v218_v17 = vpop.f32.mrf.mxu0 }
  0xae   :  { %v274_v18 = vadd.f32 %v273_v16, %v5759_v2  ;;  %v219_v19 = vadd.f32 %v218_v17, %v5765_v13  ;;  %v237_v20 = vpop.f32.mrf.mxu1 }
  0xaf   :  { %v238_v21 = vadd.f32 %v237_v20, %v5765_v13 }
  0xb0   :  { %v363_v22 = vpack.c.bf16 %v274_v18, %v255_v15 }
  0xb1   :  { %v366_v23 = vpack.c.bf16 %v238_v21, %v219_v19 }
  0xb2   :  { %379 = vst [vmem:[#allocation2 + $0x48] sm:$0xff] %v363_v22  ;;  %v4504_v34 = vld [vmem:[#allocation2 + $0x40] sm:$0xf]  ;;  %v4900_v35 = vld [vmem:[#allocation2 + $0x44] sm:$0xf] }
  0xb3   :  { %382 = vst [vmem:[#allocation2 + $0x60] sm:$0xff] %v366_v23 }
  0xb4   :  { %v256_v24 = vpop.f32.mrf.mxu2 }
  0xb5   :  { %v257_v25 = vadd.f32 %v256_v24, %v5765_v13  ;;  %v275_v27 = vpop.f32.mrf.mxu3  ;;  %v287_v28 = vpop.f32.mrf.mxu0 }
  0xb6   :  { %v276_v29 = vadd.f32 %v275_v27, %v5765_v13  ;;  %v288_v30 = vadd.f32 %v287_v28, %v5749_v49  ;;  %v306_v26 = vpop.f32.mrf.mxu1 }
  0xb7   :  { %v307_v31 = vadd.f32 %v306_v26, %v5749_v49 }
  0xb8   :  { %v367_v32 = vpack.c.bf16 %v276_v29, %v257_v25 }
  0xb9   :  { %v356_v33 = vpack.c.bf16 %v307_v31, %v288_v30 }
  0xba   :  { %383 = vst [vmem:[#allocation2 + $0x68] sm:$0xff] %v367_v32  ;;  %v4901_v36 = vld [vmem:[#allocation2 + $0x5c] sm:$0xf0]  ;;  %v4506_v37 = vld [vmem:[#allocation2 + $0x60] sm:$0xf0] }
  0xbb   :  { %372 = vst [vmem:[#allocation2 + $0x10] sm:$0xff] %v356_v33  ;;  %v4505_v38 = vor.u32 %v4901_v36, %v4504_v34  ;;  %v4509_v39 = vor.u32 %v4900_v35, %v4506_v37 }
  0xbc   :  { %v325_v40 = vpop.f32.mrf.mxu2 }
  0xbd   :  { %v326_v43 = vadd.f32 %v325_v40, %v5749_v49  ;;  %v344_v44 = vpop.f32.mrf.mxu3  ;;  %836 = vmatpush.bf16.msra.mxu0 %v4505_v38  ;;  %925 = vmatpush.bf16.msra.mxu1 %v4509_v39  ;;  %v289_v50 = vpop.f32.mrf.mxu0 }
  0xbe   :  { %v345_v51 = vadd.f32 %v344_v44, %v5749_v49  ;;  %v290_v52 = vadd.f32 %v289_v50, %v5753_v55  ;;  %v308_v53 = vpop.f32.mrf.mxu1 }
  0xbf   :  { %v309_v57 = vadd.f32 %v308_v53, %v5753_v55 }
  0xc0   :  { %v357_v60 = vpack.c.bf16 %v345_v51, %v326_v43 }
  0xc1   :  { %v360_v61 = vpack.c.bf16 %v309_v57, %v290_v52  ;;  %837 = vmatpush.bf16.msra.mxu0 %v4497_v58  ;;  %926 = vmatpush.bf16.msra.mxu1 %v4501_v59 }
  0xc2   :  { %373 = vst [vmem:[#allocation2 + $0x18] sm:$0xff] %v357_v60 }
  0xc3   :  { %376 = vst [vmem:[#allocation2 + $0x30] sm:$0xff] %v360_v61 }
  0xc4   :  { %v327_v62 = vpop.f32.mrf.mxu2 }
  0xc5   :  { %v328_v63 = vadd.f32 %v327_v62, %v5753_v55  ;;  %v346_v0 = vpop.f32.mrf.mxu3  ;;  %v292_v49 = vpop.f32.mrf.mxu0 }
  0xc6   :  { %v347_v1 = vadd.f32 %v346_v0, %v5753_v55  ;;  %v293_v3 = vadd.f32 %v292_v49, %v5759_v2  ;;  %v311_v4 = vpop.f32.mrf.mxu1 }
  0xc7   :  { %v312_v5 = vadd.f32 %v311_v4, %v5759_v2 }
  0xc8   :  { %v361_v6 = vpack.c.bf16 %v347_v1, %v328_v63 }
  0xc9   :  { %v364_v7 = vpack.c.bf16 %v312_v5, %v293_v3 }
  0xca   :  { %377 = vst [vmem:[#allocation2 + $0x38] sm:$0xff] %v361_v6 }
  0xcb   :  { %380 = vst [vmem:[#allocation2 + $0x50] sm:$0xff] %v364_v7 }
  0xcc   :  { %v330_v8 = vpop.f32.mrf.mxu2 }
  0xcd   :  { %v331_v9 = vadd.f32 %v330_v8, %v5759_v2  ;;  %v349_v10 = vpop.f32.mrf.mxu3  ;;  %v294_v11 = vpop.f32.mrf.mxu0 }
  0xce   :  { %v350_v12 = vadd.f32 %v349_v10, %v5759_v2  ;;  %v295_v14 = vadd.f32 %v294_v11, %v5765_v13  ;;  %v313_v15 = vpop.f32.mrf.mxu1 }
  0xcf   :  { %v314_v55 = vadd.f32 %v313_v15, %v5765_v13 }
  0xd0   :  { %v365_v16 = vpack.c.bf16 %v350_v12, %v331_v9 }
  0xd1   :  { %v368_v17 = vpack.c.bf16 %v314_v55, %v295_v14 }
  0xd2   :  { %381 = vst [vmem:[#allocation2 + $0x58] sm:$0xff] %v365_v16 }
  0xd3   :  { %384 = vst [vmem:[#allocation2 + $0x70] sm:$0xff] %v368_v17 }
  0xd4   :  { %v332_v18 = vpop.f32.mrf.mxu2 }
  0xd5   :  { %v333_v19 = vadd.f32 %v332_v18, %v5765_v13  ;;  %v351_v20 = vpop.f32.mrf.mxu3  ;;  %v535_v21 = vpop.f32.mrf.mxu0 }
  0xd6   :  { %v352_v22 = vadd.f32 %v351_v20, %v5765_v13  ;;  %v536_v23 = vadd.f32 %v535_v21, %v5737_v45  ;;  %v554_v24 = vpop.f32.mrf.mxu1 }
  0xd7   :  { %v555_v2 = vadd.f32 %v554_v24, %v5737_v45 }
  0xd8   :  { %v369_v25 = vpack.c.bf16 %v352_v22, %v333_v19 }
  0xd9   :  { %v678_v27 = vpack.c.bf16 %v555_v2, %v536_v23 }
  0xda   :  { %385 = vst [vmem:[#allocation2 + $0x78] sm:$0xff] %v369_v25 }
  0xdb   :  { %694 = vst [vmem:[#allocation3] sm:$0xff] %v678_v27 }
  0xdc   :  { %v573_v28 = vpop.f32.mrf.mxu2 }
  0xdd   :  { %v574_v29 = vadd.f32 %v573_v28, %v5737_v45  ;;  %v592_v30 = vpop.f32.mrf.mxu3  ;;  %v537_v26 = vpop.f32.mrf.mxu0 }
  0xde   :  { %v593_v31 = vadd.f32 %v592_v30, %v5737_v45  ;;  %v538_v32 = vadd.f32 %v537_v26, %v5745_v47  ;;  %v556_v33 = vpop.f32.mrf.mxu1 }
  0xdf   :  { %v557_v13 = vadd.f32 %v556_v33, %v5745_v47 }
  0xe0   :  { %v679_v34 = vpack.c.bf16 %v593_v31, %v574_v29 }
  0xe1   :  { %v682_v35 = vpack.c.bf16 %v557_v13, %v538_v32 }
  0xe2   :  { %695 = vst [vmem:[#allocation3 + $0x8] sm:$0xff] %v679_v34  ;;  %v4902_v51 = vld [vmem:[#allocation3 + $0x4] sm:$0xf]  ;;  %v4480_v52 = vld [vmem:[#allocation3] sm:$0xf] }
  0xe3   :  { %698 = vst [vmem:[#allocation3 + $0x20] sm:$0xff] %v682_v35 }
  0xe4   :  { %v575_v36 = vpop.f32.mrf.mxu2 }
  0xe5   :  { %v576_v37 = vadd.f32 %v575_v36, %v5745_v47  ;;  %v594_v38 = vpop.f32.mrf.mxu3  ;;  %v540_v39 = vpop.f32.mrf.mxu0 }
  0xe6   :  { %v595_v40 = vadd.f32 %v594_v38, %v5745_v47  ;;  %v541_v41 = vadd.f32 %v540_v39, %v5739_v46  ;;  %v559_v42 = vpop.f32.mrf.mxu1 }
  0xe7   :  { %v560_v43 = vadd.f32 %v559_v42, %v5739_v46 }
  0xe8   :  { %v683_v44 = vpack.c.bf16 %v595_v40, %v576_v37 }
  0xe9   :  { %v686_v50 = vpack.c.bf16 %v560_v43, %v541_v41  ;;  %v4918_v3 = vld [vmem:[#allocation3 + $0xc] sm:$0xf]  ;;  %v4576_v5 = vld [vmem:[#allocation3 + $0x8] sm:$0xf] }
  0xea   :  { %699 = vst [vmem:[#allocation3 + $0x28] sm:$0xff] %v683_v44  ;;  %v4482_v53 = vld [vmem:[#allocation3 + $0x20] sm:$0xf0]  ;;  %v4903_v54 = vld [vmem:[#allocation3 + $0x1c] sm:$0xf0] }
  0xeb   :  { %702 = vst [vmem:[#allocation3 + $0x40] sm:$0xff] %v686_v50  ;;  %v4481_v56 = vor.u32 %v4903_v54, %v4480_v52  ;;  %v4485_v57 = vor.u32 %v4902_v51, %v4482_v53 }
  0xec   :  { %v578_v58 = vpop.f32.mrf.mxu2 }
  0xed   :  { %v579_v59 = vadd.f32 %v578_v58, %v5739_v46  ;;  %v597_v60 = vpop.f32.mrf.mxu3  ;;  %738 = vxpose.binary.xlu2.c.b16.start [1/4] (short) %v4485_v57, %v4481_v56, 128  ;;  %v542_v61 = vpop.f32.mrf.mxu0 }
  0xee   :  { %v598_v62 = vadd.f32 %v597_v60, %v5739_v46  ;;  %v543_v63 = vadd.f32 %v542_v61, %v5747_v48  ;;  %v561_v0 = vpop.f32.mrf.mxu1 }
  0xef   :  { %v562_v49 = vadd.f32 %v561_v0, %v5747_v48 }
  0xf0   :  { %v687_v1 = vpack.c.bf16 %v598_v62, %v579_v59 }
  0xf1   :  { %v690_v4 = vpack.c.bf16 %v562_v49, %v543_v63  ;;  %v4578_v6 = vld [vmem:[#allocation3 + $0x28] sm:$0xf0]  ;;  %v4919_v7 = vld [vmem:[#allocation3 + $0x24] sm:$0xf0] }
  0xf2   :  { %703 = vst [vmem:[#allocation3 + $0x48] sm:$0xff] %v687_v1  ;;  %v4577_v8 = vor.u32 %v4919_v7, %v4576_v5  ;;  %v4581_v9 = vor.u32 %v4918_v3, %v4578_v6  ;;  %v4904_v20 = vld [vmem:[#allocation3 + $0x44] sm:$0xf]  ;;  %v4488_v21 = vld [vmem:[#allocation3 + $0x40] sm:$0xf] }
  0xf3   :  { %706 = vst [vmem:[#allocation3 + $0x60] sm:$0xff] %v690_v4 }
  0xf4   :  { %1624 = vxpose.binary.xlu0.c.b16.start [1/4] (short) %v4581_v9, %v4577_v8, 128  ;;  %v580_v10 = vpop.f32.mrf.mxu2 }
  0xf5   :  { %v581_v11 = vadd.f32 %v580_v10, %v5747_v48  ;;  %v599_v12 = vpop.f32.mrf.mxu3  ;;  %v611_v14 = vpop.f32.mrf.mxu0 }
  0xf6   :  { %v600_v15 = vadd.f32 %v599_v12, %v5747_v48  ;;  %v612_v55 = vadd.f32 %v611_v14, %v5737_v45  ;;  %v630_v16 = vpop.f32.mrf.mxu1 }
  0xf7   :  { %v631_v17 = vadd.f32 %v630_v16, %v5737_v45 }
  0xf8   :  { %v691_v18 = vpack.c.bf16 %v600_v15, %v581_v11 }
  0xf9   :  { %v680_v19 = vpack.c.bf16 %v631_v17, %v612_v55  ;;  %v4920_v13 = vld [vmem:[#allocation3 + $0x4c] sm:$0xf]  ;;  %v4584_v35 = vld [vmem:[#allocation3 + $0x48] sm:$0xf] }
  0xfa   :  { %707 = vst [vmem:[#allocation3 + $0x68] sm:$0xff] %v691_v18  ;;  %v4490_v22 = vld [vmem:[#allocation3 + $0x60] sm:$0xf0]  ;;  %v4905_v23 = vld [vmem:[#allocation3 + $0x5c] sm:$0xf0] }
  0xfb   :  { %696 = vst [vmem:[#allocation3 + $0x10] sm:$0xff] %v680_v19  ;;  %v4489_v24 = vor.u32 %v4905_v23, %v4488_v21  ;;  %v4493_v2 = vor.u32 %v4904_v20, %v4490_v22 }
  0xfc   :  { %v649_v25 = vpop.f32.mrf.mxu2 }
  0xfd   :  { %v650_v27 = vadd.f32 %v649_v25, %v5737_v45  ;;  %v668_v28 = vpop.f32.mrf.mxu3  ;;  %739 = vxpose.binary.xlu2.c.b16.end [2/4] (short) %v4493_v2, %v4489_v24, 128  ;;  %v613_v29 = vpop.f32.mrf.mxu0 }
  0xfe   :  { %v669_v30 = vadd.f32 %v668_v28, %v5737_v45  ;;  %v614_v26 = vadd.f32 %v613_v29, %v5745_v47  ;;  %v632_v31 = vpop.f32.mrf.mxu1 }
  0xff   :  { %v633_v32 = vadd.f32 %v632_v31, %v5745_v47 }
 0x100   :  { %v681_v33 = vpack.c.bf16 %v669_v30, %v650_v27 }
 0x101   :  { %v684_v34 = vpack.c.bf16 %v633_v32, %v614_v26  ;;  %v4586_v36 = vld [vmem:[#allocation3 + $0x68] sm:$0xf0]  ;;  %v4921_v37 = vld [vmem:[#allocation3 + $0x64] sm:$0xf0] }
 0x102   :  { %697 = vst [vmem:[#allocation3 + $0x18] sm:$0xff] %v681_v33  ;;  %v4585_v38 = vor.u32 %v4921_v37, %v4584_v35  ;;  %v4589_v39 = vor.u32 %v4920_v13, %v4586_v36  ;;  %v4934_v54 = vld [vmem:[#allocation3 + $0x14] sm:$0xf]  ;;  %v4672_v56 = vld [vmem:[#allocation3 + $0x10] sm:$0xf] }
 0x103   :  { %700 = vst [vmem:[#allocation3 + $0x30] sm:$0xff] %v684_v34 }
 0x104   :  { %1625 = vxpose.binary.xlu0.c.b16.end [2/4] (short) %v4589_v39, %v4585_v38, 128  ;;  %v651_v40 = vpop.f32.mrf.mxu2 }
 0x105   :  { %v652_v41 = vadd.f32 %v651_v40, %v5745_v47  ;;  %v670_v45 = vpop.f32.mrf.mxu3  ;;  %v616_v42 = vpop.f32.mrf.mxu0 }
 0x106   :  { %v671_v43 = vadd.f32 %v670_v45, %v5745_v47  ;;  %v617_v44 = vadd.f32 %v616_v42, %v5739_v46  ;;  %v635_v50 = vpop.f32.mrf.mxu1 }
 0x107   :  { %v636_v51 = vadd.f32 %v635_v50, %v5739_v46 }
 0x108   :  { %v685_v52 = vpack.c.bf16 %v671_v43, %v652_v41 }
 0x109   :  { %v688_v53 = vpack.c.bf16 %v636_v51, %v617_v44  ;;  %v4950_v18 = vld [vmem:[#allocation3 + $0x1c] sm:$0xf]  ;;  %v4768_v19 = vld [vmem:[#allocation3 + $0x18] sm:$0xf] }
 0x10a   :  { %701 = vst [vmem:[#allocation3 + $0x38] sm:$0xff] %v685_v52  ;;  %v4674_v57 = vld [vmem:[#allocation3 + $0x30] sm:$0xf0]  ;;  %v4935_v58 = vld [vmem:[#allocation3 + $0x2c] sm:$0xf0] }
 0x10b   :  { %704 = vst [vmem:[#allocation3 + $0x50] sm:$0xff] %v688_v53  ;;  %v4673_v59 = vor.u32 %v4935_v58, %v4672_v56  ;;  %v4677_v60 = vor.u32 %v4934_v54, %v4674_v57 }
 0x10c   :  { %v654_v61 = vpop.f32.mrf.mxu2 }
 0x10d   :  { %v655_v62 = vadd.f32 %v654_v61, %v5739_v46  ;;  %v673_v63 = vpop.f32.mrf.mxu3  ;;  %2514 = vxpose.binary.xlu1.c.b16.start [1/4] (short) %v4677_v60, %v4673_v59, 128  ;;  %v618_v47 = vpop.f32.mrf.mxu0 }
 0x10e   :  { %v674_v0 = vadd.f32 %v673_v63, %v5739_v46  ;;  %v619_v49 = vadd.f32 %v618_v47, %v5747_v48  ;;  %v637_v1 = vpop.f32.mrf.mxu1 }
 0x10f   :  { %v638_v3 = vadd.f32 %v637_v1, %v5747_v48 }
 0x110   :  { %v689_v4 = vpack.c.bf16 %v674_v0, %v655_v62 }
 0x111   :  { %v692_v5 = vpack.c.bf16 %v638_v3, %v619_v49  ;;  %v4770_v16 = vld [vmem:[#allocation3 + $0x38] sm:$0xf0]  ;;  %v4951_v17 = vld [vmem:[#allocation3 + $0x34] sm:$0xf0] }
 0x112   :  { %705 = vst [vmem:[#allocation3 + $0x58] sm:$0xff] %v689_v4  ;;  %v4936_v11 = vld [vmem:[#allocation3 + $0x54] sm:$0xf]  ;;  %v4680_v12 = vld [vmem:[#allocation3 + $0x50] sm:$0xf]  ;;  %v4769_v20 = vor.u32 %v4951_v17, %v4768_v19  ;;  %v4773_v21 = vor.u32 %v4950_v18, %v4770_v16 }
 0x113   :  { %708 = vst [vmem:[#allocation3 + $0x70] sm:$0xff] %v692_v5 }
 0x114   :  { %v656_v6 = vpop.f32.mrf.mxu2 }
 0x115   :  { %v657_v7 = vadd.f32 %v656_v6, %v5747_v48  ;;  %v675_v8 = vpop.f32.mrf.mxu3 }
 0x116   :  { %v676_v9 = vadd.f32 %v675_v8, %v5747_v48 }
 0x118   :  { %v693_v10 = vpack.c.bf16 %v676_v9, %v657_v7 }
 0x119   :  { %v4952_v24 = vld [vmem:[#allocation3 + $0x5c] sm:$0xf]  ;;  %v4776_v48 = vld [vmem:[#allocation3 + $0x58] sm:$0xf] }
 0x11a   :  { %709 = vst [vmem:[#allocation3 + $0x78] sm:$0xff] %v693_v10  ;;  %v4682_v46 = vld [vmem:[#allocation3 + $0x70] sm:$0xf0]  ;;  %v4937_v14 = vld [vmem:[#allocation3 + $0x6c] sm:$0xf0] }
 0x11b   :  { %v4681_v15 = vor.u32 %v4937_v14, %v4680_v12  ;;  %v4685_v55 = vor.u32 %v4936_v11, %v4682_v46 }
 0x11d   :  { %2515 = vxpose.binary.xlu1.c.b16.end [2/4] (short) %v4685_v55, %v4681_v15, 128 }
 0x121   :  { %v4778_v22 = vld [vmem:[#allocation3 + $0x78] sm:$0xf0]  ;;  %v4953_v23 = vld [vmem:[#allocation3 + $0x74] sm:$0xf0] }
 0x122   :  { %v4777_v2 = vor.u32 %v4953_v23, %v4776_v48  ;;  %v4781_v25 = vor.u32 %v4952_v24, %v4778_v22 }
 0x16d   :  { %3404 = vxpose.binary.xlu2.c.b16.start [1/4] (short) %v4773_v21, %v4769_v20, 128 }
 0x17d   :  { %3405 = vxpose.binary.xlu2.c.b16.end [2/4] (short) %v4781_v25, %v4777_v2, 128 }
 0x18e   :  { %v746_v27 = vpop.trf.xlu2 }
 0x18f   :  { %4510 = vmatmul.msk.bf16.vlgmr.msra.gmra.mxu0 %vm195_vm0, %v746_v27  ;;  %4526 = vmatmul.msk.bf16.vlgmr.msra.gmra.mxu1 %vm195_vm0, %v746_v27 }
 0x196   :  { %v747_v28 = vpop.trf.xlu2 }
 0x19e   :  { %v748_v29 = vpop.trf.xlu2 }
 0x19f   :  { %4511 = vmatmul.msk.bf16.gmra.mxu0 %vm195_vm0, %v748_v29  ;;  %4527 = vmatmul.msk.bf16.gmra.mxu1 %vm195_vm0, %v748_v29 }
 0x1a6   :  { %v749_v30 = vpop.trf.xlu2 }
 0x1ae   :  { %v750_v26 = vpop.trf.xlu2 }
 0x1af   :  { %4512 = vmatmul.msk.bf16.gmra.mxu0 %vm195_vm0, %v750_v26  ;;  %4528 = vmatmul.msk.bf16.gmra.mxu1 %vm195_vm0, %v750_v26 }
 0x1b6   :  { %v751_v31 = vpop.trf.xlu2 }
 0x1be   :  { %v752_v32 = vpop.trf.xlu2 }
 0x1bf   :  { %4513 = vmatmul.msk.bf16.gmra.mxu0 %vm195_vm0, %v752_v32  ;;  %4529 = vmatmul.msk.bf16.gmra.mxu1 %vm195_vm0, %v752_v32 }
 0x1c6   :  { %v753_v33 = vpop.trf.xlu2 }
 0x1ce   :  { %v754_v13 = vpop.trf.xlu2 }
 0x1cf   :  { %4514 = vmatmul.msk.bf16.gmra.mxu0 %vm195_vm0, %v754_v13  ;;  %4530 = vmatmul.msk.bf16.gmra.mxu1 %vm195_vm0, %v754_v13 }
 0x1d6   :  { %v755_v34 = vpop.trf.xlu2 }
 0x1de   :  { %v756_v35 = vpop.trf.xlu2 }
 0x1df   :  { %4515 = vmatmul.msk.bf16.gmra.mxu0 %vm195_vm0, %v756_v35  ;;  %4531 = vmatmul.msk.bf16.gmra.mxu1 %vm195_vm0, %v756_v35 }
 0x1e6   :  { %v757_v36 = vpop.trf.xlu2 }
 0x1ee   :  { %v758_v37 = vpop.trf.xlu2 }
 0x1ef   :  { %4516 = vmatmul.msk.bf16.gmra.mxu0 %vm195_vm0, %v758_v37  ;;  %4532 = vmatmul.msk.bf16.gmra.mxu1 %vm195_vm0, %v758_v37 }
 0x1f6   :  { %v759_v38 = vpop.trf.xlu2 }
 0x1fe   :  { %v760_v39 = vpop.trf.xlu2 }
 0x1ff   :  { %4517 = vmatmul.msk.bf16.gmra.mxu0 %vm195_vm0, %v760_v39  ;;  %4533 = vmatmul.msk.bf16.gmra.mxu1 %vm195_vm0, %v760_v39 }
 0x206   :  { %v761_v8 = vpop.trf.xlu2 }
 0x20c   :  { %v5837_v40 = vpop.f32.mrf.mxu0  ;;  %v5839_v41 = vpop.f32.mrf.mxu1 }
 0x20d   :  { %8171 = vst [vmem:[#allocation16_spill] sm:$0xff] %v5837_v40 }
 0x20e   :  { %8172 = vst [vmem:[#allocation17_spill] sm:$0xff] %v5839_v41 }
 0x20f   :  { %4518 = vmatmul.msk.bf16.gmra.mxu0 %vm195_vm0, %v747_v28  ;;  %4534 = vmatmul.msk.bf16.gmra.mxu1 %vm195_vm0, %v747_v28 }
 0x214   :  { %v5843_v45 = vpop.f32.mrf.mxu0  ;;  %v5845_v42 = vpop.f32.mrf.mxu1 }
 0x215   :  { %8173 = vst [vmem:[#allocation18_spill] sm:$0xff] %v5843_v45 }
 0x216   :  { %8174 = vst [vmem:[#allocation19_spill] sm:$0xff] %v5845_v42 }
 0x21c   :  { %v5847_v43 = vpop.f32.mrf.mxu0  ;;  %v5849_v44 = vpop.f32.mrf.mxu1 }
 0x21d   :  { %8175 = vst [vmem:[#allocation20_spill] sm:$0xff] %v5847_v43 }
 0x21f   :  { %4519 = vmatmul.msk.bf16.gmra.mxu0 %vm195_vm0, %v749_v30  ;;  %4535 = vmatmul.msk.bf16.gmra.mxu1 %vm195_vm0, %v749_v30 }
 0x224   :  { %v5853_v50 = vpop.f32.mrf.mxu0  ;;  %v5855_v51 = vpop.f32.mrf.mxu1 }
 0x225   :  { %8176 = vst [vmem:[#allocation21_spill] sm:$0xff] %v5853_v50 }
 0x226   :  { %8177 = vst [vmem:[#allocation22_spill] sm:$0xff] %v5855_v51 }
 0x22c   :  { %v5857_v52 = vpop.f32.mrf.mxu0  ;;  %v5859_v53 = vpop.f32.mrf.mxu1 }
 0x22d   :  { %8178 = vst [vmem:[#allocation23_spill] sm:$0xff] %v5857_v52 }
 0x22f   :  { %4520 = vmatmul.msk.bf16.gmra.mxu0 %vm195_vm0, %v751_v31  ;;  %4536 = vmatmul.msk.bf16.gmra.mxu1 %vm195_vm0, %v751_v31 }
 0x234   :  { %v5863_v54 = vpop.f32.mrf.mxu0  ;;  %v5865_v56 = vpop.f32.mrf.mxu1 }
 0x235   :  { %8179 = vst [vmem:[#allocation24_spill] sm:$0xff] %v5863_v54 }
 0x23c   :  { %v5867_v57 = vpop.f32.mrf.mxu0  ;;  %v5869_v58 = vpop.f32.mrf.mxu1 }
 0x23f   :  { %4521 = vmatmul.msk.bf16.gmra.mxu0 %vm195_vm0, %v753_v33  ;;  %4537 = vmatmul.msk.bf16.gmra.mxu1 %vm195_vm0, %v753_v33  ;;  %v1009_v33 = vmax.f32 %v5843_v45, %v5853_v50 }
 0x241   :  { %v1011_v35 = vmax.f32 %v1009_v33, %v5863_v54 }
 0x244   :  { %v5873_v59 = vpop.f32.mrf.mxu0  ;;  %v5875_v60 = vpop.f32.mrf.mxu1 }
 0x245   :  { %v1013_v37 = vmax.f32 %v1011_v35, %v5873_v59 }
 0x24c   :  { %v5877_v61 = vpop.f32.mrf.mxu0  ;;  %v5879_v62 = vpop.f32.mrf.mxu1 }
 0x24f   :  { %4522 = vmatmul.msk.bf16.gmra.mxu0 %vm195_vm0, %v755_v34  ;;  %4538 = vmatmul.msk.bf16.gmra.mxu1 %vm195_vm0, %v755_v34  ;;  %v1008_v34 = vmax.f32 %v5837_v40, %v5847_v43 }
 0x254   :  { %v5883_v63 = vpop.f32.mrf.mxu0  ;;  %v5885_v47 = vpop.f32.mrf.mxu1 }
 0x25c   :  { %v5887_v0 = vpop.f32.mrf.mxu0  ;;  %v5891_v49 = vpop.f32.mrf.mxu1 }
 0x25f   :  { %4523 = vmatmul.msk.bf16.gmra.mxu0 %vm195_vm0, %v757_v36  ;;  %4539 = vmatmul.msk.bf16.gmra.mxu1 %vm195_vm0, %v757_v36  ;;  %v1010_v36 = vmax.f32 %v1008_v34, %v5857_v52 }
 0x261   :  { %v1012_v39 = vmax.f32 %v1010_v36, %v5867_v57 }
 0x264   :  { %v5893_v1 = vpop.f32.mrf.mxu0  ;;  %v5895_v3 = vpop.f32.mrf.mxu1 }
 0x26c   :  { %v5897_v4 = vpop.f32.mrf.mxu0  ;;  %v5901_v5 = vpop.f32.mrf.mxu1 }
 0x26f   :  { %4524 = vmatmul.msk.bf16.gmra.mxu0 %vm195_vm0, %v759_v38  ;;  %4540 = vmatmul.msk.bf16.gmra.mxu1 %vm195_vm0, %v759_v38 }
 0x274   :  { %v5903_v6 = vpop.f32.mrf.mxu0  ;;  %v5907_v9 = vpop.f32.mrf.mxu1 }
 0x27c   :  { %v5905_v7 = vpop.f32.mrf.mxu0  ;;  %v5913_v11 = vpop.f32.mrf.mxu1 }
 0x27f   :  { %4525 = vmatmul.msk.bf16.gmra.mxu0 %vm195_vm0, %v761_v8  ;;  %4541 = vmatmul.msk.bf16.gmra.mxu1 %vm195_vm0, %v761_v8  ;;  %v1015_v8 = vmax.f32 %v1013_v37, %v5883_v63 }
 0x281   :  { %v1017_v45 = vmax.f32 %v1015_v8, %v5893_v1 }
 0x283   :  { %v1019_v40 = vmax.f32 %v1017_v45, %v5903_v6 }
 0x284   :  { %v5911_v10 = vpop.f32.mrf.mxu0  ;;  %v5917_v46 = vpop.f32.mrf.mxu1 }
 0x285   :  { %v1021_v34 = vmax.f32 %v1019_v40, %v5911_v10 }
 0x28c   :  { %v5915_v12 = vpop.f32.mrf.mxu0  ;;  %v5921_v15 = vpop.f32.mrf.mxu1 }
 0x28d   :  { %8180 = vst [vmem:[#allocation25_spill] sm:$0xff] %v5915_v12 }
 0x28e   :  { %8182 = vst [vmem:[#allocation27_spill] sm:$0xff] %v5921_v15 }
 0x294   :  { %v5919_v14 = vpop.f32.mrf.mxu0  ;;  %v5927_v17 = vpop.f32.mrf.mxu1 }
 0x295   :  { %8181 = vst [vmem:[#allocation26_spill] sm:$0xff] %v5919_v14  ;;  %v1023_v36 = vmax.f32 %v1021_v34, %v5919_v14 }
 0x296   :  { %8185 = vst [vmem:[#allocation30_spill] sm:$0xff] %v5927_v17 }
 0x29c   :  { %v5923_v55 = vpop.f32.mrf.mxu0  ;;  %v5931_v19 = vpop.f32.mrf.mxu1 }
 0x29d   :  { %8183 = vst [vmem:[#allocation28_spill] sm:$0xff] %v5923_v55 }
 0x2a4   :  { %v5925_v16 = vpop.f32.mrf.mxu0  ;;  %v5935_v21 = vpop.f32.mrf.mxu1 }
 0x2a5   :  { %8184 = vst [vmem:[#allocation29_spill] sm:$0xff] %v5925_v16 }
 0x2ac   :  { %v5929_v18 = vpop.f32.mrf.mxu0  ;;  %v5939_v23 = vpop.f32.mrf.mxu1 }
 0x2b4   :  { %v5933_v20 = vpop.f32.mrf.mxu0  ;;  %v5943_v48 = vpop.f32.mrf.mxu1 }
 0x2bc   :  { %v5937_v22 = vpop.f32.mrf.mxu0  ;;  %v5947_v25 = vpop.f32.mrf.mxu1 }
 0x2c4   :  { %v5941_v24 = vpop.f32.mrf.mxu0  ;;  %v5951_v28 = vpop.f32.mrf.mxu1 }
 0x2cc   :  { %v5945_v2 = vpop.f32.mrf.mxu0  ;;  %v5955_v30 = vpop.f32.mrf.mxu1 }
 0x2cd   :  { %8186 = vst [vmem:[#allocation31_spill] sm:$0xff] %v5955_v30  ;;  %v1014_v30 = vmax.f32 %v1012_v39, %v5877_v61  ;;  %v1025_v39 = vmax.f32 %v1023_v36, %v5925_v16  ;;  %v1046_v36 = vmax.f32 %v5845_v42, %v5855_v51 }
 0x2cf   :  { %v1016_v50 = vmax.f32 %v1014_v30, %v5887_v0  ;;  %v1027_v45 = vmax.f32 %v1025_v39, %v5933_v20 }
 0x2d1   :  { %v1018_v33 = vmax.f32 %v1016_v50, %v5897_v4  ;;  %v1029_v50 = vmax.f32 %v1027_v45, %v5941_v24  ;;  %v1045_v45 = vmax.f32 %v5839_v41, %v5849_v44 }
 0x2d3   :  { %v1020_v35 = vmax.f32 %v1018_v33, %v5905_v7 }
 0x2d4   :  { %v5949_v27 = vpop.f32.mrf.mxu0  ;;  %v5959_v31 = vpop.f32.mrf.mxu1 }
 0x2d5   :  { %v1022_v37 = vmax.f32 %v1020_v35, %v5915_v12  ;;  %v1031_v33 = vmax.f32 %v1029_v50, %v5949_v27 }
 0x2d7   :  { %v1024_v30 = vmax.f32 %v1022_v37, %v5923_v55 }
 0x2d9   :  { %v1026_v8 = vmax.f32 %v1024_v30, %v5929_v18 }
 0x2db   :  { %v1028_v40 = vmax.f32 %v1026_v8, %v5937_v22  ;;  %v1048_v8 = vmax.f32 %v1046_v36, %v5865_v56 }
 0x2dc   :  { %v5953_v29 = vpop.f32.mrf.mxu0  ;;  %v5965_v13 = vpop.f32.mrf.mxu1 }
 0x2dd   :  { %v1030_v34 = vmax.f32 %v1028_v40, %v5945_v2  ;;  %v1050_v14 = vmax.f32 %v1048_v8, %v5875_v60 }
 0x2df   :  { %v1032_v39 = vmax.f32 %v1030_v34, %v5953_v29 }
 0x2e4   :  { %v5957_v26 = vpop.f32.mrf.mxu0  ;;  %v5980_v43 = vpop.f32.mrf.mxu1 }
 0x2e5   :  { %v1033_v35 = vmax.f32 %v1031_v33, %v5957_v26  ;;  %v1047_v33 = vmax.f32 %v1045_v45, %v5859_v53 }
 0x2e7   :  { %v1049_v34 = vmax.f32 %v1047_v33, %v5869_v58 }
 0x2e9   :  { %v1051_v41 = vmax.f32 %v1049_v34, %v5879_v62 }
 0x2ec   :  { %v5961_v32 = vpop.f32.mrf.mxu0  ;;  %v5994_v52 = vpop.f32.mrf.mxu1 }
 0x2ed   :  { %v1034_v50 = vmax.f32 %v1032_v39, %v5961_v32  ;;  %v1053_v39 = vmax.f32 %v1051_v41, %v5891_v49 }
 0x2ef   :  { %v1055_v8 = vmax.f32 %v1053_v39, %v5901_v5 }
 0x2f4   :  { %v5972_v38 = vpop.f32.mrf.mxu0  ;;  %v6013_v12 = vpop.f32.mrf.mxu1 }
 0x2f5   :  { %v1035_v30 = vmax.f32 %v1033_v35, %v5972_v38  ;;  %v1052_v35 = vmax.f32 %v1050_v14, %v5885_v47 }
 0x2f7   :  { %v1054_v36 = vmax.f32 %v1052_v35, %v5895_v3 }
 0x2fc   :  { %v5986_v54 = vpop.f32.mrf.mxu0  ;;  %v6026_v51 = vpop.f32.mrf.mxu1 }
 0x2fd   :  { %v1036_v42 = vmax.f32 %v1034_v50, %v5986_v54  ;;  %v1057_v50 = vmax.f32 %v1055_v8, %v5913_v11 }
 0x2ff   :  { %v1059_v14 = vmax.f32 %v1057_v50, %v5921_v15 }
 0x301   :  { %v1061_v41 = vmax.f32 %v1059_v14, %v5931_v19 }
 0x304   :  { %v6002_v37 = vpop.f32.mrf.mxu0  ;;  %v6038_v50 = vpop.f32.mrf.mxu1 }
 0x305   :  { %v1037_v40 = vmax.f32 %v1035_v30, %v6002_v37  ;;  %v1056_v30 = vmax.f32 %v1054_v36, %v5907_v9  ;;  %v1063_v36 = vmax.f32 %v1061_v41, %v5939_v23 }
 0x307   :  { %v1038_v16 = vmax.f32 %v1036_v42, %v1037_v40  ;;  %v1058_v55 = vmax.f32 %v1056_v30, %v5917_v46  ;;  %v1065_v30 = vmax.f32 %v1063_v36, %v5947_v25 }
 0x309   :  { %v1039_v45 = vrot.slane %v1038_v16, 4  ;;  %v1060_v33 = vmax.f32 %v1058_v55, %v5927_v17  ;;  %v8187_v17 = vld [vmem:[#allocation31_spill] sm:$0xff] }
 0x30b   :  { %v1040_v42 = vmax.f32 %v1038_v16, %v1039_v45  ;;  %v1062_v40 = vmax.f32 %v1060_v33, %v5935_v21  ;;  %v1067_v16 = vmax.f32 %v1065_v30, %v8187_v17 }
 0x30d   :  { %v1064_v34 = vmax.f32 %v1062_v40, %v5943_v48  ;;  %v1041_v35 = vrot.slane %v1040_v42, 2  ;;  %v1069_v33 = vmax.f32 %v1067_v16, %v5965_v13 }
 0x30f   :  { %v1066_v39 = vmax.f32 %v1064_v34, %v5951_v28  ;;  %v1042_v8 = vmax.f32 %v1040_v42, %v1041_v35  ;;  %v1071_v41 = vmax.f32 %v1069_v33, %v5994_v52 }
 0x311   :  { %v1068_v55 = vmax.f32 %v1066_v39, %v5959_v31  ;;  %v1043_v40 = vrot.slane %v1042_v8, 1  ;;  %v1073_v36 = vmax.f32 %v1071_v41, %v6026_v51 }
 0x313   :  { %v1070_v45 = vmax.f32 %v1068_v55, %v5980_v43  ;;  %v6045_v15 = vmax.f32 %v1042_v8, %v1043_v40 }
 0x315   :  { %v1072_v14 = vmax.f32 %v1070_v45, %v6013_v12  ;;  %v1110_v35 = vsub.f32 %v5905_v7, %v6045_v15  ;;  %v1112_v30 = vsub.f32 %v5911_v10, %v6045_v15  ;;  %v1106_v55 = vsub.f32 %v5897_v4, %v6045_v15 }
 0x316   :  { %v1108_v16 = vsub.f32 %v5903_v6, %v6045_v15  ;;  %v1102_v8 = vsub.f32 %v5887_v0, %v6045_v15  ;;  %v1104_v7 = vsub.f32 %v5893_v1, %v6045_v15  ;;  %v1098_v4 = vsub.f32 %v5877_v61, %v6045_v15 }
 0x317   :  { %v1074_v34 = vmax.f32 %v1072_v14, %v6038_v50  ;;  %v1202_v45 = vmul.f32 1.442695, %v1110_v35  ;;  %v1206_v14 = vmul.f32 1.442695, %v1112_v30  ;;  %v1194_v40 = vmul.f32 1.442695, %v1106_v55 }
 0x318   :  { %v1198_v41 = vmul.f32 1.442695, %v1108_v16  ;;  %v1186_v10 = vmul.f32 1.442695, %v1102_v8  ;;  %v1100_v6 = vsub.f32 %v5883_v63, %v6045_v15  ;;  %v1094_v35 = vsub.f32 %v5867_v57, %v6045_v15  ;;  %v8189_v57 = vld [vmem:[#allocation24_spill] sm:$0xff] }
 0x319   :  { %v1075_v42 = vmax.f32 %v1073_v36, %v1074_v34  ;;  %4975 = vpow2.f32 %v1202_v45  ;;  %v1190_v36 = vmul.f32 1.442695, %v1104_v7  ;;  %v1178_v1 = vmul.f32 1.442695, %v1098_v4 }
 0x31a   :  { %4977 = vpow2.f32 %v1206_v14  ;;  %v1096_v30 = vsub.f32 %v5873_v59, %v6045_v15  ;;  %v1182_v55 = vmul.f32 1.442695, %v1100_v6  ;;  %v8188_v14 = vld [vmem:[#allocation23_spill] sm:$0xff]  ;;  %v1170_v8 = vmul.f32 1.442695, %v1094_v35  ;;  %v8190_v6 = vld [vmem:[#allocation20_spill] sm:$0xff] }
 0x31b   :  { %v1076_v39 = vrot.slane %v1075_v42, 4  ;;  %4979 = vpow2.f32 %v1194_v40  ;;  %v1092_v40 = vsub.f32 %v8189_v57, %v6045_v15  ;;  %v8191_v35 = vld [vmem:[#allocation21_spill] sm:$0xff] }
 0x31c   :  { %4981 = vpow2.f32 %v1198_v41  ;;  %v1174_v7 = vmul.f32 1.442695, %v1096_v30 }
 0x31d   :  { %v1077_v33 = vmax.f32 %v1075_v42, %v1076_v39  ;;  %4983 = vpow2.f32 %v1186_v10  ;;  %v1144_v10 = vsub.f32 %v6002_v37, %v6045_v15 }
 0x31e   :  { %4985 = vpow2.f32 %v1190_v36  ;;  %v1086_v36 = vsub.f32 %v8190_v6, %v6045_v15 }
 0x31f   :  { %v1078_v34 = vrot.slane %v1077_v33, 2  ;;  %v4976_v0 = vpop.eup %4975  ;;  %4987 = vpow2.f32 %v1178_v1  ;;  %v1088_v1 = vsub.f32 %v8191_v35, %v6045_v15  ;;  %v1270_v37 = vmul.f32 1.442695, %v1144_v10 }
 0x320   :  { %v4978_v39 = vpop.eup %4977  ;;  %4989 = vpow2.f32 %v1182_v55 }
 0x321   :  { %v1079_v42 = vmax.f32 %v1077_v33, %v1078_v34  ;;  %v4980_v61 = vpop.eup %4979  ;;  %v6067_v45 = vpack.c.bf16 %v4978_v39, %v4976_v0  ;;  %v1090_v33 = vsub.f32 %v8188_v14, %v6045_v15  ;;  %4991 = vpow2.f32 %v1170_v8  ;;  %v8193_v14 = vld [vmem:[#allocation18_spill] sm:$0xff] }
 0x322   :  { %v4982_v63 = vpop.eup %4981  ;;  %v1166_v39 = vmul.f32 1.442695, %v1092_v40  ;;  %4993 = vpow2.f32 %v1174_v7  ;;  %v1154_v8 = vmul.f32 1.442695, %v1086_v36  ;;  %v1158_v40 = vmul.f32 1.442695, %v1088_v1 }
 0x323   :  { %v1080_v16 = vrot.slane %v1079_v42, 1  ;;  %1306 = vmatpush.bf16.msra.mxu2 %v6067_v45  ;;  %v4984_v59 = vpop.eup %4983  ;;  %v6076_v34 = vpack.c.bf16 %v4982_v63, %v4980_v61  ;;  %v1162_v0 = vmul.f32 1.442695, %v1090_v33  ;;  %v1084_v33 = vsub.f32 %v8193_v14, %v6045_v15 }
 0x324   :  { %v4986_v4 = vpop.eup %4985 }
 0x325   :  { %v6074_v41 = vmax.f32 %v1079_v42, %v1080_v16  ;;  %v4988_v42 = vpop.eup %4987  ;;  %v6087_v55 = vpack.c.bf16 %v4986_v4, %v4984_v59  ;;  %v8192_v16 = vld [vmem:[#allocation16_spill] sm:$0xff]  ;;  %4995 = vpow2.f32 %v1162_v0  ;;  %v1150_v35 = vmul.f32 1.442695, %v1084_v33 }
 0x326   :  { %v4990_v61 = vpop.eup %4989  ;;  %v1082_v63 = vsub.f32 %v8192_v16, %v6045_v15  ;;  %4997 = vpow2.f32 %v1166_v39  ;;  %v1138_v39 = vsub.f32 %v5961_v32, %v6045_v15  ;;  %v1134_v33 = vsub.f32 %v5953_v29, %v6045_v15 }
 0x327   :  { %1307 = vmatpush.bf16.msra.mxu2 %v6076_v34  ;;  %v1145_v30 = vsub.f32 %v6038_v50, %v6074_v41  ;;  %v1111_v57 = vsub.f32 %v5913_v11, %v6074_v41  ;;  %v4992_v50 = vpop.eup %4991  ;;  %v1113_v59 = vsub.f32 %v5917_v46, %v6074_v41  ;;  %v6098_v4 = vpack.c.bf16 %v4990_v61, %v4988_v42 }
 0x328   :  { %v4994_v10 = vpop.eup %4993  ;;  %4999 = vpow2.f32 %v1270_v37  ;;  %v1107_v6 = vsub.f32 %v5901_v5, %v6074_v41  ;;  %v1146_v36 = vmul.f32 1.442695, %v1082_v63  ;;  %v1109_v0 = vsub.f32 %v5907_v9, %v6074_v41 }
 0x329   :  { %v1272_v7 = vmul.f32 1.442695, %v1145_v30  ;;  %5001 = vpow2.f32 %v1154_v8  ;;  %v1142_v11 = vsub.f32 %v5986_v54, %v6045_v15  ;;  %v1204_v46 = vmul.f32 1.442695, %v1111_v57 }
 0x32a   :  { %5003 = vpow2.f32 %v1158_v40  ;;  %v1208_v42 = vmul.f32 1.442695, %v1113_v59  ;;  %v6109_v5 = vpack.c.bf16 %v4994_v10, %v4992_v50  ;;  %v1140_v9 = vsub.f32 %v5972_v38, %v6045_v15 }
 0x32b   :  { %1308 = vmatpush.bf16.msra.mxu2 %v6087_v55  ;;  %v4996_v1 = vpop.eup %4995  ;;  %5005 = vpow2.f32 %v1272_v7  ;;  %v1196_v61 = vmul.f32 1.442695, %v1107_v6  ;;  %v1103_v37 = vsub.f32 %v5891_v49, %v6074_v41  ;;  %v1200_v54 = vmul.f32 1.442695, %v1109_v0 }
 0x32c   :  { %v4998_v30 = vpop.eup %4997  ;;  %5007 = vpow2.f32 %v1146_v36  ;;  %v1105_v32 = vsub.f32 %v5895_v3, %v6074_v41  ;;  %v1266_v63 = vmul.f32 1.442695, %v1142_v11  ;;  %v1258_v38 = vmul.f32 1.442695, %v1138_v39 }
 0x32d   :  { %5009 = vpow2.f32 %v1150_v35  ;;  %v6120_v8 = vpack.c.bf16 %v4998_v30, %v4996_v1  ;;  %v1136_v49 = vsub.f32 %v5957_v26, %v6045_v15  ;;  %v1262_v40 = vmul.f32 1.442695, %v1140_v9 }
 0x32e   :  { %v5000_v16 = vpop.eup %4999  ;;  %5011 = vpow2.f32 %v1204_v46  ;;  %v1099_v3 = vsub.f32 %v5879_v62, %v6074_v41  ;;  %v1188_v7 = vmul.f32 1.442695, %v1103_v37  ;;  %v1101_v59 = vsub.f32 %v5885_v47, %v6074_v41 }
 0x32f   :  { %1309 = vmatpush.bf16.msra.mxu2 %v6098_v4  ;;  %v5002_v14 = vpop.eup %5001  ;;  %5013 = vpow2.f32 %v1208_v42  ;;  %v1192_v10 = vmul.f32 1.442695, %v1105_v32  ;;  %v1130_v26 = vsub.f32 %v5945_v2, %v6045_v15  ;;  %v1250_v36 = vmul.f32 1.442695, %v1134_v33 }
 0x330   :  { %v5004_v57 = vpop.eup %5003  ;;  %5015 = vpow2.f32 %v1196_v61  ;;  %v1132_v62 = vsub.f32 %v5949_v27, %v6045_v15  ;;  %v1254_v11 = vmul.f32 1.442695, %v1136_v49  ;;  %v1095_v47 = vsub.f32 %v5869_v58, %v6074_v41 }
 0x331   :  { %v6124_v50 = vpop.eup %5005  ;;  %5017 = vpow2.f32 %v1200_v54  ;;  %v6133_v0 = vpack.c.bf16 %v5004_v57, %v5002_v14  ;;  %v1180_v1 = vmul.f32 1.442695, %v1099_v3  ;;  %v1097_v2 = vsub.f32 %v5875_v60, %v6074_v41 }
 0x332   :  { %v5008_v29 = vpop.eup %5007  ;;  %5019 = vpow2.f32 %v1266_v63  ;;  %v1184_v42 = vmul.f32 1.442695, %v1101_v59  ;;  %v1126_v27 = vsub.f32 %v5937_v22, %v6045_v15  ;;  %v1242_v9 = vmul.f32 1.442695, %v1130_v26 }
 0x333   :  { %1310 = vmatpush.bf16.msra.mxu2 %v6109_v5  ;;  %v5010_v6 = vpop.eup %5009  ;;  %5021 = vpow2.f32 %v1258_v38  ;;  %v1128_v58 = vsub.f32 %v5941_v24, %v6045_v15  ;;  %v1246_v54 = vmul.f32 1.442695, %v1132_v62  ;;  %v1091_v60 = vsub.f32 %v5859_v53, %v6074_v41 }
 0x334   :  { %v5012_v35 = vpop.eup %5011  ;;  %5023 = vpow2.f32 %v1262_v40  ;;  %v6144_v61 = vpack.c.bf16 %v5010_v6, %v5008_v29  ;;  %v1172_v14 = vmul.f32 1.442695, %v1095_v47  ;;  %v1093_v38 = vsub.f32 %v5865_v56, %v6074_v41  ;;  %v8194_v6 = vld [vmem:[#allocation22_spill] sm:$0xff] }
 0x335   :  { %v5014_v46 = vpop.eup %5013  ;;  %5025 = vpow2.f32 %v1188_v7  ;;  %v1176_v57 = vmul.f32 1.442695, %v1097_v2  ;;  %v1122_v49 = vsub.f32 %v5929_v18, %v6045_v15  ;;  %v1234_v40 = vmul.f32 1.442695, %v1126_v27 }
 0x336   :  { %v5016_v39 = vpop.eup %5015  ;;  %5027 = vpow2.f32 %v1192_v10  ;;  %v6148_v32 = vpack.c.bf16 %v5014_v46, %v5012_v35  ;;  %v1238_v3 = vmul.f32 1.442695, %v1128_v58  ;;  %v1087_v29 = vsub.f32 %v5849_v44, %v6074_v41  ;;  %v8195_v35 = vld [vmem:[#allocation28_spill] sm:$0xff]  ;;  %v8196_v46 = vld [vmem:[#allocation29_spill] sm:$0xff]  ;;  %v8198_v58 = vld [vmem:[#allocation19_spill] sm:$0xff] }
 0x337   :  { %1311 = vmatpush.bf16.msra.mxu2 %v6120_v8  ;;  %v5018_v30 = vpop.eup %5017  ;;  %5029 = vpow2.f32 %v1250_v36  ;;  %v1164_v59 = vmul.f32 1.442695, %v1091_v60  ;;  %v1089_v26 = vsub.f32 %v8194_v6, %v6074_v41  ;;  %v1168_v36 = vmul.f32 1.442695, %v1093_v38 }
 0x338   :  { %v5020_v37 = vpop.eup %5019  ;;  %5031 = vpow2.f32 %v1254_v11  ;;  %v6163_v7 = vpack.c.bf16 %v5018_v30, %v5016_v39  ;;  %v1118_v62 = vsub.f32 %v8195_v35, %v6045_v15  ;;  %v1226_v11 = vmul.f32 1.442695, %v1122_v49 }
 0x339   :  { %v5022_v63 = vpop.eup %5021  ;;  %5033 = vpow2.f32 %v1180_v1  ;;  %v6152_v33 = vpack.c.bf16 %v5000_v16, %v5020_v37  ;;  %v1124_v16 = vsub.f32 %v5933_v20, %v6045_v15  ;;  %v1120_v47 = vsub.f32 %v8196_v46, %v6045_v15 }
 0x33a   :  { %v5024_v22 = vpop.eup %5023  ;;  %5035 = vpow2.f32 %v1184_v42  ;;  %v8197_v42 = vld [vmem:[#allocation17_spill] sm:$0xff]  ;;  %v1156_v27 = vmul.f32 1.442695, %v1087_v29  ;;  %v1218_v38 = vmul.f32 1.442695, %v1118_v62  ;;  %v1141_v62 = vsub.f32 %v6013_v12, %v6074_v41 }
 0x33b   :  { %1312 = vmatpush.bf16.msra.mxu2 %v6133_v0  ;;  %v5026_v24 = vpop.eup %5025  ;;  %5037 = vpow2.f32 %v1242_v9  ;;  %1319 = vmatpush.bf16.msra.mxu3 %v6152_v33  ;;  %v6167_v10 = vpack.c.bf16 %v5024_v22, %v5022_v63  ;;  %v1230_v1 = vmul.f32 1.442695, %v1124_v16  ;;  %v1083_v30 = vsub.f32 %v8197_v42, %v6074_v41 }
 0x33c   :  { %v5028_v53 = vpop.eup %5027  ;;  %5039 = vpow2.f32 %v1246_v54  ;;  %v1085_v54 = vsub.f32 %v8198_v58, %v6074_v41  ;;  %v1160_v63 = vmul.f32 1.442695, %v1089_v26  ;;  %v8119_v46 = vmov 1065369472  }
 0x33d   :  { %v5030_v56 = vpop.eup %5029  ;;  %5041 = vpow2.f32 %v1172_v14  ;;  %v6177_v39 = vpack.c.bf16 %v5028_v53, %v5026_v24  ;;  %v8199_v14 = vld [vmem:[#allocation25_spill] sm:$0xff]  ;;  %v8200_v24 = vld [vmem:[#allocation26_spill] sm:$0xff] }
 0x33e   :  { %v5032_v18 = vpop.eup %5031  ;;  %5043 = vpow2.f32 %v1176_v57  ;;  %v1114_v22 = vsub.f32 %v8199_v14, %v6045_v15  ;;  %v1116_v49 = vsub.f32 %v8200_v24, %v6045_v15  ;;  %v1139_v15 = vsub.f32 %v5994_v52, %v6074_v41 }
 0x33f   :  { %1313 = vmatpush.bf16.msra.mxu2 %v6144_v61  ;;  %v5034_v20 = vpop.eup %5033  ;;  %5045 = vpow2.f32 %v1234_v40  ;;  %1320 = vmatpush.bf16.msra.mxu3 %v6167_v10  ;;  %v6181_v9 = vpack.c.bf16 %v5032_v18, %v5030_v56  ;;  %v1222_v40 = vmul.f32 1.442695, %v1120_v47  ;;  %v1148_v56 = vmul.f32 1.442695, %v1083_v30 }
 0x340   :  { %v5036_v44 = vpop.eup %5035  ;;  %5047 = vpow2.f32 %v1238_v3  ;;  %v1143_v3 = vsub.f32 %v6026_v51, %v6074_v41  ;;  %v1152_v18 = vmul.f32 1.442695, %v1085_v54  ;;  %v1210_v26 = vmul.f32 1.442695, %v1114_v22 }
 0x341   :  { %v5038_v2 = vpop.eup %5037  ;;  %5049 = vpow2.f32 %v1164_v59  ;;  %v6191_v53 = vpack.c.bf16 %v5036_v44, %v5034_v20  ;;  %v1214_v20 = vmul.f32 1.442695, %v1116_v49  ;;  %v1260_v12 = vmul.f32 1.442695, %v1139_v15 }
 0x342   :  { %v5040_v37 = vpop.eup %5039  ;;  %5051 = vpow2.f32 %v1168_v36  ;;  %1314 = vmatmul.bf16.vlgmr.msra.gmra.mxu2 %v8119_v46 }
 0x343   :  { %1332 = vmatpush.bf16.msrb.mxu2 %v6148_v32  ;;  %v5042_v60 = vpop.eup %5041  ;;  %5053 = vpow2.f32 %v1226_v11  ;;  %1321 = vmatpush.bf16.msra.mxu3 %v6181_v9  ;;  %v6195_v29 = vpack.c.bf16 %v5040_v37, %v5038_v2  ;;  %v1268_v11 = vmul.f32 1.442695, %v1143_v3  ;;  %v1135_v2 = vsub.f32 %v5965_v13, %v6074_v41 }
 0x344   :  { %v5044_v57 = vpop.eup %5043  ;;  %5055 = vpow2.f32 %v1230_v1  ;;  %v1264_v37 = vmul.f32 1.442695, %v1141_v62  ;;  %v1131_v13 = vsub.f32 %v8187_v17, %v6074_v41  ;;  %v1127_v17 = vsub.f32 %v5947_v25, %v6074_v41 }
 0x345   :  { %v5046_v16 = vpop.eup %5045  ;;  %5057 = vpow2.f32 %v1156_v27  ;;  %v6201_v51 = vpack.c.bf16 %v5044_v57, %v5042_v60  ;;  %v1137_v27 = vsub.f32 %v5980_v43, %v6074_v41  ;;  %v1252_v14 = vmul.f32 1.442695, %v1135_v2  ;;  %v8201_v2 = vld [vmem:[#allocation27_spill] sm:$0xff] }
 0x346   :  { %v5048_v59 = vpop.eup %5047  ;;  %5059 = vpow2.f32 %v1160_v63  ;;  %v1133_v43 = vsub.f32 %v5959_v31, %v6074_v41  ;;  %v1129_v31 = vsub.f32 %v5951_v28, %v6074_v41  ;;  %v1123_v25 = vsub.f32 %v5939_v23, %v6074_v41 }
 0x347   :  { %1333 = vmatpush.bf16.msrb.mxu2 %v6163_v7  ;;  %v5050_v6 = vpop.eup %5049  ;;  %5061 = vpow2.f32 %v1218_v38  ;;  %1322 = vmatpush.bf16.msra.mxu3 %v6195_v29  ;;  %v6205_v44 = vpack.c.bf16 %v5048_v59, %v5046_v16  ;;  %v1256_v57 = vmul.f32 1.442695, %v1137_v27  ;;  %v1244_v16 = vmul.f32 1.442695, %v1131_v13 }
 0x348   :  { %v5052_v36 = vpop.eup %5051  ;;  %5063 = vpow2.f32 %v1222_v40  ;;  %v1125_v28 = vsub.f32 %v5943_v48, %v6074_v41  ;;  %v1119_v23 = vsub.f32 %v5931_v19, %v6074_v41  ;;  %v1228_v62 = vmul.f32 1.442695, %v1123_v25  ;;  %v8202_v19 = vld [vmem:[#allocation30_spill] sm:$0xff]  ;;  %v4552_v25 = vld [vmem:[#allocation4 + $0x40] sm:$0xf] }
 0x349   :  { %v5054_v35 = vpop.eup %5053  ;;  %5065 = vpow2.f32 %v1148_v56  ;;  %v6212_v42 = vpack.c.bf16 %v5052_v36, %v5050_v6  ;;  %v1248_v56 = vmul.f32 1.442695, %v1133_v43  ;;  %v1240_v36 = vmul.f32 1.442695, %v1129_v31 }
 0x34a   :  { %v5056_v52 = vpop.eup %5055  ;;  %5067 = vpow2.f32 %v1152_v18  ;;  %v1121_v48 = vsub.f32 %v5935_v21, %v6074_v41  ;;  %v1117_v27 = vsub.f32 %v8202_v19, %v6074_v41 }
 0x34b   :  { %1334 = vmatpush.bf16.msrb.mxu2 %v6177_v39  ;;  %v5058_v47 = vpop.eup %5057  ;;  %5069 = vpow2.f32 %v1210_v26  ;;  %1323 = vmatpush.bf16.msra.mxu3 %v6205_v44  ;;  %v6216_v58 = vpack.c.bf16 %v5056_v52, %v5054_v35  ;;  %v1236_v26 = vmul.f32 1.442695, %v1127_v17 }
 0x34c   :  { %v5060_v1 = vpop.eup %5059  ;;  %5071 = vpow2.f32 %v1214_v20  ;;  %v1216_v13 = vmul.f32 1.442695, %v1117_v27 }
 0x34d   :  { %v5062_v30 = vpop.eup %5061  ;;  %5073 = vpow2.f32 %v1268_v11  ;;  %v6222_v22 = vpack.c.bf16 %v5060_v1, %v5058_v47  ;;  %v1232_v11 = vmul.f32 1.442695, %v1125_v28 }
 0x34e   :  { %v5064_v54 = vpop.eup %5063  ;;  %5075 = vpow2.f32 %v1260_v12  ;;  %v1115_v12 = vsub.f32 %v8201_v2, %v6074_v41  ;;  %v1632_v2 = vpop.trf.xlu0 }
 0x34f   :  { %1335 = vmatpush.bf16.msrb.mxu2 %v6191_v53  ;;  %v5066_v63 = vpop.eup %5065  ;;  %1324 = vmatpush.bf16.msra.mxu3 %v6216_v58  ;;  %5077 = vpow2.f32 %v1264_v37  ;;  %v6226_v24 = vpack.c.bf16 %v5064_v54, %v5062_v30  ;;  %v1220_v30 = vmul.f32 1.442695, %v1119_v23  ;;  %v1224_v37 = vmul.f32 1.442695, %v1121_v48  ;;  %v4908_v23 = vld [vmem:[#allocation4 + $0x44] sm:$0xf] }
 0x350   :  { %v5068_v60 = vpop.eup %5067  ;;  %5079 = vpow2.f32 %v1252_v14 }
 0x351   :  { %v5070_v38 = vpop.eup %5069  ;;  %v6232_v3 = vpack.c.bf16 %v5068_v60, %v5066_v63  ;;  %5081 = vpow2.f32 %v1256_v57  ;;  %v1212_v60 = vmul.f32 1.442695, %v1115_v12 }
 0x352   :  { %v5072_v49 = vpop.eup %5071  ;;  %5083 = vpow2.f32 %v1244_v16 }
 0x353   :  { %1336 = vmatpush.bf16.msrb.mxu2 %v6201_v51  ;;  %v5074_v40 = vpop.eup %5073  ;;  %1325 = vmatpush.bf16.msra.mxu3 %v6226_v24  ;;  %v6236_v59 = vpack.c.bf16 %v5072_v49, %v5070_v38  ;;  %5085 = vpow2.f32 %v1248_v56  ;;  %v4544_v56 = vld [vmem:[#allocation4] sm:$0xf] }
 0x354   :  { %v5076_v18 = vpop.eup %5075  ;;  %v6239_v6 = vpack.c.bf16 %v6124_v50, %v5074_v40  ;;  %5087 = vpow2.f32 %v1236_v26  ;;  %v4909_v26 = vld [vmem:[#allocation4 + $0x5c] sm:$0xf0] }
 0x355   :  { %v5078_v15 = vpop.eup %5077  ;;  %5089 = vpow2.f32 %v1240_v36  ;;  %v4553_v28 = vor.u32 %v4909_v26, %v4552_v25  ;;  %v4906_v36 = vld [vmem:[#allocation4 + $0x4] sm:$0xf] }
 0x356   :  { %v5080_v50 = vpop.eup %5079  ;;  %v6250_v20 = vpack.c.bf16 %v5078_v15, %v5076_v18  ;;  %5091 = vpow2.f32 %v1228_v62  ;;  %v4907_v18 = vld [vmem:[#allocation4 + $0x1c] sm:$0xf0]  ;;  %v4554_v62 = vld [vmem:[#allocation4 + $0x60] sm:$0xf0]  ;;  %v6345_v19 = vpop.trf.xlu0 }
 0x357   :  { %1337 = vmatpush.bf16.msrb.mxu2 %v6212_v42  ;;  %1326 = vmatpush.bf16.msra.mxu3 %v6236_v59  ;;  %v5082_v35 = vpop.eup %5081  ;;  %5093 = vpow2.f32 %v1232_v11  ;;  %v4545_v15 = vor.u32 %v4907_v18, %v4544_v56  ;;  %v4557_v48 = vor.u32 %v4908_v23, %v4554_v62 }
 0x358   :  { %v5084_v52 = vpop.eup %5083  ;;  %v6259_v47 = vpack.c.bf16 %v5082_v35, %v5080_v50  ;;  %5095 = vpow2.f32 %v1220_v30  ;;  %v4546_v50 = vld [vmem:[#allocation4 + $0x20] sm:$0xf0] }
 0x359   :  { %v5086_v1 = vpop.eup %5085  ;;  %5097 = vpow2.f32 %v1224_v37  ;;  %v4549_v35 = vor.u32 %v4906_v36, %v4546_v50 }
 0x35a   :  { %1327 = vmatmul.bf16.vlgmr.msra.gmra.mxu3 %v8119_v46  ;;  %v5088_v21 = vpop.eup %5087  ;;  %v6267_v54 = vpack.c.bf16 %v5086_v1, %v5084_v52  ;;  %5099 = vpow2.f32 %v1212_v60  ;;  %v4914_v52 = vld [vmem:[#allocation2 + $0xc] sm:$0xf] }
 0x35b   :  { %1338 = vmatpush.bf16.msrb.mxu2 %v6222_v22  ;;  %1345 = vmatpush.bf16.msrb.mxu3 %v6239_v6  ;;  %v5090_v63 = vpop.eup %5089  ;;  %5101 = vpow2.f32 %v1216_v13 }
 0x35c   :  { %v5092_v14 = vpop.eup %5091  ;;  %v6271_v38 = vpack.c.bf16 %v5090_v63, %v5088_v21 }
 0x35d   :  { %v5094_v43 = vpop.eup %5093 }
 0x35e   :  { %v5096_v41 = vpop.eup %5095  ;;  %v6275_v57 = vpack.c.bf16 %v5094_v43, %v5092_v14  ;;  %v1634_v21 = vpop.trf.xlu0 }
 0x35f   :  { %1339 = vmatpush.bf16.msrb.mxu2 %v6232_v3  ;;  %1346 = vmatpush.bf16.msrb.mxu3 %v6250_v20  ;;  %v5098_v49 = vpop.eup %5097 }
 0x360   :  { %v5100_v40 = vpop.eup %5099  ;;  %v6279_v17 = vpack.c.bf16 %v5098_v49, %v5096_v41 }
 0x361   :  { %v5102_v16 = vpop.eup %5101 }
 0x362   :  { %1340 = vmatmul.bf16.vlgmr.msrb.gmra.mxu2 %v8119_v46  ;;  %v6283_v31 = vpack.c.bf16 %v5102_v16, %v5100_v40 }
 0x363   :  { %1388 = vmatpush.bf16.msra.mxu2 %v6067_v45  ;;  %1347 = vmatpush.bf16.msrb.mxu3 %v6259_v47 }
 0x366   :  { %v6348_v60 = vpop.trf.xlu0 }
 0x367   :  { %1389 = vmatpush.bf16.msra.mxu2 %v6076_v34  ;;  %1348 = vmatpush.bf16.msrb.mxu3 %v6267_v54 }
 0x36b   :  { %1390 = vmatpush.bf16.msra.mxu2 %v6087_v55  ;;  %1349 = vmatpush.bf16.msrb.mxu3 %v6271_v38 }
 0x36e   :  { %v1636_v14 = vpop.trf.xlu0 }
 0x36f   :  { %1391 = vmatpush.bf16.msra.mxu2 %v6098_v4  ;;  %1350 = vmatpush.bf16.msrb.mxu3 %v6275_v57 }
 0x373   :  { %1392 = vmatpush.bf16.msra.mxu2 %v6109_v5  ;;  %1351 = vmatpush.bf16.msrb.mxu3 %v6279_v17 }
 0x377   :  { %1393 = vmatpush.bf16.msra.mxu2 %v6120_v8  ;;  %1352 = vmatpush.bf16.msrb.mxu3 %v6283_v31 }
 0x37a   :  { %1353 = vmatmul.bf16.vlgmr.msrb.gmra.mxu3 %v8119_v46 }
 0x37b   :  { %1394 = vmatpush.bf16.msra.mxu2 %v6133_v0  ;;  %1407 = vmatpush.bf16.msra.mxu3 %v6152_v33 }
 0x37f   :  { %1395 = vmatpush.bf16.msra.mxu2 %v6144_v61  ;;  %1408 = vmatpush.bf16.msra.mxu3 %v6167_v10 }
 0x382   :  { %1396 = vmatmul.bf16.vlgmr.msra.gmra.mxu2 %v4545_v15 }
 0x383   :  { %1426 = vmatpush.bf16.msrb.mxu2 %v6148_v32  ;;  %1409 = vmatpush.bf16.msra.mxu3 %v6181_v9 }
 0x387   :  { %1427 = vmatpush.bf16.msrb.mxu2 %v6163_v7  ;;  %1410 = vmatpush.bf16.msra.mxu3 %v6195_v29 }
 0x38b   :  { %1428 = vmatpush.bf16.msrb.mxu2 %v6177_v39  ;;  %1411 = vmatpush.bf16.msra.mxu3 %v6205_v44 }
 0x38f   :  { %1429 = vmatpush.bf16.msrb.mxu2 %v6191_v53  ;;  %1412 = vmatpush.bf16.msra.mxu3 %v6216_v58 }
 0x392   :  { %1401 = vmatmul.bf16.gmra.mxu2 %v4553_v28 }
 0x393   :  { %1430 = vmatpush.bf16.msrb.mxu2 %v6201_v51  ;;  %1413 = vmatpush.bf16.msra.mxu3 %v6226_v24 }
 0x397   :  { %1431 = vmatpush.bf16.msrb.mxu2 %v6212_v42  ;;  %1414 = vmatpush.bf16.msra.mxu3 %v6236_v59 }
 0x39a   :  { %1415 = vmatmul.bf16.vlgmr.msra.gmra.mxu3 %v4549_v35 }
 0x39b   :  { %1432 = vmatpush.bf16.msrb.mxu2 %v6222_v22  ;;  %1445 = vmatpush.bf16.msrb.mxu3 %v6239_v6 }
 0x39f   :  { %1433 = vmatpush.bf16.msrb.mxu2 %v6232_v3  ;;  %1446 = vmatpush.bf16.msrb.mxu3 %v6250_v20 }
 0x3a2   :  { %1434 = vmatmul.bf16.vlgmr.msrb.gmra.mxu2 %v4545_v15 }
 0x3a3   :  { %1484 = vmatpush.bf16.msra.mxu2 %v6067_v45  ;;  %1447 = vmatpush.bf16.msrb.mxu3 %v6259_v47  ;;  %v4560_v45 = vld [vmem:[#allocation7] sm:$0xf] }
 0x3a7   :  { %1485 = vmatpush.bf16.msra.mxu2 %v6076_v34  ;;  %1448 = vmatpush.bf16.msrb.mxu3 %v6267_v54  ;;  %v4911_v34 = vld [vmem:[#allocation7 + $0x1c] sm:$0xf0] }
 0x3aa   :  { %1420 = vmatmul.bf16.gmra.mxu3 %v4557_v48 }
 0x3ab   :  { %1486 = vmatpush.bf16.msra.mxu2 %v6087_v55  ;;  %1449 = vmatpush.bf16.msrb.mxu3 %v6271_v38  ;;  %v4561_v55 = vor.u32 %v4911_v34, %v4560_v45 }
 0x3af   :  { %1487 = vmatpush.bf16.msra.mxu2 %v6098_v4  ;;  %1450 = vmatpush.bf16.msrb.mxu3 %v6275_v57  ;;  %v4568_v4 = vld [vmem:[#allocation7 + $0x40] sm:$0xf] }
 0x3b2   :  { %1439 = vmatmul.bf16.gmra.mxu2 %v4553_v28 }
 0x3b3   :  { %1488 = vmatpush.bf16.msra.mxu2 %v6109_v5  ;;  %1451 = vmatpush.bf16.msrb.mxu3 %v6279_v17  ;;  %v4913_v5 = vld [vmem:[#allocation7 + $0x5c] sm:$0xf0] }
 0x3b7   :  { %1489 = vmatpush.bf16.msra.mxu2 %v6120_v8  ;;  %1452 = vmatpush.bf16.msrb.mxu3 %v6283_v31  ;;  %v4569_v8 = vor.u32 %v4913_v5, %v4568_v4 }
 0x3ba   :  { %1453 = vmatmul.bf16.vlgmr.msrb.gmra.mxu3 %v4549_v35 }
 0x3bb   :  { %1490 = vmatpush.bf16.msra.mxu2 %v6133_v0  ;;  %1503 = vmatpush.bf16.msra.mxu3 %v6152_v33  ;;  %v4600_v0 = vld [vmem:[#allocation2 + $0x48] sm:$0xf] }
 0x3bc   :  { %v4592_v33 = vld [vmem:[#allocation2 + $0x8] sm:$0xf] }
 0x3bf   :  { %1491 = vmatpush.bf16.msra.mxu2 %v6144_v61  ;;  %1504 = vmatpush.bf16.msra.mxu3 %v6167_v10  ;;  %v4917_v61 = vld [vmem:[#allocation2 + $0x64] sm:$0xf0]  ;;  %v4910_v10 = vld [vmem:[#allocation7 + $0x4] sm:$0xf] }
 0x3c2   :  { %1492 = vmatmul.bf16.vlgmr.msra.gmra.mxu2 %v4561_v55 }
 0x3c3   :  { %1522 = vmatpush.bf16.msrb.mxu2 %v6148_v32  ;;  %1505 = vmatpush.bf16.msra.mxu3 %v6181_v9  ;;  %v4601_v32 = vor.u32 %v4917_v61, %v4600_v0 }
 0x3c7   :  { %1523 = vmatpush.bf16.msrb.mxu2 %v6163_v7  ;;  %1506 = vmatpush.bf16.msra.mxu3 %v6195_v29  ;;  %v4915_v7 = vld [vmem:[#allocation2 + $0x24] sm:$0xf0] }
 0x3c8   :  { %v4593_v9 = vor.u32 %v4915_v7, %v4592_v33 }
 0x3ca   :  { %1458 = vmatmul.bf16.gmra.mxu3 %v4557_v48 }
 0x3cb   :  { %1524 = vmatpush.bf16.msrb.mxu2 %v6177_v39  ;;  %1507 = vmatpush.bf16.msra.mxu3 %v6205_v44  ;;  %v4562_v39 = vld [vmem:[#allocation7 + $0x20] sm:$0xf0] }
 0x3cc   :  { %v4565_v29 = vor.u32 %v4910_v10, %v4562_v39  ;;  %v4912_v44 = vld [vmem:[#allocation7 + $0x44] sm:$0xf] }
 0x3cf   :  { %1525 = vmatpush.bf16.msrb.mxu2 %v6191_v53  ;;  %1508 = vmatpush.bf16.msra.mxu3 %v6216_v58  ;;  %v1315_v53 = vpop.f32.mrf.mxu2 }
 0x3d2   :  { %1497 = vmatmul.bf16.gmra.mxu2 %v4569_v8 }
 0x3d3   :  { %1526 = vmatpush.bf16.msrb.mxu2 %v6201_v51  ;;  %1509 = vmatpush.bf16.msra.mxu3 %v6226_v24 }
 0x3d7   :  { %1527 = vmatpush.bf16.msrb.mxu2 %v6212_v42  ;;  %1510 = vmatpush.bf16.msra.mxu3 %v6236_v59  ;;  %v1317_v51 = vpop.f32.mrf.mxu2  ;;  %v4570_v42 = vld [vmem:[#allocation7 + $0x60] sm:$0xf0]  ;;  %v4602_v59 = vld [vmem:[#allocation2 + $0x68] sm:$0xf0] }
 0x3d8   :  { %v4573_v24 = vor.u32 %v4912_v44, %v4570_v42 }
 0x3da   :  { %1511 = vmatmul.bf16.vlgmr.msra.gmra.mxu3 %v4565_v29 }
 0x3db   :  { %1528 = vmatpush.bf16.msrb.mxu2 %v6222_v22  ;;  %1541 = vmatpush.bf16.msrb.mxu3 %v6239_v6 }
 0x3dd   :  { %v1328_v58 = vpop.f32.mrf.mxu3 }
 0x3de   :  { %v1329_v63 = vadd.f32 %v1328_v58, %v1315_v53 }
 0x3df   :  { %1529 = vmatpush.bf16.msrb.mxu2 %v6232_v3  ;;  %1542 = vmatpush.bf16.msrb.mxu3 %v6250_v20  ;;  %v4916_v3 = vld [vmem:[#allocation2 + $0x4c] sm:$0xf] }
 0x3e0   :  { %v4605_v11 = vor.u32 %v4916_v3, %v4602_v59  ;;  %5103 = vrcp.f32 %v1329_v63 }
 0x3e2   :  { %1530 = vmatmul.bf16.vlgmr.msrb.gmra.mxu2 %v4561_v55 }
 0x3e3   :  { %1722 = vmatpush.bf16.msra.mxu2 %v4601_v32  ;;  %1543 = vmatpush.bf16.msrb.mxu3 %v6259_v47  ;;  %v4594_v47 = vld [vmem:[#allocation2 + $0x28] sm:$0xf0] }
 0x3e4   :  { %v4597_v1 = vor.u32 %v4914_v52, %v4594_v47 }
 0x3e5   :  { %v1341_v22 = vpop.f32.mrf.mxu2  ;;  %v1330_v6 = vpop.f32.mrf.mxu3 }
 0x3e7   :  { %1723 = vmatpush.bf16.msra.mxu2 %v4593_v9  ;;  %1544 = vmatpush.bf16.msrb.mxu3 %v6267_v54 }
 0x3ea   :  { %1516 = vmatmul.bf16.gmra.mxu3 %v4573_v24 }
 0x3eb   :  { %1545 = vmatpush.bf16.msrb.mxu3 %v6271_v38  ;;  %v5104_v38 = vpop.eup %5103 }
 0x3ec   :  { %v6352_v41 = vperm.slane %v5104_v38, 0 }
 0x3ed   :  { %v1343_v20 = vpop.f32.mrf.mxu2 }
 0x3ef   :  { %1546 = vmatpush.bf16.msrb.mxu3 %v6275_v57 }
 0x3f2   :  { %1535 = vmatmul.bf16.gmra.mxu2 %v4569_v8 }
 0x3f3   :  { %1547 = vmatpush.bf16.msrb.mxu3 %v6279_v17  ;;  %v6355_v17 = vpop.trf.xlu0 }
 0x3f7   :  { %1548 = vmatpush.bf16.msrb.mxu3 %v6283_v31 }
 0x3fa   :  { %1549 = vmatmul.bf16.vlgmr.msrb.gmra.mxu3 %v4565_v29 }
 0x3fb   :  { %1811 = vmatpush.bf16.msra.mxu3 %v4605_v11  ;;  %v1638_v15 = vpop.trf.xlu0 }
 0x3fd   :  { %v1354_v30 = vpop.f32.mrf.mxu3 }
 0x3fe   :  { %v1355_v50 = vadd.f32 %v1354_v30, %v1341_v22 }
 0x3ff   :  { %1812 = vmatpush.bf16.msra.mxu3 %v4597_v1 }
 0x400   :  { %5105 = vrcp.f32 %v1355_v50 }
 0x402   :  { %4606 = vmatmul.msk.bf16.vlgmr.msra.gmra.mxu2 %vm195_vm0, %v1632_v2 }
 0x403   :  { %v6361_v35 = vpop.trf.xlu0 }
 0x405   :  { %v1397_v12 = vpop.f32.mrf.mxu2  ;;  %v1356_v37 = vpop.f32.mrf.mxu3 }
 0x406   :  { %v5106_v55 = vpop.eup %5105 }
 0x407   :  { %v6366_v5 = vperm.slane %v5106_v55, 0 }
 0x40a   :  { %1554 = vmatmul.bf16.gmra.mxu3 %v4573_v24 }
 0x40b   :  { %v1640_v34 = vpop.trf.xlu0 }
 0x40d   :  { %v1399_v27 = vpop.f32.mrf.mxu2 }
 0x412   :  { %4607 = vmatmul.msk.bf16.gmra.mxu2 %vm195_vm0, %v1634_v21 }
 0x413   :  { %v6369_v32 = vpop.trf.xlu0 }
 0x415   :  { %v1402_v54 = vpop.f32.mrf.mxu2 }
 0x41a   :  { %4622 = vmatmul.msk.bf16.vlgmr.msra.gmra.mxu3 %vm195_vm0, %v1632_v2 }
 0x41b   :  { %v1642_v9 = vpop.trf.xlu0 }
 0x41d   :  { %v1404_v13 = vpop.f32.mrf.mxu2  ;;  %v1416_v43 = vpop.f32.mrf.mxu3 }
 0x41e   :  { %v1417_v57 = vadd.f32 %v1416_v43, %v1397_v12 }
 0x420   :  { %v1562_v40 = vmul.f32 %v6352_v41, %v1417_v57 }
 0x422   :  { %4608 = vmatmul.msk.bf16.gmra.mxu2 %vm195_vm0, %v1636_v14  ;;  %1570 = vst [vmem:[#allocation9] sm:$0xff] %v1562_v40 }
 0x423   :  { %v6375_v42 = vpop.trf.xlu0 }
 0x425   :  { %v1435_v49 = vpop.f32.mrf.mxu2  ;;  %v1418_v16 = vpop.f32.mrf.mxu3 }
 0x426   :  { %v1419_v31 = vadd.f32 %v1418_v16, %v1399_v27 }
 0x428   :  { %v1564_v18 = vmul.f32 %v6352_v41, %v1419_v31 }
 0x42a   :  { %1572 = vst [vmem:[#allocation9 + $0x40] sm:$0xff] %v1564_v18  ;;  %4623 = vmatmul.msk.bf16.gmra.mxu3 %vm195_vm0, %v1634_v21 }
 0x42b   :  { %v1644_v59 = vpop.trf.xlu0 }
 0x42d   :  { %v1437_v56 = vpop.f32.mrf.mxu2  ;;  %v1421_v25 = vpop.f32.mrf.mxu3 }
 0x42e   :  { %v1422_v26 = vadd.f32 %v1421_v25, %v1402_v54 }
 0x430   :  { %v1566_v36 = vmul.f32 %v6352_v41, %v1422_v26 }
 0x432   :  { %4609 = vmatmul.msk.bf16.gmra.mxu2 %vm195_vm0, %v1638_v15  ;;  %1574 = vst [vmem:[#allocation9 + $0x80] sm:$0xff] %v1566_v36 }
 0x433   :  { %v6381_v47 = vpop.trf.xlu0 }
 0x435   :  { %v1440_v28 = vpop.f32.mrf.mxu2  ;;  %v1423_v23 = vpop.f32.mrf.mxu3 }
 0x436   :  { %v1424_v62 = vadd.f32 %v1423_v23, %v1404_v13 }
 0x438   :  { %v1568_v45 = vmul.f32 %v6352_v41, %v1424_v62 }
 0x43a   :  { %1576 = vst [vmem:[#allocation9 + $0xc0] sm:$0xff] %v1568_v45  ;;  %4624 = vmatmul.msk.bf16.gmra.mxu3 %vm195_vm0, %v1636_v14 }
 0x43b   :  { %v1646_v27 = vpop.trf.xlu0 }
 0x43d   :  { %v1442_v48 = vpop.f32.mrf.mxu2  ;;  %v1454_v4 = vpop.f32.mrf.mxu3 }
 0x43e   :  { %v1455_v8 = vadd.f32 %v1454_v4, %v1435_v49 }
 0x440   :  { %v1563_v61 = vmul.f32 %v6366_v5, %v1455_v8 }
 0x442   :  { %4610 = vmatmul.msk.bf16.gmra.mxu2 %vm195_vm0, %v1640_v34  ;;  %1571 = vst [vmem:[#allocation9 + $0x8] sm:$0xff] %v1563_v61 }
 0x445   :  { %v1493_v0 = vpop.f32.mrf.mxu2  ;;  %v1456_v33 = vpop.f32.mrf.mxu3 }
 0x446   :  { %v1457_v7 = vadd.f32 %v1456_v33, %v1437_v56 }
 0x448   :  { %v1565_v39 = vmul.f32 %v6366_v5, %v1457_v7 }
 0x44a   :  { %1573 = vst [vmem:[#allocation9 + $0x48] sm:$0xff] %v1565_v39  ;;  %4625 = vmatmul.msk.bf16.gmra.mxu3 %vm195_vm0, %v1638_v15 }
 0x44d   :  { %v1495_v10 = vpop.f32.mrf.mxu2  ;;  %v1459_v53 = vpop.f32.mrf.mxu3 }
 0x44e   :  { %v1460_v29 = vadd.f32 %v1459_v53, %v1440_v28 }
 0x450   :  { %v1567_v44 = vmul.f32 %v6366_v5, %v1460_v29 }
 0x452   :  { %4611 = vmatmul.msk.bf16.gmra.mxu2 %vm195_vm0, %v1642_v9  ;;  %1575 = vst [vmem:[#allocation9 + $0x88] sm:$0xff] %v1567_v44 }
 0x455   :  { %v1498_v51 = vpop.f32.mrf.mxu2  ;;  %v1461_v58 = vpop.f32.mrf.mxu3 }
 0x456   :  { %v1462_v22 = vadd.f32 %v1461_v58, %v1442_v48 }
 0x458   :  { %v1569_v3 = vmul.f32 %v6366_v5, %v1462_v22 }
 0x45a   :  { %1577 = vst [vmem:[#allocation9 + $0xc8] sm:$0xff] %v1569_v3  ;;  %4626 = vmatmul.msk.bf16.gmra.mxu3 %vm195_vm0, %v1640_v34 }
 0x45d   :  { %v1500_v24 = vpop.f32.mrf.mxu2  ;;  %v1512_v6 = vpop.f32.mrf.mxu3 }
 0x45e   :  { %v1513_v20 = vadd.f32 %v1512_v6, %v1493_v0 }
 0x460   :  { %v1578_v52 = vmul.f32 %v6352_v41, %v1513_v20 }
 0x462   :  { %4612 = vmatmul.msk.bf16.gmra.mxu2 %vm195_vm0, %v1644_v59  ;;  %1586 = vst [vmem:[#allocation10] sm:$0xff] %v1578_v52 }
 0x465   :  { %v1531_v11 = vpop.f32.mrf.mxu2  ;;  %v1514_v1 = vpop.f32.mrf.mxu3 }
 0x466   :  { %v1515_v2 = vadd.f32 %v1514_v1, %v1495_v10 }
 0x468   :  { %v1580_v30 = vmul.f32 %v6352_v41, %v1515_v2 }
 0x46a   :  { %1588 = vst [vmem:[#allocation10 + $0x40] sm:$0xff] %v1580_v30  ;;  %4627 = vmatmul.msk.bf16.gmra.mxu3 %vm195_vm0, %v1642_v9 }
 0x46d   :  { %v1533_v12 = vpop.f32.mrf.mxu2  ;;  %v1517_v37 = vpop.f32.mrf.mxu3 }
 0x46e   :  { %v1518_v21 = vadd.f32 %v1517_v37, %v1498_v51  ;;  %v1647_v51 = vpop.trf.xlu0 }
 0x470   :  { %v1582_v63 = vmul.f32 %v6352_v41, %v1518_v21 }
 0x472   :  { %4613 = vmatmul.msk.bf16.gmra.mxu2 %vm195_vm0, %v1646_v27  ;;  %1590 = vst [vmem:[#allocation10 + $0x80] sm:$0xff] %v1582_v63 }
 0x475   :  { %v1536_v54 = vpop.f32.mrf.mxu2  ;;  %v1519_v13 = vpop.f32.mrf.mxu3 }
 0x476   :  { %v1520_v14 = vadd.f32 %v1519_v13, %v1500_v24 }
 0x478   :  { %v1584_v43 = vmul.f32 %v6352_v41, %v1520_v14 }
 0x47a   :  { %1592 = vst [vmem:[#allocation10 + $0xc0] sm:$0xff] %v1584_v43  ;;  %4628 = vmatmul.msk.bf16.gmra.mxu3 %vm195_vm0, %v1644_v59 }
 0x47d   :  { %v1538_v38 = vpop.f32.mrf.mxu2  ;;  %v1550_v57 = vpop.f32.mrf.mxu3 }
 0x47e   :  { %v1551_v49 = vadd.f32 %v1550_v57, %v1531_v11 }
 0x480   :  { %v1579_v16 = vmul.f32 %v6366_v5, %v1551_v49 }
 0x482   :  { %4614 = vmatmul.msk.bf16.gmra.mxu2 %vm195_vm0, %v6345_v19  ;;  %1587 = vst [vmem:[#allocation10 + $0x8] sm:$0xff] %v1579_v16 }
 0x485   :  { %v6391_v40 = vpop.f32.mrf.mxu2  ;;  %v1552_v31 = vpop.f32.mrf.mxu3 }
 0x486   :  { %8203 = vst [vmem:[#allocation31_spill] sm:$0xff] %v6391_v40  ;;  %v1553_v56 = vadd.f32 %v1552_v31, %v1533_v12 }
 0x488   :  { %v1581_v15 = vmul.f32 %v6366_v5, %v1553_v56 }
 0x48a   :  { %1589 = vst [vmem:[#allocation10 + $0x48] sm:$0xff] %v1581_v15  ;;  %4629 = vmatmul.msk.bf16.gmra.mxu3 %vm195_vm0, %v1646_v27 }
 0x48d   :  { %v6394_v18 = vpop.f32.mrf.mxu2  ;;  %v1555_v41 = vpop.f32.mrf.mxu3 }
 0x48e   :  { %8204 = vst [vmem:[#allocation23_spill] sm:$0xff] %v6394_v18  ;;  %v1556_v25 = vadd.f32 %v1555_v41, %v1536_v54 }
 0x490   :  { %v1583_v28 = vmul.f32 %v6366_v5, %v1556_v25 }
 0x492   :  { %4615 = vmatmul.msk.bf16.gmra.mxu2 %vm195_vm0, %v6348_v60  ;;  %1591 = vst [vmem:[#allocation10 + $0x88] sm:$0xff] %v1583_v28 }
 0x495   :  { %v6400_v26 = vpop.f32.mrf.mxu2  ;;  %v1557_v36 = vpop.f32.mrf.mxu3 }
 0x496   :  { %8205 = vst [vmem:[#allocation24_spill] sm:$0xff] %v6400_v26  ;;  %v1558_v50 = vadd.f32 %v1557_v36, %v1538_v38  ;;  %v1894_v41 = vmax.f32 %v6391_v40, %v6400_v26 }
 0x498   :  { %v1585_v62 = vmul.f32 %v6366_v5, %v1558_v50 }
 0x49a   :  { %1593 = vst [vmem:[#allocation10 + $0xc8] sm:$0xff] %v1585_v62  ;;  %4630 = vmatmul.msk.bf16.gmra.mxu3 %vm195_vm0, %v6345_v19 }
 0x49d   :  { %v6403_v23 = vpop.f32.mrf.mxu2  ;;  %v6410_v48 = vpop.f32.mrf.mxu3 }
 0x49e   :  { %8206 = vst [vmem:[#allocation20_spill] sm:$0xff] %v6403_v23  ;;  %v1895_v15 = vmax.f32 %v6394_v18, %v6403_v23 }
 0x49f   :  { %8207 = vst [vmem:[#allocation21_spill] sm:$0xff] %v6410_v48 }
 0x4a2   :  { %4616 = vmatmul.msk.bf16.gmra.mxu2 %vm195_vm0, %v6355_v17 }
 0x4a5   :  { %v6412_v45 = vpop.f32.mrf.mxu2  ;;  %v6414_v34 = vpop.f32.mrf.mxu3 }
 0x4a6   :  { %8208 = vst [vmem:[#allocation16_spill] sm:$0xff] %v6414_v34  ;;  %v1896_v28 = vmax.f32 %v1894_v41, %v6412_v45 }
 0x4aa   :  { %4631 = vmatmul.msk.bf16.gmra.mxu3 %vm195_vm0, %v6348_v60 }
 0x4ad   :  { %v6416_v55 = vpop.f32.mrf.mxu2  ;;  %v6422_v4 = vpop.f32.mrf.mxu3 }
 0x4ae   :  { %8209 = vst [vmem:[#allocation18_spill] sm:$0xff] %v6416_v55  ;;  %v1897_v25 = vmax.f32 %v1895_v15, %v6416_v55 }
 0x4b2   :  { %4617 = vmatmul.msk.bf16.gmra.mxu2 %vm195_vm0, %v6361_v35 }
 0x4b5   :  { %v6424_v19 = vpop.f32.mrf.mxu2  ;;  %v6426_v5 = vpop.f32.mrf.mxu3 }
 0x4b6   :  { %v1898_v62 = vmax.f32 %v1896_v28, %v6424_v19 }
 0x4ba   :  { %4632 = vmatmul.msk.bf16.gmra.mxu3 %vm195_vm0, %v6355_v17 }
 0x4bd   :  { %v6428_v8 = vpop.f32.mrf.mxu2  ;;  %v6434_v0 = vpop.f32.mrf.mxu3 }
 0x4be   :  { %v1899_v36 = vmax.f32 %v1897_v25, %v6428_v8 }
 0x4c2   :  { %4618 = vmatmul.msk.bf16.gmra.mxu2 %vm195_vm0, %v6369_v32 }
 0x4c5   :  { %v6436_v60 = vpop.f32.mrf.mxu2  ;;  %v6438_v61 = vpop.f32.mrf.mxu3 }
 0x4ca   :  { %4633 = vmatmul.msk.bf16.gmra.mxu3 %vm195_vm0, %v6361_v35 }
 0x4cd   :  { %v6440_v33 = vpop.f32.mrf.mxu2  ;;  %v6446_v7 = vpop.f32.mrf.mxu3 }
 0x4d2   :  { %4619 = vmatmul.msk.bf16.gmra.mxu2 %vm195_vm0, %v6375_v42 }
 0x4d5   :  { %v6448_v17 = vpop.f32.mrf.mxu2  ;;  %v6450_v10 = vpop.f32.mrf.mxu3 }
 0x4da   :  { %4634 = vmatmul.msk.bf16.gmra.mxu3 %vm195_vm0, %v6369_v32 }
 0x4dd   :  { %v6452_v39 = vpop.f32.mrf.mxu2  ;;  %v6458_v9 = vpop.f32.mrf.mxu3 }
 0x4e2   :  { %4620 = vmatmul.msk.bf16.gmra.mxu2 %vm195_vm0, %v6381_v47 }
 0x4e5   :  { %v6460_v35 = vpop.f32.mrf.mxu2  ;;  %v6462_v53 = vpop.f32.mrf.mxu3 }
 0x4ea   :  { %4635 = vmatmul.msk.bf16.gmra.mxu3 %vm195_vm0, %v6375_v42 }
 0x4ed   :  { %v6464_v29 = vpop.f32.mrf.mxu2  ;;  %v6469_v44 = vpop.f32.mrf.mxu3 }
 0x4f2   :  { %4621 = vmatmul.msk.bf16.gmra.mxu2 %vm195_vm0, %v1647_v51 }
 0x4f5   :  { %v6471_v32 = vpop.f32.mrf.mxu2  ;;  %v6473_v58 = vpop.f32.mrf.mxu3 }
 0x4fa   :  { %4636 = vmatmul.msk.bf16.gmra.mxu3 %vm195_vm0, %v6381_v47 }
 0x4fd   :  { %v6475_v22 = vpop.f32.mrf.mxu2  ;;  %v6479_v24 = vpop.f32.mrf.mxu3 }
 0x505   :  { %v6481_v3 = vpop.f32.mrf.mxu2  ;;  %v6483_v59 = vpop.f32.mrf.mxu3 }
 0x506   :  { %8210 = vst [vmem:[#allocation22_spill] sm:$0xff] %v6481_v3 }
 0x50a   :  { %4637 = vmatmul.msk.bf16.gmra.mxu3 %vm195_vm0, %v1647_v51  ;;  %v1901_v51 = vmax.f32 %v1899_v36, %v6440_v33 }
 0x50c   :  { %v1903_v18 = vmax.f32 %v1901_v51, %v6452_v39 }
 0x50d   :  { %v6485_v42 = vpop.f32.mrf.mxu2  ;;  %v6488_v6 = vpop.f32.mrf.mxu3 }
 0x50e   :  { %8211 = vst [vmem:[#allocation28_spill] sm:$0xff] %v6485_v42  ;;  %v1905_v15 = vmax.f32 %v1903_v18, %v6464_v29 }
 0x510   :  { %v1907_v25 = vmax.f32 %v1905_v15, %v6475_v22 }
 0x512   :  { %v1909_v28 = vmax.f32 %v1907_v25, %v6485_v42 }
 0x515   :  { %v6490_v20 = vpop.f32.mrf.mxu2  ;;  %v6492_v11 = vpop.f32.mrf.mxu3 }
 0x516   :  { %8212 = vst [vmem:[#allocation29_spill] sm:$0xff] %v6490_v20 }
 0x51d   :  { %v6494_v52 = vpop.f32.mrf.mxu2  ;;  %v6496_v1 = vpop.f32.mrf.mxu3 }
 0x51e   :  { %8213 = vst [vmem:[#allocation17_spill] sm:$0xff] %v6494_v52 }
 0x51f   :  { %8214 = vst [vmem:[#allocation19_spill] sm:$0xff] %v6496_v1 }
 0x525   :  { %v6498_v47 = vpop.f32.mrf.mxu2  ;;  %v6500_v2 = vpop.f32.mrf.mxu3 }
 0x526   :  { %8215 = vst [vmem:[#allocation25_spill] sm:$0xff] %v6498_v47 }
 0x527   :  { %8216 = vst [vmem:[#allocation26_spill] sm:$0xff] %v6500_v2 }
 0x52d   :  { %v6502_v12 = vpop.f32.mrf.mxu2  ;;  %v6504_v30 = vpop.f32.mrf.mxu3 }
 0x52e   :  { %8217 = vst [vmem:[#allocation27_spill] sm:$0xff] %v6502_v12 }
 0x535   :  { %v6506_v27 = vpop.f32.mrf.mxu2  ;;  %v6508_v37 = vpop.f32.mrf.mxu3 }
 0x53d   :  { %v6510_v21 = vpop.f32.mrf.mxu2  ;;  %v6512_v54 = vpop.f32.mrf.mxu3 }
 0x545   :  { %v6514_v63 = vpop.f32.mrf.mxu2  ;;  %v6516_v13 = vpop.f32.mrf.mxu3 }
 0x54d   :  { %v6518_v14 = vpop.f32.mrf.mxu2  ;;  %v6520_v38 = vpop.f32.mrf.mxu3 }
 0x555   :  { %v6522_v43 = vpop.f32.mrf.mxu2  ;;  %v6524_v57 = vpop.f32.mrf.mxu3 }
 0x55d   :  { %v6526_v49 = vpop.f32.mrf.mxu2  ;;  %v6528_v16 = vpop.f32.mrf.mxu3 }
 0x55e   :  { %8218 = vst [vmem:[#allocation30_spill] sm:$0xff] %v6528_v16  ;;  %v1900_v16 = vmax.f32 %v1898_v62, %v6436_v60  ;;  %v1911_v62 = vmax.f32 %v1909_v28, %v6494_v52 }
 0x560   :  { %v1902_v40 = vmax.f32 %v1900_v16, %v6448_v17  ;;  %v1913_v18 = vmax.f32 %v1911_v62, %v6502_v12 }
 0x562   :  { %v1904_v41 = vmax.f32 %v1902_v40, %v6460_v35  ;;  %v1915_v51 = vmax.f32 %v1913_v18, %v6510_v21 }
 0x564   :  { %v1906_v23 = vmax.f32 %v1904_v41, %v6471_v32  ;;  %v1917_v41 = vmax.f32 %v1915_v51, %v6518_v14 }
 0x565   :  { %v6530_v31 = vpop.f32.mrf.mxu2  ;;  %v6532_v56 = vpop.f32.mrf.mxu3 }
 0x566   :  { %v1908_v36 = vmax.f32 %v1906_v23, %v6481_v3  ;;  %v1919_v23 = vmax.f32 %v1917_v41, %v6526_v49 }
 0x568   :  { %v1910_v16 = vmax.f32 %v1908_v36, %v6490_v20 }
 0x56a   :  { %v1912_v40 = vmax.f32 %v1910_v16, %v6498_v47 }
 0x56c   :  { %v1914_v15 = vmax.f32 %v1912_v40, %v6506_v27  ;;  %v1932_v40 = vmax.f32 %v6414_v34, %v6426_v5 }
 0x56d   :  { %v6541_v50 = vpop.f32.mrf.mxu2  ;;  %v6545_v46 = vpop.f32.mrf.mxu3 }
 0x56e   :  { %v1916_v25 = vmax.f32 %v1914_v15, %v6514_v63  ;;  %v1921_v36 = vmax.f32 %v1919_v23, %v6541_v50  ;;  %v1931_v15 = vmax.f32 %v6410_v48, %v6422_v4  ;;  %v1934_v41 = vmax.f32 %v1932_v40, %v6438_v61 }
 0x570   :  { %v1918_v28 = vmax.f32 %v1916_v25, %v6522_v43  ;;  %v1933_v25 = vmax.f32 %v1931_v15, %v6434_v0  ;;  %v1936_v23 = vmax.f32 %v1934_v41, %v6450_v10 }
 0x572   :  { %v1920_v62 = vmax.f32 %v1918_v28, %v6530_v31  ;;  %v1935_v28 = vmax.f32 %v1933_v25, %v6446_v7 }
 0x575   :  { %v6555_v26 = vpop.f32.mrf.mxu2  ;;  %v6559_v55 = vpop.f32.mrf.mxu3 }
 0x576   :  { %v1922_v18 = vmax.f32 %v1920_v62, %v6555_v26  ;;  %v1937_v62 = vmax.f32 %v1935_v28, %v6458_v9 }
 0x578   :  { %v1939_v34 = vmax.f32 %v1937_v62, %v6469_v44 }
 0x57a   :  { %v1941_v15 = vmax.f32 %v1939_v34, %v6479_v24 }
 0x57c   :  { %v1943_v12 = vmax.f32 %v1941_v15, %v6488_v6 }
 0x57d   :  { %v6569_v42 = vpop.f32.mrf.mxu2  ;;  %v6573_v3 = vpop.f32.mrf.mxu3 }
 0x57e   :  { %v1923_v16 = vmax.f32 %v1921_v36, %v6569_v42  ;;  %v1938_v36 = vmax.f32 %v1936_v23, %v6462_v53  ;;  %v1945_v23 = vmax.f32 %v1943_v12, %v6496_v1 }
 0x580   :  { %v1924_v51 = vmax.f32 %v1922_v18, %v1923_v16  ;;  %v1940_v16 = vmax.f32 %v1938_v36, %v6473_v58 }
 0x582   :  { %v1925_v52 = vrot.slane %v1924_v51, 4  ;;  %v1942_v40 = vmax.f32 %v1940_v16, %v6483_v59 }
 0x584   :  { %v1926_v18 = vmax.f32 %v1924_v51, %v1925_v52  ;;  %v1944_v41 = vmax.f32 %v1942_v40, %v6492_v11  ;;  %v1947_v51 = vmax.f32 %v1945_v23, %v6504_v30 }
 0x585   :  { %v6585_v20 = vpop.f32.mrf.mxu3 }
 0x586   :  { %v1927_v48 = vrot.slane %v1926_v18, 2  ;;  %v1946_v25 = vmax.f32 %v1944_v41, %v6500_v2  ;;  %v1949_v34 = vmax.f32 %v1947_v51, %v6512_v54  ;;  %v8219_v41 = vld [vmem:[#allocation30_spill] sm:$0xff] }
 0x588   :  { %v1948_v28 = vmax.f32 %v1946_v25, %v6508_v37  ;;  %v1928_v52 = vmax.f32 %v1926_v18, %v1927_v48  ;;  %v1951_v40 = vmax.f32 %v1949_v34, %v6520_v38 }
 0x58a   :  { %v1950_v36 = vmax.f32 %v1948_v28, %v6516_v13  ;;  %v1929_v16 = vrot.slane %v1928_v52, 1  ;;  %v1953_v2 = vmax.f32 %v1951_v40, %v8219_v41 }
 0x58c   :  { %v1952_v62 = vmax.f32 %v1950_v36, %v6524_v57  ;;  %v6609_v1 = vmax.f32 %v1928_v52, %v1929_v16  ;;  %v1955_v18 = vmax.f32 %v1953_v2, %v6545_v46 }
 0x58d   :  { %v6597_v47 = vpop.f32.mrf.mxu3 }
 0x58e   :  { %v1954_v15 = vmax.f32 %v1952_v62, %v6532_v56  ;;  %v1957_v23 = vmax.f32 %v1955_v18, %v6573_v3  ;;  %v1996_v28 = vsub.f32 %v6471_v32, %v6609_v1  ;;  %v1998_v36 = vsub.f32 %v6475_v22, %v6609_v1 }
 0x58f   :  { %v1992_v2 = vsub.f32 %v6460_v35, %v6609_v1  ;;  %v1994_v40 = vsub.f32 %v6464_v29, %v6609_v1  ;;  %v1988_v32 = vsub.f32 %v6448_v17, %v6609_v1  ;;  %v1990_v22 = vsub.f32 %v6452_v39, %v6609_v1 }
 0x590   :  { %v1956_v12 = vmax.f32 %v1954_v15, %v6559_v55  ;;  %v1959_v34 = vmax.f32 %v1957_v23, %v6597_v47  ;;  %v2088_v62 = vmul.f32 1.442695, %v1996_v28  ;;  %v2092_v16 = vmul.f32 1.442695, %v1998_v36 }
 0x591   :  { %v1984_v35 = vsub.f32 %v6436_v60, %v6609_v1  ;;  %v1986_v29 = vsub.f32 %v6440_v33, %v6609_v1  ;;  %v1980_v39 = vsub.f32 %v6424_v19, %v6609_v1 }
 0x592   :  { %v1958_v25 = vmax.f32 %v1956_v12, %v6585_v20  ;;  %5107 = vpow2.f32 %v2088_v62  ;;  %v2080_v12 = vmul.f32 1.442695, %v1992_v2  ;;  %v1982_v62 = vsub.f32 %v6428_v8, %v6609_v1 }
 0x593   :  { %5109 = vpow2.f32 %v2092_v16  ;;  %v2068_v60 = vmul.f32 1.442695, %v1986_v29 }
 0x594   :  { %5111 = vpow2.f32 %v2080_v12 }
 0x595   :  { %v6611_v48 = vpop.f32.mrf.mxu3 }
 0x596   :  { %v1960_v51 = vmax.f32 %v1958_v25, %v6611_v48  ;;  %v2084_v25 = vmul.f32 1.442695, %v1994_v40  ;;  %v1976_v40 = vsub.f32 %v6412_v45, %v6609_v1  ;;  %v8222_v45 = vld [vmem:[#allocation20_spill] sm:$0xff] }
 0x598   :  { %v1961_v52 = vmax.f32 %v1959_v34, %v1960_v51  ;;  %v5108_v23 = vpop.eup %5107  ;;  %v2072_v51 = vmul.f32 1.442695, %v1988_v32  ;;  %v2076_v34 = vmul.f32 1.442695, %v1990_v22  ;;  %5113 = vpow2.f32 %v2084_v25  ;;  %v8220_v32 = vld [vmem:[#allocation18_spill] sm:$0xff] }
 0x599   :  { %v5110_v28 = vpop.eup %5109  ;;  %v1978_v19 = vsub.f32 %v8220_v32, %v6609_v1  ;;  %v2060_v22 = vmul.f32 1.442695, %v1982_v62  ;;  %v8223_v62 = vld [vmem:[#allocation31_spill] sm:$0xff] }
 0x59a   :  { %v1962_v15 = vrot.slane %v1961_v52, 4  ;;  %v6634_v17 = vpack.c.bf16 %v5110_v28, %v5108_v23  ;;  %5115 = vpow2.f32 %v2072_v51  ;;  %v5112_v2 = vpop.eup %5111  ;;  %v8221_v23 = vld [vmem:[#allocation24_spill] sm:$0xff]  ;;  %v1974_v51 = vsub.f32 %v8222_v45, %v6609_v1 }
 0x59b   :  { %5117 = vpow2.f32 %v2076_v34  ;;  %v1972_v28 = vsub.f32 %v8221_v23, %v6609_v1 }
 0x59c   :  { %v1963_v18 = vmax.f32 %v1961_v52, %v1962_v15  ;;  %v2064_v52 = vmul.f32 1.442695, %v1984_v35  ;;  %2192 = vmatpush.bf16.msrb.mxu0 %v6634_v17  ;;  %v2056_v15 = vmul.f32 1.442695, %v1980_v39  ;;  %v2048_v35 = vmul.f32 1.442695, %v1976_v40 }
 0x59d   :  { %v2040_v40 = vmul.f32 1.442695, %v1972_v28 }
 0x59e   :  { %v1964_v36 = vrot.slane %v1963_v18, 2  ;;  %v5114_v33 = vpop.eup %5113  ;;  %5119 = vpow2.f32 %v2064_v52 }
 0x59f   :  { %5121 = vpow2.f32 %v2068_v60  ;;  %v6645_v8 = vpack.c.bf16 %v5114_v33, %v5112_v2  ;;  %v1968_v60 = vsub.f32 %v8223_v62, %v6609_v1  ;;  %v8224_v2 = vld [vmem:[#allocation23_spill] sm:$0xff]  ;;  %v2028_v62 = vsub.f32 %v6555_v26, %v6609_v1 }
 0x5a0   :  { %v1965_v16 = vmax.f32 %v1963_v18, %v1964_v36  ;;  %v5116_v25 = vpop.eup %5115  ;;  %5123 = vpow2.f32 %v2056_v15  ;;  %v2052_v36 = vmul.f32 1.442695, %v1978_v19  ;;  %v1970_v33 = vsub.f32 %v8224_v2, %v6609_v1 }
 0x5a1   :  { %v5118_v18 = vpop.eup %5117  ;;  %2193 = vmatpush.bf16.msrb.mxu0 %v6645_v8  ;;  %5125 = vpow2.f32 %v2060_v22  ;;  %v2044_v15 = vmul.f32 1.442695, %v1974_v51 }
 0x5a2   :  { %v1966_v12 = vrot.slane %v1965_v16, 1  ;;  %v6654_v39 = vpack.c.bf16 %v5118_v18, %v5116_v25  ;;  %5127 = vpow2.f32 %v2048_v35  ;;  %v2032_v25 = vmul.f32 1.442695, %v1968_v60 }
 0x5a3   :  { %5129 = vpow2.f32 %v2052_v36  ;;  %v2036_v18 = vmul.f32 1.442695, %v1970_v33  ;;  %v2030_v36 = vsub.f32 %v6569_v42, %v6609_v1 }
 0x5a4   :  { %v6652_v29 = vmax.f32 %v1965_v16, %v1966_v12  ;;  %v5120_v34 = vpop.eup %5119  ;;  %5131 = vpow2.f32 %v2040_v40  ;;  %v2026_v40 = vsub.f32 %v6541_v50, %v6609_v1  ;;  %v2020_v50 = vsub.f32 %v6522_v43, %v6609_v1 }
 0x5a5   :  { %v5122_v52 = vpop.eup %5121  ;;  %2194 = vmatpush.bf16.msrb.mxu0 %v6654_v39  ;;  %5133 = vpow2.f32 %v2044_v15  ;;  %v2156_v33 = vmul.f32 1.442695, %v2030_v36 }
 0x5a6   :  { %v1997_v16 = vsub.f32 %v6488_v6, %v6652_v29  ;;  %v5124_v32 = vpop.eup %5123  ;;  %v1999_v19 = vsub.f32 %v6492_v11, %v6652_v29  ;;  %v6665_v12 = vpack.c.bf16 %v5122_v52, %v5120_v34  ;;  %v1993_v23 = vsub.f32 %v6479_v24, %v6652_v29 }
 0x5a7   :  { %v5126_v22 = vpop.eup %5125  ;;  %v1995_v35 = vsub.f32 %v6483_v59, %v6652_v29  ;;  %5135 = vpow2.f32 %v2032_v25  ;;  %v1989_v34 = vsub.f32 %v6469_v44, %v6652_v29  ;;  %v1991_v24 = vsub.f32 %v6473_v58, %v6652_v29 }
 0x5a8   :  { %v2090_v28 = vmul.f32 1.442695, %v1997_v16  ;;  %v5128_v6 = vpop.eup %5127  ;;  %v2094_v45 = vmul.f32 1.442695, %v1999_v19  ;;  %v6672_v51 = vpack.c.bf16 %v5126_v22, %v5124_v32  ;;  %5137 = vpow2.f32 %v2036_v18 }
 0x5a9   :  { %2195 = vmatpush.bf16.msrb.mxu0 %v6665_v12  ;;  %v5130_v11 = vpop.eup %5129  ;;  %v2082_v52 = vmul.f32 1.442695, %v1993_v23  ;;  %v2086_v60 = vmul.f32 1.442695, %v1995_v35  ;;  %v2024_v44 = vsub.f32 %v6530_v31, %v6609_v1  ;;  %v2074_v16 = vmul.f32 1.442695, %v1989_v34 }
 0x5aa   :  { %5139 = vpow2.f32 %v2090_v28  ;;  %v5132_v59 = vpop.eup %5131  ;;  %v6683_v2 = vpack.c.bf16 %v5130_v11, %v5128_v6  ;;  %v1985_v15 = vsub.f32 %v6458_v9, %v6652_v29  ;;  %v2078_v26 = vmul.f32 1.442695, %v1991_v24 }
 0x5ab   :  { %5141 = vpow2.f32 %v2094_v45  ;;  %v5134_v42 = vpop.eup %5133  ;;  %v1987_v19 = vsub.f32 %v6462_v53, %v6652_v29  ;;  %v2152_v22 = vmul.f32 1.442695, %v2028_v62  ;;  %v2144_v18 = vmul.f32 1.442695, %v2024_v44 }
 0x5ac   :  { %5143 = vpow2.f32 %v2082_v52  ;;  %v6694_v25 = vpack.c.bf16 %v5134_v42, %v5132_v59  ;;  %v2022_v9 = vsub.f32 %v6526_v49, %v6609_v1  ;;  %v2148_v28 = vmul.f32 1.442695, %v2026_v40 }
 0x5ad   :  { %2196 = vmatpush.bf16.msrb.mxu0 %v6672_v51  ;;  %v5136_v58 = vpop.eup %5135  ;;  %5145 = vpow2.f32 %v2086_v60  ;;  %v1981_v53 = vsub.f32 %v6446_v7, %v6652_v29  ;;  %v2066_v6 = vmul.f32 1.442695, %v1985_v15  ;;  %v1983_v35 = vsub.f32 %v6450_v10, %v6652_v29 }
 0x5ae   :  { %v5138_v32 = vpop.eup %5137  ;;  %5147 = vpow2.f32 %v2156_v33  ;;  %v2070_v45 = vmul.f32 1.442695, %v1987_v19  ;;  %v2016_v49 = vsub.f32 %v6514_v63, %v6609_v1  ;;  %v2136_v36 = vmul.f32 1.442695, %v2020_v50 }
 0x5af   :  { %5149 = vpow2.f32 %v2074_v16  ;;  %v6705_v43 = vpack.c.bf16 %v5138_v32, %v5136_v58  ;;  %v2018_v7 = vsub.f32 %v6518_v14, %v6609_v1  ;;  %v2140_v52 = vmul.f32 1.442695, %v2022_v9 }
 0x5b0   :  { %v5140_v31 = vpop.eup %5139  ;;  %5151 = vpow2.f32 %v2078_v26  ;;  %v1977_v59 = vsub.f32 %v6434_v0, %v6652_v29  ;;  %v2058_v62 = vmul.f32 1.442695, %v1981_v53  ;;  %v1979_v60 = vsub.f32 %v6438_v61, %v6652_v29 }
 0x5b1   :  { %2197 = vmatpush.bf16.msrb.mxu0 %v6683_v2  ;;  %v5142_v23 = vpop.eup %5141  ;;  %5153 = vpow2.f32 %v2152_v22  ;;  %v2062_v42 = vmul.f32 1.442695, %v1983_v35  ;;  %v2012_v14 = vsub.f32 %v6506_v27, %v6609_v1  ;;  %v2128_v44 = vmul.f32 1.442695, %v2016_v49 }
 0x5b2   :  { %v5144_v11 = vpop.eup %5143  ;;  %5155 = vpow2.f32 %v2144_v18  ;;  %v6709_v34 = vpack.c.bf16 %v5142_v23, %v5140_v31  ;;  %v8225_v16 = vmov 1065369472   ;;  %v2014_v58 = vsub.f32 %v6510_v21, %v6609_v1  ;;  %v8226_v21 = vld [vmem:[#allocation25_spill] sm:$0xff] }
 0x5b3   :  { %v5146_v24 = vpop.eup %5145  ;;  %5157 = vpow2.f32 %v2148_v28  ;;  %v2132_v15 = vmul.f32 1.442695, %v2018_v7  ;;  %v1973_v61 = vsub.f32 %v6422_v4, %v6652_v29  ;;  %v2050_v32 = vmul.f32 1.442695, %v1977_v59  ;;  %v8227_v28 = vld [vmem:[#allocation27_spill] sm:$0xff]  ;;  %v8230_v59 = vld [vmem:[#allocation29_spill] sm:$0xff] }
 0x5b4   :  { %v5148_v10 = vpop.eup %5147  ;;  %5159 = vpow2.f32 %v2066_v6  ;;  %v6721_v40 = vpack.c.bf16 %v5146_v24, %v5144_v11  ;;  %v1975_v22 = vsub.f32 %v6426_v5, %v6652_v29  ;;  %v2054_v31 = vmul.f32 1.442695, %v1979_v60  ;;  %v8228_v5 = vld [vmem:[#allocation21_spill] sm:$0xff]  ;;  %v8229_v24 = vld [vmem:[#allocation16_spill] sm:$0xff] }
 0x5b5   :  { %2198 = vmatpush.bf16.msrb.mxu0 %v6694_v25  ;;  %v5150_v63 = vpop.eup %5149  ;;  %5161 = vpow2.f32 %v2070_v45  ;;  %v2008_v18 = vsub.f32 %v8226_v21, %v6609_v1  ;;  %v2120_v23 = vmul.f32 1.442695, %v2012_v14  ;;  %v2010_v53 = vsub.f32 %v8227_v28, %v6609_v1 }
 0x5b6   :  { %v5152_v33 = vpop.eup %5151  ;;  %5163 = vpow2.f32 %v2136_v36  ;;  %v2124_v6 = vmul.f32 1.442695, %v2014_v58  ;;  %v1969_v45 = vsub.f32 %v8228_v5, %v6652_v29  ;;  %v2042_v11 = vmul.f32 1.442695, %v1973_v61  ;;  %v8232_v61 = vld [vmem:[#allocation22_spill] sm:$0xff] }
 0x5b7   :  { %v5154_v0 = vpop.eup %5153  ;;  %5165 = vpow2.f32 %v2140_v52  ;;  %v6736_v4 = vpack.c.bf16 %v5152_v33, %v5150_v63  ;;  %v1971_v7 = vsub.f32 %v8229_v24, %v6652_v29  ;;  %v2046_v52 = vmul.f32 1.442695, %v1975_v22  ;;  %v8231_v33 = vld [vmem:[#allocation17_spill] sm:$0xff] }
 0x5b8   :  { %v5156_v26 = vpop.eup %5155  ;;  %5167 = vpow2.f32 %v2058_v62  ;;  %v6728_v19 = vpack.c.bf16 %v5148_v10, %v5154_v0  ;;  %v2004_v62 = vsub.f32 %v8230_v59, %v6609_v1  ;;  %v2112_v63 = vmul.f32 1.442695, %v2008_v18 }
 0x5b9   :  { %2199 = vmatpush.bf16.msrb.mxu0 %v6705_v43  ;;  %v5158_v27 = vpop.eup %5157  ;;  %5169 = vpow2.f32 %v2062_v42  ;;  %v2006_v14 = vsub.f32 %v8231_v33, %v6609_v1  ;;  %v2034_v58 = vmul.f32 1.442695, %v1969_v45 }
 0x5ba   :  { %v5160_v50 = vpop.eup %5159  ;;  %5171 = vpow2.f32 %v2128_v44  ;;  %2205 = vmatpush.bf16.msrb.mxu1 %v6728_v19  ;;  %v6742_v49 = vpack.c.bf16 %v5158_v27, %v5156_v26  ;;  %v2116_v44 = vmul.f32 1.442695, %v2010_v53  ;;  %v2038_v27 = vmul.f32 1.442695, %v1971_v7 }
 0x5bb   :  { %v5162_v9 = vpop.eup %5161  ;;  %5173 = vpow2.f32 %v2132_v15  ;;  %v2104_v21 = vmul.f32 1.442695, %v2004_v62  ;;  %v2108_v28 = vmul.f32 1.442695, %v2006_v14 }
 0x5bc   :  { %2200 = vmatmul.bf16.vlgmr.msrb.gmra.mxu0 %v8225_v16  ;;  %v5164_v35 = vpop.eup %5163  ;;  %5175 = vpow2.f32 %v2050_v32  ;;  %v6750_v60 = vpack.c.bf16 %v5162_v9, %v5160_v50  ;;  %v2000_v32 = vsub.f32 %v8232_v61, %v6609_v1  ;;  %v2031_v9 = vsub.f32 %v6611_v48, %v6652_v29 }
 0x5bd   :  { %2218 = vmatpush.bf16.msra.mxu0 %v6709_v34  ;;  %v5166_v36 = vpop.eup %5165  ;;  %5177 = vpow2.f32 %v2054_v31  ;;  %v8233_v31 = vld [vmem:[#allocation28_spill] sm:$0xff] }
 0x5be   :  { %v5168_v10 = vpop.eup %5167  ;;  %5179 = vpow2.f32 %v2120_v23  ;;  %2206 = vmatpush.bf16.msrb.mxu1 %v6742_v49  ;;  %v6754_v15 = vpack.c.bf16 %v5166_v36, %v5164_v35  ;;  %v2002_v50 = vsub.f32 %v8233_v31, %v6609_v1  ;;  %v2096_v5 = vmul.f32 1.442695, %v2000_v32 }
 0x5bf   :  { %v5170_v42 = vpop.eup %5169  ;;  %5181 = vpow2.f32 %v2124_v6  ;;  %v2029_v6 = vsub.f32 %v6597_v47, %v6652_v29  ;;  %v2158_v24 = vmul.f32 1.442695, %v2031_v9  ;;  %v2025_v47 = vsub.f32 %v6573_v3, %v6652_v29 }
 0x5c0   :  { %v5172_v0 = vpop.eup %5171  ;;  %5183 = vpow2.f32 %v2042_v11  ;;  %v6762_v18 = vpack.c.bf16 %v5170_v42, %v5168_v10  ;;  %v2100_v11 = vmul.f32 1.442695, %v2002_v50  ;;  %v2021_v3 = vsub.f32 %v6545_v46, %v6652_v29 }
 0x5c1   :  { %2219 = vmatpush.bf16.msra.mxu0 %v6721_v40  ;;  %v5174_v26 = vpop.eup %5173  ;;  %5185 = vpow2.f32 %v2046_v52  ;;  %v2027_v52 = vsub.f32 %v6585_v20, %v6652_v29  ;;  %v2154_v10 = vmul.f32 1.442695, %v2029_v6  ;;  %v2146_v14 = vmul.f32 1.442695, %v2025_v47 }
 0x5c2   :  { %v5176_v22 = vpop.eup %5175  ;;  %5187 = vpow2.f32 %v2112_v63  ;;  %2207 = vmatpush.bf16.msrb.mxu1 %v6754_v15  ;;  %v6768_v35 = vpack.c.bf16 %v5174_v26, %v5172_v0  ;;  %v2017_v46 = vsub.f32 %v8219_v41, %v6652_v29  ;;  %v2013_v41 = vsub.f32 %v6520_v38, %v6652_v29 }
 0x5c3   :  { %v5178_v23 = vpop.eup %5177  ;;  %5189 = vpow2.f32 %v2116_v44  ;;  %v2023_v44 = vsub.f32 %v6559_v55, %v6652_v29  ;;  %v2150_v0 = vmul.f32 1.442695, %v2027_v52  ;;  %v2019_v55 = vsub.f32 %v6532_v56, %v6652_v29 }
 0x5c4   :  { %v5180_v53 = vpop.eup %5179  ;;  %5191 = vpow2.f32 %v2034_v58  ;;  %v6772_v48 = vpack.c.bf16 %v5178_v23, %v5176_v22  ;;  %v2130_v9 = vmul.f32 1.442695, %v2017_v46  ;;  %v2015_v56 = vsub.f32 %v6524_v57, %v6652_v29 }
 0x5c5   :  { %2220 = vmatpush.bf16.msra.mxu0 %v6736_v4  ;;  %v5182_v1 = vpop.eup %5181  ;;  %5193 = vpow2.f32 %v2038_v27  ;;  %v2138_v27 = vmul.f32 1.442695, %v2021_v3  ;;  %v2142_v31 = vmul.f32 1.442695, %v2023_v44  ;;  %v2009_v38 = vsub.f32 %v6512_v54, %v6652_v29 }
 0x5c6   :  { %v5184_v45 = vpop.eup %5183  ;;  %5195 = vpow2.f32 %v2104_v21  ;;  %2208 = vmatpush.bf16.msrb.mxu1 %v6768_v35  ;;  %v6778_v59 = vpack.c.bf16 %v5182_v1, %v5180_v53  ;;  %v2011_v57 = vsub.f32 %v6516_v13, %v6652_v29  ;;  %v2005_v54 = vsub.f32 %v6504_v30, %v6652_v29  ;;  %v8235_v30 = vld [vmem:[#allocation26_spill] sm:$0xff] }
 0x5c7   :  { %v5186_v36 = vpop.eup %5185  ;;  %5197 = vpow2.f32 %v2108_v28  ;;  %v2134_v28 = vmul.f32 1.442695, %v2019_v55  ;;  %v2007_v13 = vsub.f32 %v6508_v37, %v6652_v29 }
 0x5c8   :  { %v5188_v7 = vpop.eup %5187  ;;  %5199 = vpow2.f32 %v2096_v5  ;;  %v6782_v42 = vpack.c.bf16 %v5186_v36, %v5184_v45  ;;  %v2122_v45 = vmul.f32 1.442695, %v2013_v41  ;;  %v2118_v52 = vmul.f32 1.442695, %v2011_v57 }
 0x5c9   :  { %2221 = vmatpush.bf16.msra.mxu0 %v6750_v60  ;;  %v5190_v62 = vpop.eup %5189  ;;  %5201 = vpow2.f32 %v2100_v11  ;;  %v2126_v11 = vmul.f32 1.442695, %v2015_v56  ;;  %v2110_v44 = vmul.f32 1.442695, %v2007_v13  ;;  %v4932_v13 = vld [vmem:[#allocation2 + $0x54] sm:$0xf] }
 0x5ca   :  { %v5192_v63 = vpop.eup %5191  ;;  %2209 = vmatpush.bf16.msrb.mxu1 %v6778_v59  ;;  %5203 = vpow2.f32 %v2158_v24  ;;  %v6788_v58 = vpack.c.bf16 %v5190_v62, %v5188_v7  ;;  %v2114_v7 = vmul.f32 1.442695, %v2009_v38  ;;  %v4648_v38 = vld [vmem:[#allocation4 + $0x48] sm:$0xf] }
 0x5cb   :  { %v5194_v33 = vpop.eup %5193  ;;  %5205 = vpow2.f32 %v2154_v10 }
 0x5cc   :  { %v5196_v20 = vpop.eup %5195  ;;  %v6792_v61 = vpack.c.bf16 %v5194_v33, %v5192_v63  ;;  %5207 = vpow2.f32 %v2146_v14  ;;  %v8234_v33 = vld [vmem:[#allocation19_spill] sm:$0xff]  ;;  %v2106_v14 = vmul.f32 1.442695, %v2005_v54  ;;  %v4650_v54 = vld [vmem:[#allocation4 + $0x68] sm:$0xf0] }
 0x5cd   :  { %2222 = vmatpush.bf16.msra.mxu0 %v6762_v18  ;;  %v5198_v26 = vpop.eup %5197  ;;  %5209 = vpow2.f32 %v2150_v0  ;;  %v2001_v3 = vsub.f32 %v8234_v33, %v6652_v29 }
 0x5ce   :  { %2210 = vmatpush.bf16.msrb.mxu1 %v6788_v58  ;;  %v5200_v32 = vpop.eup %5199  ;;  %v6798_v50 = vpack.c.bf16 %v5198_v26, %v5196_v20  ;;  %5211 = vpow2.f32 %v2138_v27  ;;  %v2003_v20 = vsub.f32 %v8235_v30, %v6652_v29 }
 0x5cf   :  { %v5202_v22 = vpop.eup %5201  ;;  %5213 = vpow2.f32 %v2142_v31 }
 0x5d0   :  { %v5204_v21 = vpop.eup %5203  ;;  %v6808_v53 = vpack.c.bf16 %v5202_v22, %v5200_v32  ;;  %5215 = vpow2.f32 %v2130_v9  ;;  %v2098_v32 = vmul.f32 1.442695, %v2001_v3  ;;  %v2102_v46 = vmul.f32 1.442695, %v2003_v20 }
 0x5d1   :  { %2223 = vmatpush.bf16.msra.mxu0 %v6772_v48  ;;  %v5206_v23 = vpop.eup %5205  ;;  %5217 = vpow2.f32 %v2134_v28  ;;  %v4640_v28 = vld [vmem:[#allocation4 + $0x8] sm:$0xf] }
 0x5d2   :  { %2211 = vmatpush.bf16.msrb.mxu1 %v6798_v50  ;;  %v5208_v6 = vpop.eup %5207  ;;  %v6810_v1 = vpack.c.bf16 %v5204_v21, %v5206_v23  ;;  %5219 = vpow2.f32 %v2122_v45  ;;  %v4925_v45 = vld [vmem:[#allocation4 + $0x64] sm:$0xf0] }
 0x5d3   :  { %v5210_v5 = vpop.eup %5209  ;;  %5221 = vpow2.f32 %v2126_v11  ;;  %v4649_v57 = vor.u32 %v4925_v45, %v4648_v38  ;;  %v4922_v11 = vld [vmem:[#allocation4 + $0xc] sm:$0xf] }
 0x5d4   :  { %v5212_v36 = vpop.eup %5211  ;;  %v6819_v24 = vpack.c.bf16 %v5210_v5, %v5208_v6  ;;  %5223 = vpow2.f32 %v2114_v7  ;;  %v4923_v6 = vld [vmem:[#allocation4 + $0x24] sm:$0xf0] }
 0x5d5   :  { %2224 = vmatpush.bf16.msra.mxu0 %v6782_v42  ;;  %v5214_v47 = vpop.eup %5213  ;;  %5225 = vpow2.f32 %v2118_v52  ;;  %v4641_v5 = vor.u32 %v4923_v6, %v4640_v28 }
 0x5d6   :  { %2212 = vmatpush.bf16.msrb.mxu1 %v6808_v53  ;;  %v5216_v10 = vpop.eup %5215  ;;  %v6828_v62 = vpack.c.bf16 %v5214_v47, %v5212_v36  ;;  %5227 = vpow2.f32 %v2106_v14  ;;  %v4642_v36 = vld [vmem:[#allocation4 + $0x28] sm:$0xf0]  ;;  %v2522_v14 = vpop.trf.xlu1 }
 0x5d7   :  { %v5218_v63 = vpop.eup %5217  ;;  %5229 = vpow2.f32 %v2110_v44  ;;  %v4645_v47 = vor.u32 %v4922_v11, %v4642_v36 }
 0x5d8   :  { %v5220_v37 = vpop.eup %5219  ;;  %v6836_v0 = vpack.c.bf16 %v5218_v63, %v5216_v10  ;;  %5231 = vpow2.f32 %v2098_v32  ;;  %v4690_v10 = vld [vmem:[#allocation2 + $0x30] sm:$0xf0] }
 0x5d9   :  { %2225 = vmatpush.bf16.msra.mxu0 %v6792_v61  ;;  %2213 = vmatmul.bf16.vlgmr.msrb.gmra.mxu1 %v8225_v16  ;;  %v5222_v26 = vpop.eup %5221  ;;  %5233 = vpow2.f32 %v2102_v46 }
 0x5da   :  { %2231 = vmatpush.bf16.msra.mxu1 %v6810_v1  ;;  %v5224_v27 = vpop.eup %5223  ;;  %v6840_v22 = vpack.c.bf16 %v5222_v26, %v5220_v37 }
 0x5db   :  { %v5226_v29 = vpop.eup %5225 }
 0x5dc   :  { %2226 = vmatmul.bf16.vlgmr.msra.gmra.mxu0 %v8225_v16  ;;  %v5228_v55 = vpop.eup %5227  ;;  %v6844_v31 = vpack.c.bf16 %v5226_v29, %v5224_v27 }
 0x5dd   :  { %2276 = vmatpush.bf16.msrb.mxu0 %v6634_v17  ;;  %v5230_v21 = vpop.eup %5229 }
 0x5de   :  { %2232 = vmatpush.bf16.msra.mxu1 %v6819_v24  ;;  %v5232_v23 = vpop.eup %5231  ;;  %v6848_v41 = vpack.c.bf16 %v5230_v21, %v5228_v55  ;;  %v6913_v44 = vpop.trf.xlu1 }
 0x5df   :  { %v5234_v9 = vpop.eup %5233 }
 0x5e0   :  { %v6853_v56 = vpack.c.bf16 %v5234_v9, %v5232_v23 }
 0x5e1   :  { %2277 = vmatpush.bf16.msrb.mxu0 %v6645_v8 }
 0x5e2   :  { %2233 = vmatpush.bf16.msra.mxu1 %v6828_v62 }
 0x5e5   :  { %2278 = vmatpush.bf16.msrb.mxu0 %v6654_v39 }
 0x5e6   :  { %2234 = vmatpush.bf16.msra.mxu1 %v6836_v0 }
 0x5e9   :  { %2279 = vmatpush.bf16.msrb.mxu0 %v6665_v12 }
 0x5ea   :  { %2235 = vmatpush.bf16.msra.mxu1 %v6840_v22 }
 0x5ed   :  { %2280 = vmatpush.bf16.msrb.mxu0 %v6672_v51 }
 0x5ee   :  { %2236 = vmatpush.bf16.msra.mxu1 %v6844_v31 }
 0x5f1   :  { %2281 = vmatpush.bf16.msrb.mxu0 %v6683_v2 }
 0x5f2   :  { %2237 = vmatpush.bf16.msra.mxu1 %v6848_v41 }
 0x5f5   :  { %2282 = vmatpush.bf16.msrb.mxu0 %v6694_v25 }
 0x5f6   :  { %2238 = vmatpush.bf16.msra.mxu1 %v6853_v56 }
 0x5f9   :  { %2283 = vmatpush.bf16.msrb.mxu0 %v6705_v43  ;;  %2239 = vmatmul.bf16.vlgmr.msra.gmra.mxu1 %v8225_v16 }
 0x5fa   :  { %2295 = vmatpush.bf16.msrb.mxu1 %v6728_v19 }
 0x5fc   :  { %2284 = vmatmul.bf16.vlgmr.msrb.gmra.mxu0 %v4641_v5 }
 0x5fd   :  { %2314 = vmatpush.bf16.msra.mxu0 %v6709_v34 }
 0x5fe   :  { %2296 = vmatpush.bf16.msrb.mxu1 %v6742_v49 }
 0x601   :  { %2315 = vmatpush.bf16.msra.mxu0 %v6721_v40 }
 0x602   :  { %2297 = vmatpush.bf16.msrb.mxu1 %v6754_v15 }
 0x605   :  { %2316 = vmatpush.bf16.msra.mxu0 %v6736_v4 }
 0x606   :  { %2298 = vmatpush.bf16.msrb.mxu1 %v6768_v35 }
 0x609   :  { %2317 = vmatpush.bf16.msra.mxu0 %v6750_v60 }
 0x60a   :  { %2299 = vmatpush.bf16.msrb.mxu1 %v6778_v59 }
 0x60c   :  { %2289 = vmatmul.bf16.gmra.mxu0 %v4649_v57 }
 0x60d   :  { %2318 = vmatpush.bf16.msra.mxu0 %v6762_v18 }
 0x60e   :  { %2300 = vmatpush.bf16.msrb.mxu1 %v6788_v58 }
 0x611   :  { %2319 = vmatpush.bf16.msra.mxu0 %v6772_v48 }
 0x612   :  { %2301 = vmatpush.bf16.msrb.mxu1 %v6798_v50 }
 0x615   :  { %2320 = vmatpush.bf16.msra.mxu0 %v6782_v42 }
 0x616   :  { %2302 = vmatpush.bf16.msrb.mxu1 %v6808_v53 }
 0x619   :  { %2321 = vmatpush.bf16.msra.mxu0 %v6792_v61  ;;  %2303 = vmatmul.bf16.vlgmr.msrb.gmra.mxu1 %v4645_v47 }
 0x61a   :  { %2333 = vmatpush.bf16.msra.mxu1 %v6810_v1 }
 0x61c   :  { %2322 = vmatmul.bf16.vlgmr.msra.gmra.mxu0 %v4641_v5 }
 0x61d   :  { %2372 = vmatpush.bf16.msrb.mxu0 %v6634_v17  ;;  %v4924_v17 = vld [vmem:[#allocation4 + $0x4c] sm:$0xf] }
 0x61e   :  { %2334 = vmatpush.bf16.msra.mxu1 %v6819_v24 }
 0x621   :  { %2373 = vmatpush.bf16.msrb.mxu0 %v6645_v8  ;;  %v4653_v8 = vor.u32 %v4924_v17, %v4650_v54 }
 0x622   :  { %2335 = vmatpush.bf16.msra.mxu1 %v6828_v62 }
 0x625   :  { %2374 = vmatpush.bf16.msrb.mxu0 %v6654_v39  ;;  %v4656_v39 = vld [vmem:[#allocation7 + $0x8] sm:$0xf] }
 0x626   :  { %2336 = vmatpush.bf16.msra.mxu1 %v6836_v0 }
 0x629   :  { %2375 = vmatpush.bf16.msrb.mxu0 %v6665_v12  ;;  %2308 = vmatmul.bf16.gmra.mxu1 %v4653_v8  ;;  %v4927_v12 = vld [vmem:[#allocation7 + $0x24] sm:$0xf0] }
 0x62a   :  { %2337 = vmatpush.bf16.msra.mxu1 %v6840_v22 }
 0x62c   :  { %2327 = vmatmul.bf16.gmra.mxu0 %v4649_v57 }
 0x62d   :  { %2376 = vmatpush.bf16.msrb.mxu0 %v6672_v51  ;;  %v4657_v51 = vor.u32 %v4927_v12, %v4656_v39 }
 0x62e   :  { %2338 = vmatpush.bf16.msra.mxu1 %v6844_v31 }
 0x631   :  { %2377 = vmatpush.bf16.msrb.mxu0 %v6683_v2  ;;  %v4664_v2 = vld [vmem:[#allocation7 + $0x48] sm:$0xf] }
 0x632   :  { %2339 = vmatpush.bf16.msra.mxu1 %v6848_v41 }
 0x635   :  { %2378 = vmatpush.bf16.msrb.mxu0 %v6694_v25  ;;  %v4929_v25 = vld [vmem:[#allocation7 + $0x64] sm:$0xf0] }
 0x636   :  { %2340 = vmatpush.bf16.msra.mxu1 %v6853_v56 }
 0x639   :  { %2379 = vmatpush.bf16.msrb.mxu0 %v6705_v43  ;;  %2341 = vmatmul.bf16.vlgmr.msra.gmra.mxu1 %v4645_v47  ;;  %v4665_v43 = vor.u32 %v4929_v25, %v4664_v2 }
 0x63a   :  { %2391 = vmatpush.bf16.msrb.mxu1 %v6728_v19 }
 0x63c   :  { %2380 = vmatmul.bf16.vlgmr.msrb.gmra.mxu0 %v4657_v51 }
 0x63d   :  { %2410 = vmatpush.bf16.msra.mxu0 %v6709_v34  ;;  %v4933_v34 = vld [vmem:[#allocation2 + $0x6c] sm:$0xf0] }
 0x63e   :  { %2392 = vmatpush.bf16.msrb.mxu1 %v6742_v49  ;;  %v4688_v49 = vld [vmem:[#allocation2 + $0x10] sm:$0xf] }
 0x641   :  { %2411 = vmatpush.bf16.msra.mxu0 %v6721_v40  ;;  %v4696_v40 = vld [vmem:[#allocation2 + $0x50] sm:$0xf] }
 0x642   :  { %2393 = vmatpush.bf16.msrb.mxu1 %v6754_v15  ;;  %v4697_v19 = vor.u32 %v4933_v34, %v4696_v40 }
 0x645   :  { %2412 = vmatpush.bf16.msra.mxu0 %v6736_v4  ;;  %v4931_v4 = vld [vmem:[#allocation2 + $0x2c] sm:$0xf0] }
 0x646   :  { %2394 = vmatpush.bf16.msrb.mxu1 %v6768_v35  ;;  %v4689_v15 = vor.u32 %v4931_v4, %v4688_v49  ;;  %v4658_v35 = vld [vmem:[#allocation7 + $0x28] sm:$0xf0] }
 0x649   :  { %2413 = vmatpush.bf16.msra.mxu0 %v6750_v60  ;;  %2346 = vmatmul.bf16.gmra.mxu1 %v4653_v8  ;;  %v2201_v60 = vpop.f32.mrf.mxu0 }
 0x64a   :  { %2395 = vmatpush.bf16.msrb.mxu1 %v6778_v59 }
 0x64c   :  { %2385 = vmatmul.bf16.gmra.mxu0 %v4665_v43 }
 0x64d   :  { %2414 = vmatpush.bf16.msra.mxu0 %v6762_v18  ;;  %v4926_v18 = vld [vmem:[#allocation7 + $0xc] sm:$0xf] }
 0x64e   :  { %2396 = vmatpush.bf16.msrb.mxu1 %v6788_v58 }
 0x651   :  { %2415 = vmatpush.bf16.msra.mxu0 %v6772_v48  ;;  %v4661_v48 = vor.u32 %v4926_v18, %v4658_v35  ;;  %v2203_v59 = vpop.f32.mrf.mxu0 }
 0x652   :  { %2397 = vmatpush.bf16.msrb.mxu1 %v6798_v50  ;;  %v4666_v50 = vld [vmem:[#allocation7 + $0x68] sm:$0xf0] }
 0x655   :  { %2416 = vmatpush.bf16.msra.mxu0 %v6782_v42 }
 0x656   :  { %2398 = vmatpush.bf16.msrb.mxu1 %v6808_v53  ;;  %v2214_v42 = vpop.f32.mrf.mxu1 }
 0x657   :  { %v2215_v26 = vadd.f32 %v2214_v42, %v2201_v60 }
 0x659   :  { %2417 = vmatpush.bf16.msra.mxu0 %v6792_v61  ;;  %2399 = vmatmul.bf16.vlgmr.msrb.gmra.mxu1 %v4661_v48  ;;  %v2227_v58 = vpop.f32.mrf.mxu0  ;;  %v4928_v61 = vld [vmem:[#allocation7 + $0x4c] sm:$0xf]  ;;  %5235 = vrcp.f32 %v2215_v26 }
 0x65a   :  { %2429 = vmatpush.bf16.msra.mxu1 %v6810_v1  ;;  %v4669_v1 = vor.u32 %v4928_v61, %v4666_v50 }
 0x65c   :  { %2418 = vmatmul.bf16.vlgmr.msra.gmra.mxu0 %v4657_v51 }
 0x65d   :  { %2612 = vmatpush.bf16.msrb.mxu0 %v4697_v19 }
 0x65e   :  { %2430 = vmatpush.bf16.msra.mxu1 %v6819_v24  ;;  %v2216_v53 = vpop.f32.mrf.mxu1  ;;  %v4698_v24 = vld [vmem:[#allocation2 + $0x70] sm:$0xf0] }
 0x65f   :  { %v4701_v52 = vor.u32 %v4932_v13, %v4698_v24  ;;  %v5236_v27 = vpop.eup %5235 }
 0x660   :  { %v6918_v29 = vperm.slane %v5236_v27, 0 }
 0x661   :  { %2613 = vmatpush.bf16.msrb.mxu0 %v4689_v15  ;;  %v2229_v7 = vpop.f32.mrf.mxu0 }
 0x662   :  { %2431 = vmatpush.bf16.msra.mxu1 %v6828_v62  ;;  %v4930_v62 = vld [vmem:[#allocation2 + $0x14] sm:$0xf] }
 0x663   :  { %v4693_v63 = vor.u32 %v4930_v62, %v4690_v10 }
 0x666   :  { %2432 = vmatpush.bf16.msra.mxu1 %v6836_v0  ;;  %v2524_v0 = vpop.trf.xlu1 }
 0x669   :  { %2404 = vmatmul.bf16.gmra.mxu1 %v4669_v1 }
 0x66a   :  { %2433 = vmatpush.bf16.msra.mxu1 %v6840_v22 }
 0x66c   :  { %2423 = vmatmul.bf16.gmra.mxu0 %v4665_v43 }
 0x66e   :  { %2434 = vmatpush.bf16.msra.mxu1 %v6844_v31  ;;  %v6916_v46 = vpop.trf.xlu1 }
 0x672   :  { %2435 = vmatpush.bf16.msra.mxu1 %v6848_v41 }
 0x676   :  { %2436 = vmatpush.bf16.msra.mxu1 %v6853_v56  ;;  %v2240_v3 = vpop.f32.mrf.mxu1  ;;  %v2526_v23 = vpop.trf.xlu1 }
 0x677   :  { %v2241_v36 = vadd.f32 %v2240_v3, %v2227_v58 }
 0x679   :  { %v2285_v33 = vpop.f32.mrf.mxu0  ;;  %2437 = vmatmul.bf16.vlgmr.msra.gmra.mxu1 %v4661_v48  ;;  %5237 = vrcp.f32 %v2241_v36 }
 0x67a   :  { %2701 = vmatpush.bf16.msrb.mxu1 %v4701_v52 }
 0x67c   :  { %4702 = vmatmul.msk.bf16.vlgmr.msrb.gmra.mxu0 %vm195_vm0, %v2522_v14 }
 0x67e   :  { %2702 = vmatpush.bf16.msrb.mxu1 %v4693_v63  ;;  %v2242_v20 = vpop.f32.mrf.mxu1  ;;  %v6924_v6 = vpop.trf.xlu1 }
 0x67f   :  { %v5238_v12 = vpop.eup %5237 }
 0x680   :  { %v6932_v2 = vperm.slane %v5238_v12, 0 }
 0x681   :  { %v2287_v30 = vpop.f32.mrf.mxu0 }
 0x686   :  { %v2528_v11 = vpop.trf.xlu1 }
 0x689   :  { %v2290_v37 = vpop.f32.mrf.mxu0  ;;  %2442 = vmatmul.bf16.gmra.mxu1 %v4669_v1 }
 0x68c   :  { %4703 = vmatmul.msk.bf16.gmra.mxu0 %vm195_vm0, %v2524_v0 }
 0x68e   :  { %v6930_v39 = vpop.trf.xlu1 }
 0x691   :  { %v2292_v32 = vpop.f32.mrf.mxu0 }
 0x696   :  { %v2304_v22 = vpop.f32.mrf.mxu1  ;;  %v2530_v40 = vpop.trf.xlu1 }
 0x697   :  { %v2305_v55 = vadd.f32 %v2304_v22, %v2285_v33 }
 0x699   :  { %v2323_v31 = vpop.f32.mrf.mxu0  ;;  %v2450_v21 = vmul.f32 %v6918_v29, %v2305_v55  ;;  %4718 = vmatmul.msk.bf16.vlgmr.msrb.gmra.mxu1 %vm195_vm0, %v2522_v14 }
 0x69b   :  { %2459 = vst [vmem:[#allocation9 + $0x10] sm:$0xff] %v2450_v21 }
 0x69c   :  { %4704 = vmatmul.msk.bf16.gmra.mxu0 %vm195_vm0, %v2526_v23 }
 0x69e   :  { %v2306_v41 = vpop.f32.mrf.mxu1  ;;  %v6938_v15 = vpop.trf.xlu1 }
 0x69f   :  { %v2307_v9 = vadd.f32 %v2306_v41, %v2287_v30 }
 0x6a1   :  { %v2325_v56 = vpop.f32.mrf.mxu0  ;;  %v2452_v28 = vmul.f32 %v6918_v29, %v2307_v9 }
 0x6a3   :  { %2461 = vst [vmem:[#allocation9 + $0x50] sm:$0xff] %v2452_v28 }
 0x6a6   :  { %v2309_v5 = vpop.f32.mrf.mxu1  ;;  %v2532_v42 = vpop.trf.xlu1 }
 0x6a7   :  { %v2310_v38 = vadd.f32 %v2309_v5, %v2290_v37 }
 0x6a9   :  { %v2328_v45 = vpop.f32.mrf.mxu0  ;;  %v2454_v57 = vmul.f32 %v6918_v29, %v2310_v38  ;;  %4719 = vmatmul.msk.bf16.gmra.mxu1 %vm195_vm0, %v2524_v0 }
 0x6ab   :  { %2463 = vst [vmem:[#allocation9 + $0x90] sm:$0xff] %v2454_v57 }
 0x6ac   :  { %4705 = vmatmul.msk.bf16.gmra.mxu0 %vm195_vm0, %v2528_v11 }
 0x6ae   :  { %v2311_v47 = vpop.f32.mrf.mxu1  ;;  %v6944_v1 = vpop.trf.xlu1 }
 0x6af   :  { %v2312_v17 = vadd.f32 %v2311_v47, %v2292_v32 }
 0x6b1   :  { %v2330_v54 = vpop.f32.mrf.mxu0  ;;  %v2456_v8 = vmul.f32 %v6918_v29, %v2312_v17 }
 0x6b3   :  { %2465 = vst [vmem:[#allocation9 + $0xd0] sm:$0xff] %v2456_v8 }
 0x6b6   :  { %v2342_v51 = vpop.f32.mrf.mxu1  ;;  %v2534_v10 = vpop.trf.xlu1 }
 0x6b7   :  { %v2343_v25 = vadd.f32 %v2342_v51, %v2323_v31 }
 0x6b9   :  { %v2381_v43 = vpop.f32.mrf.mxu0  ;;  %v2451_v34 = vmul.f32 %v6932_v2, %v2343_v25  ;;  %4720 = vmatmul.msk.bf16.gmra.mxu1 %vm195_vm0, %v2526_v23 }
 0x6bb   :  { %2460 = vst [vmem:[#allocation9 + $0x18] sm:$0xff] %v2451_v34 }
 0x6bc   :  { %4706 = vmatmul.msk.bf16.gmra.mxu0 %vm195_vm0, %v2530_v40 }
 0x6be   :  { %v2344_v19 = vpop.f32.mrf.mxu1  ;;  %v6950_v14 = vpop.trf.xlu1 }
 0x6bf   :  { %v2345_v4 = vadd.f32 %v2344_v19, %v2325_v56 }
 0x6c1   :  { %v2383_v49 = vpop.f32.mrf.mxu0  ;;  %v2453_v60 = vmul.f32 %v6932_v2, %v2345_v4 }
 0x6c3   :  { %2462 = vst [vmem:[#allocation9 + $0x58] sm:$0xff] %v2453_v60 }
 0x6c6   :  { %v2347_v18 = vpop.f32.mrf.mxu1  ;;  %v2536_v26 = vpop.trf.xlu1 }
 0x6c7   :  { %v2348_v35 = vadd.f32 %v2347_v18, %v2328_v45 }
 0x6c9   :  { %v2386_v48 = vpop.f32.mrf.mxu0  ;;  %v2455_v59 = vmul.f32 %v6932_v2, %v2348_v35  ;;  %4721 = vmatmul.msk.bf16.gmra.mxu1 %vm195_vm0, %v2528_v11 }
 0x6cb   :  { %2464 = vst [vmem:[#allocation9 + $0x98] sm:$0xff] %v2455_v59 }
 0x6cc   :  { %4707 = vmatmul.msk.bf16.gmra.mxu0 %vm195_vm0, %v2532_v42 }
 0x6ce   :  { %v2349_v58 = vpop.f32.mrf.mxu1 }
 0x6cf   :  { %v2350_v61 = vadd.f32 %v2349_v58, %v2330_v54  ;;  %v2537_v58 = vpop.trf.xlu1 }
 0x6d1   :  { %v2388_v50 = vpop.f32.mrf.mxu0  ;;  %v2457_v53 = vmul.f32 %v6932_v2, %v2350_v61 }
 0x6d3   :  { %2466 = vst [vmem:[#allocation9 + $0xd8] sm:$0xff] %v2457_v53 }
 0x6d6   :  { %v2400_v7 = vpop.f32.mrf.mxu1 }
 0x6d7   :  { %v2401_v24 = vadd.f32 %v2400_v7, %v2381_v43 }
 0x6d9   :  { %v2419_v13 = vpop.f32.mrf.mxu0  ;;  %v2467_v52 = vmul.f32 %v6918_v29, %v2401_v24  ;;  %4722 = vmatmul.msk.bf16.gmra.mxu1 %vm195_vm0, %v2530_v40 }
 0x6db   :  { %2476 = vst [vmem:[#allocation10 + $0x10] sm:$0xff] %v2467_v52 }
 0x6dc   :  { %4708 = vmatmul.msk.bf16.gmra.mxu0 %vm195_vm0, %v2534_v10 }
 0x6de   :  { %v2402_v62 = vpop.f32.mrf.mxu1 }
 0x6df   :  { %v2403_v63 = vadd.f32 %v2402_v62, %v2383_v49 }
 0x6e1   :  { %v2421_v33 = vpop.f32.mrf.mxu0  ;;  %v2469_v3 = vmul.f32 %v6918_v29, %v2403_v63 }
 0x6e3   :  { %2478 = vst [vmem:[#allocation10 + $0x50] sm:$0xff] %v2469_v3 }
 0x6e6   :  { %v2405_v30 = vpop.f32.mrf.mxu1 }
 0x6e7   :  { %v2406_v20 = vadd.f32 %v2405_v30, %v2386_v48 }
 0x6e9   :  { %v2424_v37 = vpop.f32.mrf.mxu0  ;;  %v2471_v0 = vmul.f32 %v6918_v29, %v2406_v20  ;;  %4723 = vmatmul.msk.bf16.gmra.mxu1 %vm195_vm0, %v2532_v42 }
 0x6eb   :  { %2480 = vst [vmem:[#allocation10 + $0x90] sm:$0xff] %v2471_v0 }
 0x6ec   :  { %4709 = vmatmul.msk.bf16.gmra.mxu0 %vm195_vm0, %v2536_v26 }
 0x6ee   :  { %v2407_v32 = vpop.f32.mrf.mxu1 }
 0x6ef   :  { %v2408_v27 = vadd.f32 %v2407_v32, %v2388_v50 }
 0x6f1   :  { %v2426_v22 = vpop.f32.mrf.mxu0  ;;  %v2473_v55 = vmul.f32 %v6918_v29, %v2408_v27 }
 0x6f3   :  { %2482 = vst [vmem:[#allocation10 + $0xd0] sm:$0xff] %v2473_v55 }
 0x6f6   :  { %v2438_v31 = vpop.f32.mrf.mxu1 }
 0x6f7   :  { %v2439_v21 = vadd.f32 %v2438_v31, %v2419_v13 }
 0x6f9   :  { %v6956_v23 = vpop.f32.mrf.mxu0  ;;  %v2468_v41 = vmul.f32 %v6932_v2, %v2439_v21  ;;  %4724 = vmatmul.msk.bf16.gmra.mxu1 %vm195_vm0, %v2534_v10 }
 0x6fa   :  { %8236 = vst [vmem:[#allocation30_spill] sm:$0xff] %v6956_v23 }
 0x6fb   :  { %2477 = vst [vmem:[#allocation10 + $0x18] sm:$0xff] %v2468_v41 }
 0x6fc   :  { %4710 = vmatmul.msk.bf16.gmra.mxu0 %vm195_vm0, %v6913_v44 }
 0x6fe   :  { %v2440_v9 = vpop.f32.mrf.mxu1 }
 0x6ff   :  { %v2441_v56 = vadd.f32 %v2440_v9, %v2421_v33 }
 0x701   :  { %v6962_v28 = vpop.f32.mrf.mxu0  ;;  %v2470_v5 = vmul.f32 %v6932_v2, %v2441_v56 }
 0x702   :  { %8237 = vst [vmem:[#allocation18_spill] sm:$0xff] %v6962_v28 }
 0x703   :  { %2479 = vst [vmem:[#allocation10 + $0x58] sm:$0xff] %v2470_v5 }
 0x706   :  { %v2443_v29 = vpop.f32.mrf.mxu1 }
 0x707   :  { %v2444_v38 = vadd.f32 %v2443_v29, %v2424_v37 }
 0x709   :  { %v6965_v45 = vpop.f32.mrf.mxu0  ;;  %v2472_v57 = vmul.f32 %v6932_v2, %v2444_v38  ;;  %4725 = vmatmul.msk.bf16.gmra.mxu1 %vm195_vm0, %v2536_v26 }
 0x70a   :  { %8238 = vst [vmem:[#allocation24_spill] sm:$0xff] %v6965_v45  ;;  %v2784_v29 = vmax.f32 %v6956_v23, %v6965_v45 }
 0x70b   :  { %2481 = vst [vmem:[#allocation10 + $0x98] sm:$0xff] %v2472_v57 }
 0x70c   :  { %4711 = vmatmul.msk.bf16.gmra.mxu0 %vm195_vm0, %v6916_v46 }
 0x70e   :  { %v2445_v11 = vpop.f32.mrf.mxu1 }
 0x70f   :  { %v2446_v36 = vadd.f32 %v2445_v11, %v2426_v22 }
 0x711   :  { %v6971_v47 = vpop.f32.mrf.mxu0  ;;  %v2474_v17 = vmul.f32 %v6932_v2, %v2446_v36 }
 0x712   :  { %8239 = vst [vmem:[#allocation20_spill] sm:$0xff] %v6971_v47  ;;  %v2785_v5 = vmax.f32 %v6962_v28, %v6971_v47 }
 0x713   :  { %2483 = vst [vmem:[#allocation10 + $0xd8] sm:$0xff] %v2474_v17 }
 0x716   :  { %v6974_v54 = vpop.f32.mrf.mxu1 }
 0x717   :  { %8240 = vst [vmem:[#allocation31_spill] sm:$0xff] %v6974_v54 }
 0x719   :  { %v6976_v8 = vpop.f32.mrf.mxu0  ;;  %4726 = vmatmul.msk.bf16.gmra.mxu1 %vm195_vm0, %v6913_v44 }
 0x71a   :  { %v2786_v57 = vmax.f32 %v2784_v29, %v6976_v8 }
 0x71c   :  { %4712 = vmatmul.msk.bf16.gmra.mxu0 %vm195_vm0, %v6924_v6 }
 0x71e   :  { %v6982_v12 = vpop.f32.mrf.mxu1 }
 0x71f   :  { %8241 = vst [vmem:[#allocation23_spill] sm:$0xff] %v6982_v12 }
 0x721   :  { %v6984_v51 = vpop.f32.mrf.mxu0 }
 0x722   :  { %8242 = vst [vmem:[#allocation25_spill] sm:$0xff] %v6984_v51  ;;  %v2787_v38 = vmax.f32 %v2785_v5, %v6984_v51 }
 0x726   :  { %v6986_v25 = vpop.f32.mrf.mxu1 }
 0x729   :  { %v6988_v43 = vpop.f32.mrf.mxu0  ;;  %4727 = vmatmul.msk.bf16.gmra.mxu1 %vm195_vm0, %v6916_v46 }
 0x72a   :  { %v2788_v17 = vmax.f32 %v2786_v57, %v6988_v43 }
 0x72c   :  { %4713 = vmatmul.msk.bf16.gmra.mxu0 %vm195_vm0, %v6930_v39 }
 0x72e   :  { %v6994_v2 = vpop.f32.mrf.mxu1 }
 0x731   :  { %v6996_v44 = vpop.f32.mrf.mxu0 }
 0x732   :  { %v2789_v11 = vmax.f32 %v2787_v38, %v6996_v44 }
 0x736   :  { %v6998_v34 = vpop.f32.mrf.mxu1 }
 0x739   :  { %v7000_v40 = vpop.f32.mrf.mxu0  ;;  %4728 = vmatmul.msk.bf16.gmra.mxu1 %vm195_vm0, %v6924_v6 }
 0x73c   :  { %4714 = vmatmul.msk.bf16.gmra.mxu0 %vm195_vm0, %v6938_v15 }
 0x73e   :  { %v7006_v19 = vpop.f32.mrf.mxu1 }
 0x741   :  { %v7008_v46 = vpop.f32.mrf.mxu0 }
 0x746   :  { %v7010_v4 = vpop.f32.mrf.mxu1 }
 0x749   :  { %v7012_v49 = vpop.f32.mrf.mxu0  ;;  %4729 = vmatmul.msk.bf16.gmra.mxu1 %vm195_vm0, %v6930_v39 }
 0x74c   :  { %4715 = vmatmul.msk.bf16.gmra.mxu0 %vm195_vm0, %v6944_v1 }
 0x74e   :  { %v7018_v60 = vpop.f32.mrf.mxu1 }
 0x751   :  { %v7020_v6 = vpop.f32.mrf.mxu0 }
 0x756   :  { %v7022_v18 = vpop.f32.mrf.mxu1 }
 0x759   :  { %v7024_v35 = vpop.f32.mrf.mxu0  ;;  %4730 = vmatmul.msk.bf16.gmra.mxu1 %vm195_vm0, %v6938_v15 }
 0x75c   :  { %4716 = vmatmul.msk.bf16.gmra.mxu0 %vm195_vm0, %v6950_v14 }
 0x75e   :  { %v7030_v48 = vpop.f32.mrf.mxu1 }
 0x761   :  { %v7032_v39 = vpop.f32.mrf.mxu0 }
 0x766   :  { %v7034_v59 = vpop.f32.mrf.mxu1 }
 0x769   :  { %v7036_v42 = vpop.f32.mrf.mxu0  ;;  %4731 = vmatmul.msk.bf16.gmra.mxu1 %vm195_vm0, %v6944_v1 }
 0x76c   :  { %4717 = vmatmul.msk.bf16.gmra.mxu0 %vm195_vm0, %v2537_v58 }
 0x76e   :  { %v7041_v61 = vpop.f32.mrf.mxu1 }
 0x771   :  { %v7043_v15 = vpop.f32.mrf.mxu0 }
 0x776   :  { %v7045_v50 = vpop.f32.mrf.mxu1 }
 0x779   :  { %v7047_v53 = vpop.f32.mrf.mxu0  ;;  %4732 = vmatmul.msk.bf16.gmra.mxu1 %vm195_vm0, %v6950_v14 }
 0x77a   :  { %8243 = vst [vmem:[#allocation27_spill] sm:$0xff] %v7047_v53 }
 0x77e   :  { %v7051_v7 = vpop.f32.mrf.mxu1 }
 0x781   :  { %v7053_v24 = vpop.f32.mrf.mxu0 }
 0x782   :  { %8244 = vst [vmem:[#allocation21_spill] sm:$0xff] %v7053_v24 }
 0x786   :  { %v7055_v13 = vpop.f32.mrf.mxu1 }
 0x789   :  { %v7057_v1 = vpop.f32.mrf.mxu0  ;;  %4733 = vmatmul.msk.bf16.gmra.mxu1 %vm195_vm0, %v2537_v58  ;;  %v2791_v58 = vmax.f32 %v2789_v11, %v7008_v46 }
 0x78a   :  { %8245 = vst [vmem:[#allocation16_spill] sm:$0xff] %v7057_v1 }
 0x78b   :  { %v2793_v28 = vmax.f32 %v2791_v58, %v7020_v6 }
 0x78d   :  { %v2795_v5 = vmax.f32 %v2793_v28, %v7032_v39 }
 0x78e   :  { %v7060_v52 = vpop.f32.mrf.mxu1 }
 0x78f   :  { %v2797_v38 = vmax.f32 %v2795_v5, %v7043_v15 }
 0x791   :  { %v7062_v10 = vpop.f32.mrf.mxu0  ;;  %v2799_v57 = vmax.f32 %v2797_v38, %v7053_v24 }
 0x792   :  { %8246 = vst [vmem:[#allocation29_spill] sm:$0xff] %v7062_v10 }
 0x796   :  { %v7064_v62 = vpop.f32.mrf.mxu1 }
 0x797   :  { %8247 = vst [vmem:[#allocation17_spill] sm:$0xff] %v7064_v62 }
 0x799   :  { %v7066_v63 = vpop.f32.mrf.mxu0 }
 0x79a   :  { %8248 = vst [vmem:[#allocation22_spill] sm:$0xff] %v7066_v63 }
 0x79e   :  { %v7068_v33 = vpop.f32.mrf.mxu1 }
 0x79f   :  { %8249 = vst [vmem:[#allocation28_spill] sm:$0xff] %v7068_v33 }
 0x7a1   :  { %v7070_v3 = vpop.f32.mrf.mxu0 }
 0x7a2   :  { %8250 = vst [vmem:[#allocation19_spill] sm:$0xff] %v7070_v3 }
 0x7a6   :  { %v7072_v14 = vpop.f32.mrf.mxu1 }
 0x7a9   :  { %v7074_v30 = vpop.f32.mrf.mxu0 }
 0x7ae   :  { %v7076_v20 = vpop.f32.mrf.mxu1 }
 0x7b1   :  { %v7078_v37 = vpop.f32.mrf.mxu0 }
 0x7b6   :  { %v7080_v0 = vpop.f32.mrf.mxu1 }
 0x7b9   :  { %v7082_v26 = vpop.f32.mrf.mxu0 }
 0x7be   :  { %v7084_v32 = vpop.f32.mrf.mxu1 }
 0x7c1   :  { %v7086_v27 = vpop.f32.mrf.mxu0 }
 0x7c6   :  { %v7088_v22 = vpop.f32.mrf.mxu1 }
 0x7c9   :  { %v7090_v55 = vpop.f32.mrf.mxu0 }
 0x7ce   :  { %v7092_v31 = vpop.f32.mrf.mxu1 }
 0x7d1   :  { %v7094_v21 = vpop.f32.mrf.mxu0 }
 0x7d6   :  { %v7096_v41 = vpop.f32.mrf.mxu1 }
 0x7d7   :  { %8251 = vst [vmem:[#allocation26_spill] sm:$0xff] %v7096_v41  ;;  %v2790_v41 = vmax.f32 %v2788_v17, %v7000_v40  ;;  %v2801_v17 = vmax.f32 %v2799_v57, %v7062_v10 }
 0x7d9   :  { %v7098_v9 = vpop.f32.mrf.mxu0  ;;  %v2792_v23 = vmax.f32 %v2790_v41, %v7012_v49  ;;  %v2803_v28 = vmax.f32 %v2801_v17, %v7070_v3 }
 0x7db   :  { %v2794_v29 = vmax.f32 %v2792_v23, %v7024_v35  ;;  %v2805_v58 = vmax.f32 %v2803_v28, %v7078_v37 }
 0x7dd   :  { %v2796_v47 = vmax.f32 %v2794_v29, %v7036_v42  ;;  %v2807_v29 = vmax.f32 %v2805_v58, %v7086_v27 }
 0x7de   :  { %v7100_v56 = vpop.f32.mrf.mxu1 }
 0x7df   :  { %v2798_v11 = vmax.f32 %v2796_v47, %v7047_v53  ;;  %v2809_v47 = vmax.f32 %v2807_v29, %v7094_v21 }
 0x7e1   :  { %v7109_v36 = vpop.f32.mrf.mxu0  ;;  %v2800_v41 = vmax.f32 %v2798_v11, %v7057_v1 }
 0x7e2   :  { %v2811_v11 = vmax.f32 %v2809_v47, %v7109_v36 }
 0x7e3   :  { %v2802_v23 = vmax.f32 %v2800_v41, %v7066_v63 }
 0x7e5   :  { %v2804_v5 = vmax.f32 %v2802_v23, %v7074_v30  ;;  %v2822_v23 = vmax.f32 %v6982_v12, %v6994_v2 }
 0x7e6   :  { %v7113_v16 = vpop.f32.mrf.mxu1 }
 0x7e7   :  { %v2806_v38 = vmax.f32 %v2804_v5, %v7082_v26  ;;  %v2821_v5 = vmax.f32 %v6974_v54, %v6986_v25  ;;  %v2824_v29 = vmax.f32 %v2822_v23, %v7006_v19 }
 0x7e9   :  { %v7123_v45 = vpop.f32.mrf.mxu0  ;;  %v2808_v57 = vmax.f32 %v2806_v38, %v7090_v55  ;;  %v2823_v38 = vmax.f32 %v2821_v5, %v6998_v34  ;;  %v2826_v10 = vmax.f32 %v2824_v29, %v7018_v60 }
 0x7eb   :  { %v2810_v17 = vmax.f32 %v2808_v57, %v7098_v9 }
 0x7ed   :  { %v2812_v28 = vmax.f32 %v2810_v17, %v7123_v45  ;;  %v2828_v17 = vmax.f32 %v2826_v10, %v7030_v48 }
 0x7ee   :  { %v7127_v51 = vpop.f32.mrf.mxu1 }
 0x7f1   :  { %v7137_v24 = vpop.f32.mrf.mxu0 }
 0x7f2   :  { %v2813_v41 = vmax.f32 %v2811_v11, %v7137_v24  ;;  %v2825_v11 = vmax.f32 %v2823_v38, %v7010_v4 }
 0x7f4   :  { %v2814_v58 = vmax.f32 %v2812_v28, %v2813_v41  ;;  %v2827_v1 = vmax.f32 %v2825_v11, %v7022_v18  ;;  %v2830_v41 = vmax.f32 %v2828_v17, %v7041_v61 }
 0x7f6   :  { %v7140_v53 = vpop.f32.mrf.mxu1  ;;  %v2815_v57 = vrot.slane %v2814_v58, 4  ;;  %v2829_v12 = vmax.f32 %v2827_v1, %v7034_v59  ;;  %v2832_v23 = vmax.f32 %v2830_v41, %v7051_v7 }
 0x7f8   :  { %v2816_v28 = vmax.f32 %v2814_v58, %v2815_v57  ;;  %v2831_v5 = vmax.f32 %v2829_v12, %v7045_v50  ;;  %v2834_v29 = vmax.f32 %v2832_v23, %v7060_v52 }
 0x7fa   :  { %v2817_v54 = vrot.slane %v2816_v28, 2  ;;  %v2833_v3 = vmax.f32 %v2831_v5, %v7055_v13  ;;  %v2836_v38 = vmax.f32 %v2834_v29, %v7068_v33  ;;  %v8252_v29 = vld [vmem:[#allocation26_spill] sm:$0xff] }
 0x7fc   :  { %v2835_v10 = vmax.f32 %v2833_v3, %v7064_v62  ;;  %v2838_v11 = vmax.f32 %v2836_v38, %v7076_v20  ;;  %v2818_v58 = vmax.f32 %v2816_v28, %v2817_v54 }
 0x7fe   :  { %v7153_v47 = vpop.f32.mrf.mxu1  ;;  %v2837_v1 = vmax.f32 %v2835_v10, %v7072_v14  ;;  %v2840_v57 = vmax.f32 %v2838_v11, %v7084_v32  ;;  %v2819_v41 = vrot.slane %v2818_v58, 1 }
 0x800   :  { %v2839_v12 = vmax.f32 %v2837_v1, %v7080_v0  ;;  %v2842_v17 = vmax.f32 %v2840_v57, %v7092_v31  ;;  %v7177_v62 = vmax.f32 %v2818_v58, %v2819_v41 }
 0x802   :  { %v2841_v23 = vmax.f32 %v2839_v12, %v7088_v22  ;;  %v2844_v5 = vmax.f32 %v2842_v17, %v7100_v56  ;;  %v2886_v1 = vsub.f32 %v7036_v42, %v7177_v62  ;;  %v2888_v12 = vsub.f32 %v7043_v15, %v7177_v62 }
 0x803   :  { %v2878_v42 = vsub.f32 %v7012_v49, %v7177_v62  ;;  %v2880_v15 = vsub.f32 %v7020_v6, %v7177_v62 }
 0x804   :  { %v2843_v33 = vmax.f32 %v2841_v23, %v8252_v29  ;;  %v2846_v3 = vmax.f32 %v2844_v5, %v7127_v51  ;;  %v2978_v17 = vmul.f32 1.442695, %v2886_v1  ;;  %v2982_v41 = vmul.f32 1.442695, %v2888_v12 }
 0x805   :  { %v2884_v5 = vsub.f32 %v7032_v39, %v7177_v62  ;;  %v2876_v39 = vsub.f32 %v7008_v46, %v7177_v62  ;;  %v2966_v12 = vmul.f32 1.442695, %v2880_v15  ;;  %v2866_v46 = vsub.f32 %v6976_v8, %v7177_v62 }
 0x806   :  { %v7165_v63 = vpop.f32.mrf.mxu1  ;;  %v2845_v28 = vmax.f32 %v2843_v33, %v7113_v16  ;;  %v2848_v38 = vmax.f32 %v2846_v3, %v7153_v47  ;;  %v2882_v33 = vsub.f32 %v7024_v35, %v7177_v62  ;;  %5239 = vpow2.f32 %v2978_v17 }
 0x807   :  { %5241 = vpow2.f32 %v2982_v41  ;;  %v2874_v35 = vsub.f32 %v7000_v40, %v7177_v62  ;;  %v2872_v41 = vsub.f32 %v6996_v44, %v7177_v62  ;;  %v2958_v40 = vmul.f32 1.442695, %v2876_v39 }
 0x808   :  { %v2847_v10 = vmax.f32 %v2845_v28, %v7140_v53  ;;  %v2970_v28 = vmul.f32 1.442695, %v2882_v33  ;;  %v2938_v8 = vmul.f32 1.442695, %v2866_v46 }
 0x809   :  { %v2954_v17 = vmul.f32 1.442695, %v2874_v35 }
 0x80a   :  { %v2849_v57 = vmax.f32 %v2847_v10, %v7165_v63  ;;  %5243 = vpow2.f32 %v2970_v28  ;;  %v2950_v28 = vmul.f32 1.442695, %v2872_v41 }
 0x80c   :  { %v5240_v10 = vpop.eup %5239 }
 0x80e   :  { %v7179_v54 = vpop.f32.mrf.mxu1 }
 0x80f   :  { %v2850_v11 = vmax.f32 %v2848_v38, %v7179_v54  ;;  %v2974_v38 = vmul.f32 1.442695, %v2884_v5 }
 0x811   :  { %v2851_v58 = vmax.f32 %v2849_v57, %v2850_v11  ;;  %v5242_v11 = vpop.eup %5241  ;;  %v2962_v57 = vmul.f32 1.442695, %v2878_v42  ;;  %5245 = vpow2.f32 %v2974_v38 }
 0x812   :  { %v7202_v49 = vpack.c.bf16 %v5242_v11, %v5240_v10  ;;  %v5244_v33 = vpop.eup %5243  ;;  %v2920_v10 = vsub.f32 %v7137_v24, %v7177_v62  ;;  %v8254_v11 = vld [vmem:[#allocation24_spill] sm:$0xff] }
 0x813   :  { %v2852_v23 = vrot.slane %v2851_v58, 4  ;;  %5247 = vpow2.f32 %v2962_v57  ;;  %v2862_v35 = vsub.f32 %v8254_v11, %v7177_v62  ;;  %v8255_v57 = vld [vmem:[#allocation20_spill] sm:$0xff] }
 0x814   :  { %5249 = vpow2.f32 %v2966_v12  ;;  %3082 = vmatpush.bf16.msrb.mxu2 %v7202_v49  ;;  %v2864_v39 = vsub.f32 %v8255_v57, %v7177_v62 }
 0x815   :  { %v2853_v3 = vmax.f32 %v2851_v58, %v2852_v23  ;;  %v2870_v58 = vsub.f32 %v6988_v43, %v7177_v62  ;;  %5251 = vpow2.f32 %v2954_v17  ;;  %v8253_v43 = vld [vmem:[#allocation25_spill] sm:$0xff]  ;;  %v8256_v17 = vld [vmem:[#allocation30_spill] sm:$0xff] }
 0x816   :  { %5253 = vpow2.f32 %v2958_v40  ;;  %v2858_v41 = vsub.f32 %v8256_v17, %v7177_v62 }
 0x817   :  { %v2854_v1 = vrot.slane %v2853_v3, 2  ;;  %v5246_v23 = vpop.eup %5245  ;;  %v2946_v42 = vmul.f32 1.442695, %v2870_v58 }
 0x818   :  { %v7213_v38 = vpack.c.bf16 %v5246_v23, %v5244_v33  ;;  %v3046_v33 = vmul.f32 1.442695, %v2920_v10 }
 0x819   :  { %v2855_v6 = vmax.f32 %v2853_v3, %v2854_v1  ;;  %v2868_v3 = vsub.f32 %v8253_v43, %v7177_v62  ;;  %v5248_v15 = vpop.eup %5247  ;;  %5255 = vpow2.f32 %v2946_v42  ;;  %v2934_v43 = vmul.f32 1.442695, %v2864_v39 }
 0x81a   :  { %v5250_v44 = vpop.eup %5249  ;;  %3083 = vmatpush.bf16.msrb.mxu2 %v7213_v38  ;;  %5257 = vpow2.f32 %v2950_v28  ;;  %v2914_v39 = vsub.f32 %v7098_v9, %v7177_v62 }
 0x81b   :  { %v2856_v5 = vrot.slane %v2855_v6, 1  ;;  %v2942_v12 = vmul.f32 1.442695, %v2868_v3  ;;  %v5252_v58 = vpop.eup %5251  ;;  %v7226_v40 = vpack.c.bf16 %v5250_v44, %v5248_v15  ;;  %5259 = vpow2.f32 %v2938_v8 }
 0x81c   :  { %v5254_v24 = vpop.eup %5253  ;;  %v2922_v15 = vmul.f32 1.442695, %v2858_v41  ;;  %v2916_v41 = vsub.f32 %v7109_v36, %v7177_v62 }
 0x81d   :  { %v7219_v1 = vmax.f32 %v2855_v6, %v2856_v5  ;;  %v8257_v6 = vld [vmem:[#allocation18_spill] sm:$0xff]  ;;  %v2930_v5 = vmul.f32 1.442695, %v2862_v35  ;;  %5261 = vpow2.f32 %v2942_v12  ;;  %v7237_v44 = vpack.c.bf16 %v5254_v24, %v5252_v58 }
 0x81e   :  { %v2860_v23 = vsub.f32 %v8257_v6, %v7177_v62  ;;  %3084 = vmatpush.bf16.msrb.mxu2 %v7226_v40  ;;  %5263 = vpow2.f32 %v3046_v33 }
 0x81f   :  { %v2879_v46 = vsub.f32 %v7034_v59, %v7219_v1  ;;  %v2887_v42 = vsub.f32 %v7055_v13, %v7219_v1  ;;  %v5256_v3 = vpop.eup %5255  ;;  %v2889_v28 = vsub.f32 %v7060_v52, %v7219_v1  ;;  %v2881_v59 = vsub.f32 %v7041_v61, %v7219_v1 }
 0x820   :  { %v5258_v10 = vpop.eup %5257  ;;  %v2926_v11 = vmul.f32 1.442695, %v2860_v23  ;;  %v2883_v35 = vsub.f32 %v7045_v50, %v7219_v1  ;;  %5265 = vpow2.f32 %v2930_v5  ;;  %v2885_v8 = vsub.f32 %v7051_v7, %v7219_v1 }
 0x821   :  { %v2964_v13 = vmul.f32 1.442695, %v2879_v46  ;;  %5267 = vpow2.f32 %v2934_v43  ;;  %v2980_v52 = vmul.f32 1.442695, %v2887_v42  ;;  %v5260_v57 = vpop.eup %5259  ;;  %v2984_v12 = vmul.f32 1.442695, %v2889_v28 }
 0x822   :  { %3085 = vmatpush.bf16.msrb.mxu2 %v7237_v44  ;;  %5269 = vpow2.f32 %v2922_v15  ;;  %v7248_v61 = vpack.c.bf16 %v5258_v10, %v5256_v3  ;;  %v2915_v50 = vsub.f32 %v7140_v53, %v7219_v1  ;;  %v2968_v17 = vmul.f32 1.442695, %v2881_v59 }
 0x823   :  { %v5262_v58 = vpop.eup %5261  ;;  %5271 = vpow2.f32 %v2926_v11  ;;  %v2972_v7 = vmul.f32 1.442695, %v2883_v35  ;;  %v2917_v9 = vsub.f32 %v7153_v47, %v7219_v1  ;;  %v2976_v33 = vmul.f32 1.442695, %v2885_v8 }
 0x824   :  { %5273 = vpow2.f32 %v2964_v13  ;;  %v7255_v24 = vpop.eup %5263  ;;  %v2918_v53 = vsub.f32 %v7123_v45, %v7177_v62  ;;  %v3034_v23 = vmul.f32 1.442695, %v2914_v39  ;;  %v7261_v46 = vpack.c.bf16 %v5262_v58, %v5260_v57 }
 0x825   :  { %5275 = vpow2.f32 %v2980_v52  ;;  %v3036_v5 = vmul.f32 1.442695, %v2915_v50  ;;  %v3038_v43 = vmul.f32 1.442695, %v2916_v41  ;;  %v2875_v47 = vsub.f32 %v7022_v18, %v7219_v1 }
 0x826   :  { %3086 = vmatpush.bf16.msrb.mxu2 %v7248_v61  ;;  %v5266_v6 = vpop.eup %5265  ;;  %5277 = vpow2.f32 %v2984_v12  ;;  %v3040_v28 = vmul.f32 1.442695, %v2917_v9  ;;  %v2877_v45 = vsub.f32 %v7030_v48, %v7219_v1  ;;  %v3042_v10 = vmul.f32 1.442695, %v2918_v53 }
 0x827   :  { %v5268_v36 = vpop.eup %5267  ;;  %5279 = vpow2.f32 %v2968_v17  ;;  %v2910_v35 = vsub.f32 %v7090_v55, %v7177_v62  ;;  %v2912_v18 = vsub.f32 %v7094_v21, %v7177_v62  ;;  %v2871_v48 = vsub.f32 %v7010_v4, %v7219_v1 }
 0x828   :  { %v5270_v42 = vpop.eup %5269  ;;  %5281 = vpow2.f32 %v2972_v7  ;;  %v7270_v59 = vpack.c.bf16 %v5268_v36, %v5266_v6  ;;  %v2956_v52 = vmul.f32 1.442695, %v2875_v47  ;;  %v2873_v39 = vsub.f32 %v7018_v60, %v7219_v1 }
 0x829   :  { %v5272_v3 = vpop.eup %5271  ;;  %5283 = vpow2.f32 %v2976_v33  ;;  %v2960_v12 = vmul.f32 1.442695, %v2877_v45  ;;  %v2906_v21 = vsub.f32 %v7082_v26, %v7177_v62  ;;  %v3026_v50 = vmul.f32 1.442695, %v2910_v35  ;;  %v8259_v35 = vld [vmem:[#allocation22_spill] sm:$0xff] }
 0x82a   :  { %3087 = vmatpush.bf16.msrb.mxu2 %v7261_v46  ;;  %v7266_v15 = vpop.eup %5273  ;;  %5285 = vpow2.f32 %v3034_v23  ;;  %v7281_v55 = vpack.c.bf16 %v5272_v3, %v5270_v42  ;;  %v2908_v4 = vsub.f32 %v7086_v27, %v7177_v62  ;;  %v3030_v7 = vmul.f32 1.442695, %v2912_v18 }
 0x82b   :  { %v5276_v11 = vpop.eup %5275  ;;  %5287 = vpow2.f32 %v3036_v5  ;;  %v2867_v60 = vsub.f32 %v6998_v34, %v7219_v1  ;;  %v2948_v33 = vmul.f32 1.442695, %v2871_v48  ;;  %v2902_v26 = vsub.f32 %v7074_v30, %v7177_v62  ;;  %v8260_v48 = vld [vmem:[#allocation19_spill] sm:$0xff] }
 0x82c   :  { %v5278_v13 = vpop.eup %5277  ;;  %5289 = vpow2.f32 %v3038_v43  ;;  %v2869_v53 = vsub.f32 %v7006_v19, %v7219_v1  ;;  %v2952_v23 = vmul.f32 1.442695, %v2873_v39  ;;  %v3018_v36 = vmul.f32 1.442695, %v2906_v21  ;;  %v8261_v39 = vld [vmem:[#allocation31_spill] sm:$0xff] }
 0x82d   :  { %v5280_v8 = vpop.eup %5279  ;;  %5291 = vpow2.f32 %v3040_v28  ;;  %v7285_v17 = vpack.c.bf16 %v5278_v13, %v5276_v11  ;;  %v8258_v34 = vmov 1065369472   ;;  %v2904_v3 = vsub.f32 %v7078_v37, %v7177_v62 }
 0x82e   :  { %3088 = vmatpush.bf16.msrb.mxu2 %v7270_v59  ;;  %v5282_v57 = vpop.eup %5281  ;;  %5293 = vpow2.f32 %v3042_v10  ;;  %v3022_v47 = vmul.f32 1.442695, %v2908_v4  ;;  %v2863_v19 = vsub.f32 %v6986_v25, %v7219_v1  ;;  %v2940_v28 = vmul.f32 1.442695, %v2867_v60  ;;  %v8263_v4 = vld [vmem:[#allocation16_spill] sm:$0xff] }
 0x82f   :  { %v5284_v58 = vpop.eup %5283  ;;  %5295 = vpow2.f32 %v2956_v52  ;;  %v2865_v10 = vsub.f32 %v6994_v2, %v7219_v1  ;;  %v2944_v11 = vmul.f32 1.442695, %v2869_v53  ;;  %v2898_v13 = vsub.f32 %v8259_v35, %v7177_v62 }
 0x830   :  { %v5286_v41 = vpop.eup %5285  ;;  %5297 = vpow2.f32 %v2960_v12  ;;  %v7299_v42 = vpack.c.bf16 %v5284_v58, %v5282_v57  ;;  %v3010_v18 = vmul.f32 1.442695, %v2902_v26  ;;  %v7318_v25 = vpack.c.bf16 %v5280_v8, %v7266_v15 }
 0x831   :  { %v5288_v9 = vpop.eup %5287  ;;  %5299 = vpow2.f32 %v3026_v50  ;;  %v2900_v52 = vsub.f32 %v8260_v48, %v7177_v62  ;;  %v3014_v57 = vmul.f32 1.442695, %v2904_v3  ;;  %v2859_v12 = vsub.f32 %v8261_v39, %v7219_v1  ;;  %v8262_v50 = vld [vmem:[#allocation23_spill] sm:$0xff] }
 0x832   :  { %3089 = vmatpush.bf16.msrb.mxu2 %v7281_v55  ;;  %v5290_v6 = vpop.eup %5289  ;;  %5301 = vpow2.f32 %v3030_v7  ;;  %v2932_v58 = vmul.f32 1.442695, %v2863_v19  ;;  %v2936_v15 = vmul.f32 1.442695, %v2865_v10  ;;  %v2894_v7 = vsub.f32 %v8263_v4, %v7177_v62  ;;  %v8265_v3 = vld [vmem:[#allocation27_spill] sm:$0xff]  ;;  %v8266_v10 = vld [vmem:[#allocation21_spill] sm:$0xff] }
 0x833   :  { %v5292_v27 = vpop.eup %5291  ;;  %v7297_v5 = vpack.c.bf16 %v5290_v6, %v5286_v41  ;;  %5303 = vpow2.f32 %v2948_v33  ;;  %v2861_v41 = vsub.f32 %v8262_v50, %v7219_v1  ;;  %v8264_v6 = vld [vmem:[#allocation29_spill] sm:$0xff]  ;;  %v3006_v53 = vmul.f32 1.442695, %v2900_v52 }
 0x834   :  { %v5294_v43 = vpop.eup %5293  ;;  %v7304_v30 = vpack.c.bf16 %v5292_v27, %v5288_v9  ;;  %5305 = vpow2.f32 %v2952_v23  ;;  %v3002_v9 = vmul.f32 1.442695, %v2898_v13  ;;  %v2896_v26 = vsub.f32 %v8264_v6, %v7177_v62 }
 0x835   :  { %3090 = vmatmul.bf16.vlgmr.msrb.gmra.mxu2 %v8258_v34  ;;  %v7309_v45 = vpack.c.bf16 %v7255_v24, %v5294_v43  ;;  %v5296_v37 = vpop.eup %5295  ;;  %5307 = vpow2.f32 %v3018_v36  ;;  %v2924_v27 = vmul.f32 1.442695, %v2859_v12  ;;  %v2928_v19 = vmul.f32 1.442695, %v2861_v41 }
 0x836   :  { %3108 = vmatpush.bf16.msra.mxu2 %v7285_v17  ;;  %v5298_v24 = vpop.eup %5297  ;;  %5309 = vpow2.f32 %v3022_v47  ;;  %v2890_v47 = vsub.f32 %v8265_v3, %v7177_v62  ;;  %v2919_v52 = vsub.f32 %v7165_v63, %v7219_v1  ;;  %v2913_v6 = vsub.f32 %v7127_v51, %v7219_v1 }
 0x837   :  { %3095 = vmatpush.bf16.msrb.mxu3 %v7309_v45  ;;  %v5300_v2 = vpop.eup %5299  ;;  %5311 = vpow2.f32 %v2940_v28  ;;  %v7330_v60 = vpack.c.bf16 %v5298_v24, %v5296_v37  ;;  %v2994_v37 = vmul.f32 1.442695, %v2894_v7  ;;  %v2998_v24 = vmul.f32 1.442695, %v2896_v26 }
 0x838   :  { %v5302_v21 = vpop.eup %5301  ;;  %5313 = vpow2.f32 %v2944_v11  ;;  %v2892_v11 = vsub.f32 %v8266_v10, %v7177_v62  ;;  %v3044_v63 = vmul.f32 1.442695, %v2919_v52  ;;  %v3032_v51 = vmul.f32 1.442695, %v2913_v6 }
 0x839   :  { %v5304_v8 = vpop.eup %5303  ;;  %5315 = vpow2.f32 %v3010_v18  ;;  %v7334_v36 = vpack.c.bf16 %v5302_v21, %v5300_v2  ;;  %v2921_v18 = vsub.f32 %v7179_v54, %v7219_v1  ;;  %v2986_v2 = vmul.f32 1.442695, %v2890_v47 }
 0x83a   :  { %3109 = vmatpush.bf16.msra.mxu2 %v7299_v42  ;;  %v5306_v33 = vpop.eup %5305  ;;  %5317 = vpow2.f32 %v3014_v57  ;;  %v2990_v12 = vmul.f32 1.442695, %v2892_v11  ;;  %v2909_v47 = vsub.f32 %v7100_v56, %v7219_v1  ;;  %v2903_v11 = vsub.f32 %v7088_v22, %v7219_v1 }
 0x83b   :  { %3096 = vmatpush.bf16.msrb.mxu3 %v7297_v5  ;;  %v5308_v23 = vpop.eup %5307  ;;  %5319 = vpow2.f32 %v2932_v58  ;;  %v7342_v35 = vpack.c.bf16 %v5306_v33, %v5304_v8  ;;  %v3048_v21 = vmul.f32 1.442695, %v2921_v18  ;;  %v2905_v56 = vsub.f32 %v7092_v31, %v7219_v1 }
 0x83c   :  { %v5310_v43 = vpop.eup %5309  ;;  %5321 = vpow2.f32 %v2936_v15  ;;  %v2899_v22 = vsub.f32 %v7080_v0, %v7219_v1  ;;  %v2901_v31 = vsub.f32 %v7084_v32, %v7219_v1  ;;  %v2897_v0 = vsub.f32 %v7076_v20, %v7219_v1 }
 0x83d   :  { %v5312_v28 = vpop.eup %5311  ;;  %5323 = vpow2.f32 %v3002_v9  ;;  %v7348_v57 = vpack.c.bf16 %v5310_v43, %v5308_v23  ;;  %v2911_v9 = vsub.f32 %v7113_v16, %v7219_v1  ;;  %v2907_v43 = vsub.f32 %v8252_v29, %v7219_v1 }
 0x83e   :  { %3110 = vmatpush.bf16.msra.mxu2 %v7318_v25  ;;  %v5314_v13 = vpop.eup %5313  ;;  %5325 = vpow2.f32 %v3006_v53 }
 0x83f   :  { %3097 = vmatpush.bf16.msrb.mxu3 %v7334_v36  ;;  %v5316_v48 = vpop.eup %5315  ;;  %5327 = vpow2.f32 %v2924_v27  ;;  %v7352_v54 = vpack.c.bf16 %v5314_v13, %v5312_v28  ;;  %v3028_v3 = vmul.f32 1.442695, %v2911_v9  ;;  %v3020_v29 = vmul.f32 1.442695, %v2907_v43 }
 0x840   :  { %v5318_v62 = vpop.eup %5317  ;;  %5329 = vpow2.f32 %v2928_v19 }
 0x841   :  { %v5320_v39 = vpop.eup %5319  ;;  %5331 = vpow2.f32 %v2994_v37  ;;  %v7354_v41 = vpack.c.bf16 %v5318_v62, %v5316_v48  ;;  %v3024_v37 = vmul.f32 1.442695, %v2909_v47  ;;  %v3016_v48 = vmul.f32 1.442695, %v2905_v56  ;;  %v4939_v56 = vld [vmem:[#allocation4 + $0x2c] sm:$0xf0] }
 0x842   :  { %3111 = vmatpush.bf16.msra.mxu2 %v7330_v60  ;;  %v5322_v58 = vpop.eup %5321  ;;  %5333 = vpow2.f32 %v2998_v24  ;;  %v3012_v24 = vmul.f32 1.442695, %v2903_v11 }
 0x843   :  { %3098 = vmatpush.bf16.msrb.mxu3 %v7348_v57  ;;  %v5324_v50 = vpop.eup %5323  ;;  %5335 = vpow2.f32 %v2986_v2  ;;  %v7358_v4 = vpack.c.bf16 %v5322_v58, %v5320_v39  ;;  %v2895_v2 = vsub.f32 %v7072_v14, %v7219_v1  ;;  %v3004_v39 = vmul.f32 1.442695, %v2899_v22  ;;  %v8268_v14 = vld [vmem:[#allocation28_spill] sm:$0xff]  ;;  %v4744_v22 = vld [vmem:[#allocation4 + $0x50] sm:$0xf] }
 0x844   :  { %v5326_v15 = vpop.eup %5325  ;;  %5337 = vpow2.f32 %v2990_v12  ;;  %v3008_v12 = vmul.f32 1.442695, %v2901_v31 }
 0x845   :  { %v5328_v8 = vpop.eup %5327  ;;  %5339 = vpow2.f32 %v3048_v21  ;;  %v7364_v26 = vpack.c.bf16 %v5326_v15, %v5324_v50  ;;  %v8267_v50 = vld [vmem:[#allocation17_spill] sm:$0xff]  ;;  %v2996_v15 = vmul.f32 1.442695, %v2895_v2  ;;  %v4746_v2 = vld [vmem:[#allocation4 + $0x70] sm:$0xf0] }
 0x846   :  { %3112 = vmatpush.bf16.msra.mxu2 %v7342_v35  ;;  %v5330_v7 = vpop.eup %5329  ;;  %5341 = vpow2.f32 %v3044_v63  ;;  %v2891_v63 = vsub.f32 %v8267_v50, %v7219_v1  ;;  %v3412_v50 = vpop.trf.xlu2 }
 0x847   :  { %3099 = vmatpush.bf16.msrb.mxu3 %v7354_v41  ;;  %v5332_v33 = vpop.eup %5331  ;;  %v7368_v23 = vpack.c.bf16 %v5330_v7, %v5328_v8  ;;  %5343 = vpow2.f32 %v3028_v3  ;;  %v2893_v8 = vsub.f32 %v8268_v14, %v7219_v1  ;;  %v3000_v7 = vmul.f32 1.442695, %v2897_v0 }
 0x848   :  { %v5334_v53 = vpop.eup %5333  ;;  %5345 = vpow2.f32 %v3032_v51  ;;  %v2988_v6 = vmul.f32 1.442695, %v2891_v63 }
 0x849   :  { %v5336_v27 = vpop.eup %5335  ;;  %v7374_v19 = vpack.c.bf16 %v5334_v53, %v5332_v33  ;;  %5347 = vpow2.f32 %v3020_v29  ;;  %v2992_v53 = vmul.f32 1.442695, %v2893_v8  ;;  %v4736_v29 = vld [vmem:[#allocation4 + $0x10] sm:$0xf] }
 0x84a   :  { %3113 = vmatpush.bf16.msra.mxu2 %v7352_v54  ;;  %v5338_v16 = vpop.eup %5337  ;;  %5349 = vpow2.f32 %v3024_v37  ;;  %v4737_v37 = vor.u32 %v4939_v56, %v4736_v29 }
 0x84b   :  { %3100 = vmatpush.bf16.msrb.mxu3 %v7364_v26  ;;  %v5340_v28 = vpop.eup %5339  ;;  %v7384_v13 = vpack.c.bf16 %v5338_v16, %v5336_v27  ;;  %5351 = vpow2.f32 %v3012_v24  ;;  %v4941_v24 = vld [vmem:[#allocation4 + $0x6c] sm:$0xf0] }
 0x84c   :  { %v5342_v10 = vpop.eup %5341  ;;  %5353 = vpow2.f32 %v3016_v48  ;;  %v4745_v31 = vor.u32 %v4941_v24, %v4744_v22  ;;  %v4938_v48 = vld [vmem:[#allocation4 + $0x14] sm:$0xf] }
 0x84d   :  { %v7386_v18 = vpack.c.bf16 %v5340_v28, %v5342_v10  ;;  %v5344_v52 = vpop.eup %5343  ;;  %5355 = vpow2.f32 %v3004_v39 }
 0x84e   :  { %3114 = vmatpush.bf16.msra.mxu2 %v7358_v4  ;;  %v5346_v62 = vpop.eup %5345  ;;  %5357 = vpow2.f32 %v3008_v12  ;;  %v7487_v14 = vpop.trf.xlu2 }
 0x84f   :  { %3101 = vmatpush.bf16.msrb.mxu3 %v7374_v19  ;;  %v5348_v32 = vpop.eup %5347  ;;  %v7402_v58 = vpack.c.bf16 %v5346_v62, %v5344_v52  ;;  %5359 = vpow2.f32 %v2996_v15  ;;  %v4738_v52 = vld [vmem:[#allocation4 + $0x30] sm:$0xf0] }
 0x850   :  { %v5350_v21 = vpop.eup %5349  ;;  %5361 = vpow2.f32 %v3000_v7  ;;  %v4741_v62 = vor.u32 %v4938_v48, %v4738_v52 }
 0x851   :  { %v5352_v20 = vpop.eup %5351  ;;  %v7410_v9 = vpack.c.bf16 %v5350_v21, %v5348_v32  ;;  %5363 = vpow2.f32 %v2988_v6  ;;  %v4946_v32 = vld [vmem:[#allocation2 + $0x1c] sm:$0xf] }
 0x852   :  { %3115 = vmatpush.bf16.msra.mxu2 %v7368_v23  ;;  %v5354_v33 = vpop.eup %5353  ;;  %5365 = vpow2.f32 %v2992_v53 }
 0x853   :  { %3102 = vmatpush.bf16.msrb.mxu3 %v7384_v13  ;;  %v5356_v27 = vpop.eup %5355  ;;  %v7414_v43 = vpack.c.bf16 %v5354_v33, %v5352_v20 }
 0x854   :  { %v5358_v1 = vpop.eup %5357 }
 0x855   :  { %3116 = vmatmul.bf16.vlgmr.msra.gmra.mxu2 %v8258_v34  ;;  %v5360_v3 = vpop.eup %5359  ;;  %v7418_v16 = vpack.c.bf16 %v5358_v1, %v5356_v27 }
 0x856   :  { %3166 = vmatpush.bf16.msrb.mxu2 %v7202_v49  ;;  %3103 = vmatmul.bf16.vlgmr.msrb.gmra.mxu3 %v8258_v34  ;;  %v5362_v47 = vpop.eup %5361  ;;  %v3414_v20 = vpop.trf.xlu2 }
 0x857   :  { %3121 = vmatpush.bf16.msra.mxu3 %v7386_v18  ;;  %v5364_v51 = vpop.eup %5363  ;;  %v7422_v28 = vpack.c.bf16 %v5362_v47, %v5360_v3 }
 0x858   :  { %v5366_v10 = vpop.eup %5365 }
 0x859   :  { %v7427_v11 = vpack.c.bf16 %v5366_v10, %v5364_v51 }
 0x85a   :  { %3167 = vmatpush.bf16.msrb.mxu2 %v7213_v38 }
 0x85b   :  { %3122 = vmatpush.bf16.msra.mxu3 %v7304_v30 }
 0x85e   :  { %3168 = vmatpush.bf16.msrb.mxu2 %v7226_v40  ;;  %v7490_v6 = vpop.trf.xlu2 }
 0x85f   :  { %3123 = vmatpush.bf16.msra.mxu3 %v7402_v58 }
 0x862   :  { %3169 = vmatpush.bf16.msrb.mxu2 %v7237_v44 }
 0x863   :  { %3124 = vmatpush.bf16.msra.mxu3 %v7410_v9 }
 0x866   :  { %3170 = vmatpush.bf16.msrb.mxu2 %v7248_v61  ;;  %v3416_v27 = vpop.trf.xlu2 }
 0x867   :  { %3125 = vmatpush.bf16.msra.mxu3 %v7414_v43 }
 0x86a   :  { %3171 = vmatpush.bf16.msrb.mxu2 %v7261_v46 }
 0x86b   :  { %3126 = vmatpush.bf16.msra.mxu3 %v7418_v16 }
 0x86e   :  { %3172 = vmatpush.bf16.msrb.mxu2 %v7270_v59 }
 0x86f   :  { %3127 = vmatpush.bf16.msra.mxu3 %v7422_v28 }
 0x872   :  { %3173 = vmatpush.bf16.msrb.mxu2 %v7281_v55 }
 0x873   :  { %3128 = vmatpush.bf16.msra.mxu3 %v7427_v11 }
 0x875   :  { %3174 = vmatmul.bf16.vlgmr.msrb.gmra.mxu2 %v4737_v37 }
 0x876   :  { %3204 = vmatpush.bf16.msra.mxu2 %v7285_v17  ;;  %3129 = vmatmul.bf16.vlgmr.msra.gmra.mxu3 %v8258_v34 }
 0x877   :  { %3185 = vmatpush.bf16.msrb.mxu3 %v7309_v45 }
 0x87a   :  { %3205 = vmatpush.bf16.msra.mxu2 %v7299_v42 }
 0x87b   :  { %3186 = vmatpush.bf16.msrb.mxu3 %v7297_v5 }
 0x87e   :  { %3206 = vmatpush.bf16.msra.mxu2 %v7318_v25 }
 0x87f   :  { %3187 = vmatpush.bf16.msrb.mxu3 %v7334_v36 }
 0x882   :  { %3207 = vmatpush.bf16.msra.mxu2 %v7330_v60 }
 0x883   :  { %3188 = vmatpush.bf16.msrb.mxu3 %v7348_v57 }
 0x885   :  { %3179 = vmatmul.bf16.gmra.mxu2 %v4745_v31 }
 0x886   :  { %3208 = vmatpush.bf16.msra.mxu2 %v7342_v35 }
 0x887   :  { %3189 = vmatpush.bf16.msrb.mxu3 %v7354_v41 }
 0x88a   :  { %3209 = vmatpush.bf16.msra.mxu2 %v7352_v54 }
 0x88b   :  { %3190 = vmatpush.bf16.msrb.mxu3 %v7364_v26 }
 0x88e   :  { %3210 = vmatpush.bf16.msra.mxu2 %v7358_v4 }
 0x88f   :  { %3191 = vmatpush.bf16.msrb.mxu3 %v7374_v19 }
 0x892   :  { %3211 = vmatpush.bf16.msra.mxu2 %v7368_v23 }
 0x893   :  { %3192 = vmatpush.bf16.msrb.mxu3 %v7384_v13 }
 0x895   :  { %3212 = vmatmul.bf16.vlgmr.msra.gmra.mxu2 %v4737_v37 }
 0x896   :  { %3262 = vmatpush.bf16.msrb.mxu2 %v7202_v49  ;;  %3193 = vmatmul.bf16.vlgmr.msrb.gmra.mxu3 %v4741_v62  ;;  %v4940_v49 = vld [vmem:[#allocation4 + $0x54] sm:$0xf] }
 0x897   :  { %3223 = vmatpush.bf16.msra.mxu3 %v7386_v18 }
 0x89a   :  { %3263 = vmatpush.bf16.msrb.mxu2 %v7213_v38  ;;  %v4749_v38 = vor.u32 %v4940_v49, %v4746_v2 }
 0x89b   :  { %3224 = vmatpush.bf16.msra.mxu3 %v7304_v30 }
 0x89e   :  { %3264 = vmatpush.bf16.msrb.mxu2 %v7226_v40  ;;  %v4752_v40 = vld [vmem:[#allocation7 + $0x10] sm:$0xf] }
 0x89f   :  { %3225 = vmatpush.bf16.msra.mxu3 %v7402_v58 }
 0x8a2   :  { %3265 = vmatpush.bf16.msrb.mxu2 %v7237_v44  ;;  %v4943_v44 = vld [vmem:[#allocation7 + $0x2c] sm:$0xf0] }
 0x8a3   :  { %3226 = vmatpush.bf16.msra.mxu3 %v7410_v9 }
 0x8a5   :  { %3217 = vmatmul.bf16.gmra.mxu2 %v4745_v31 }
 0x8a6   :  { %3266 = vmatpush.bf16.msrb.mxu2 %v7248_v61  ;;  %3198 = vmatmul.bf16.gmra.mxu3 %v4749_v38  ;;  %v4753_v61 = vor.u32 %v4943_v44, %v4752_v40 }
 0x8a7   :  { %3227 = vmatpush.bf16.msra.mxu3 %v7414_v43 }
 0x8aa   :  { %3267 = vmatpush.bf16.msrb.mxu2 %v7261_v46  ;;  %v4760_v46 = vld [vmem:[#allocation7 + $0x50] sm:$0xf] }
 0x8ab   :  { %3228 = vmatpush.bf16.msra.mxu3 %v7418_v16 }
 0x8ae   :  { %3268 = vmatpush.bf16.msrb.mxu2 %v7270_v59  ;;  %v4945_v59 = vld [vmem:[#allocation7 + $0x6c] sm:$0xf0] }
 0x8af   :  { %3229 = vmatpush.bf16.msra.mxu3 %v7422_v28 }
 0x8b2   :  { %3269 = vmatpush.bf16.msrb.mxu2 %v7281_v55  ;;  %v4761_v55 = vor.u32 %v4945_v59, %v4760_v46 }
 0x8b3   :  { %3230 = vmatpush.bf16.msra.mxu3 %v7427_v11 }
 0x8b5   :  { %3270 = vmatmul.bf16.vlgmr.msrb.gmra.mxu2 %v4753_v61 }
 0x8b6   :  { %3300 = vmatpush.bf16.msra.mxu2 %v7285_v17  ;;  %3231 = vmatmul.bf16.vlgmr.msra.gmra.mxu3 %v4741_v62  ;;  %v4792_v17 = vld [vmem:[#allocation2 + $0x58] sm:$0xf] }
 0x8b7   :  { %3281 = vmatpush.bf16.msrb.mxu3 %v7309_v45  ;;  %v4784_v45 = vld [vmem:[#allocation2 + $0x18] sm:$0xf] }
 0x8ba   :  { %3301 = vmatpush.bf16.msra.mxu2 %v7299_v42 }
 0x8bb   :  { %3282 = vmatpush.bf16.msrb.mxu3 %v7297_v5  ;;  %v4949_v5 = vld [vmem:[#allocation2 + $0x74] sm:$0xf0] }
 0x8bc   :  { %v4793_v42 = vor.u32 %v4949_v5, %v4792_v17 }
 0x8be   :  { %3302 = vmatpush.bf16.msra.mxu2 %v7318_v25  ;;  %v4947_v25 = vld [vmem:[#allocation2 + $0x34] sm:$0xf0] }
 0x8bf   :  { %3283 = vmatpush.bf16.msrb.mxu3 %v7334_v36  ;;  %v4942_v36 = vld [vmem:[#allocation7 + $0x14] sm:$0xf] }
 0x8c2   :  { %3303 = vmatpush.bf16.msra.mxu2 %v7330_v60  ;;  %v4785_v60 = vor.u32 %v4947_v25, %v4784_v45 }
 0x8c3   :  { %3284 = vmatpush.bf16.msrb.mxu3 %v7348_v57  ;;  %v3091_v57 = vpop.f32.mrf.mxu2 }
 0x8c5   :  { %3275 = vmatmul.bf16.gmra.mxu2 %v4761_v55 }
 0x8c6   :  { %3304 = vmatpush.bf16.msra.mxu2 %v7342_v35  ;;  %3236 = vmatmul.bf16.gmra.mxu3 %v4749_v38  ;;  %v4754_v35 = vld [vmem:[#allocation7 + $0x30] sm:$0xf0] }
 0x8c7   :  { %3285 = vmatpush.bf16.msrb.mxu3 %v7354_v41 }
 0x8ca   :  { %3305 = vmatpush.bf16.msra.mxu2 %v7352_v54  ;;  %v4757_v54 = vor.u32 %v4942_v36, %v4754_v35 }
 0x8cb   :  { %3286 = vmatpush.bf16.msrb.mxu3 %v7364_v26  ;;  %v3093_v41 = vpop.f32.mrf.mxu2  ;;  %v4762_v26 = vld [vmem:[#allocation7 + $0x70] sm:$0xf0] }
 0x8ce   :  { %3306 = vmatpush.bf16.msra.mxu2 %v7358_v4  ;;  %v4944_v4 = vld [vmem:[#allocation7 + $0x54] sm:$0xf] }
 0x8cf   :  { %3287 = vmatpush.bf16.msrb.mxu3 %v7374_v19 }
 0x8d2   :  { %3307 = vmatpush.bf16.msra.mxu2 %v7368_v23 }
 0x8d3   :  { %3288 = vmatpush.bf16.msrb.mxu3 %v7384_v13  ;;  %v4765_v13 = vor.u32 %v4944_v4, %v4762_v26 }
 0x8d5   :  { %3308 = vmatmul.bf16.vlgmr.msra.gmra.mxu2 %v4753_v61 }
 0x8d6   :  { %3502 = vmatpush.bf16.msrb.mxu2 %v4793_v42  ;;  %3289 = vmatmul.bf16.vlgmr.msrb.gmra.mxu3 %v4757_v54 }
 0x8d7   :  { %3319 = vmatpush.bf16.msra.mxu3 %v7386_v18  ;;  %v4794_v18 = vld [vmem:[#allocation2 + $0x78] sm:$0xf0] }
 0x8d8   :  { %v3117_v19 = vpop.f32.mrf.mxu2 }
 0x8d9   :  { %v3104_v23 = vpop.f32.mrf.mxu3 }
 0x8da   :  { %3503 = vmatpush.bf16.msrb.mxu2 %v4785_v60  ;;  %v3105_v33 = vadd.f32 %v3104_v23, %v3091_v57 }
 0x8db   :  { %3320 = vmatpush.bf16.msra.mxu3 %v7304_v30  ;;  %v4948_v30 = vld [vmem:[#allocation2 + $0x5c] sm:$0xf] }
 0x8dc   :  { %v4797_v12 = vor.u32 %v4948_v30, %v4794_v18  ;;  %5367 = vrcp.f32 %v3105_v33 }
 0x8df   :  { %3321 = vmatpush.bf16.msra.mxu3 %v7402_v58  ;;  %v4786_v58 = vld [vmem:[#allocation2 + $0x38] sm:$0xf0] }
 0x8e0   :  { %v3119_v0 = vpop.f32.mrf.mxu2  ;;  %v4789_v21 = vor.u32 %v4946_v32, %v4786_v58 }
 0x8e1   :  { %v3106_v39 = vpop.f32.mrf.mxu3 }
 0x8e3   :  { %3322 = vmatpush.bf16.msra.mxu3 %v7410_v9 }
 0x8e5   :  { %3313 = vmatmul.bf16.gmra.mxu2 %v4761_v55 }
 0x8e6   :  { %3294 = vmatmul.bf16.gmra.mxu3 %v4765_v13 }
 0x8e7   :  { %3323 = vmatpush.bf16.msra.mxu3 %v7414_v43  ;;  %v5368_v43 = vpop.eup %5367 }
 0x8e8   :  { %v7494_v3 = vperm.slane %v5368_v43, 0 }
 0x8eb   :  { %3324 = vmatpush.bf16.msra.mxu3 %v7418_v16 }
 0x8ef   :  { %3325 = vmatpush.bf16.msra.mxu3 %v7422_v28  ;;  %v7497_v28 = vpop.trf.xlu2 }
 0x8f3   :  { %3326 = vmatpush.bf16.msra.mxu3 %v7427_v11 }
 0x8f5   :  { %4798 = vmatmul.msk.bf16.vlgmr.msrb.gmra.mxu2 %vm195_vm0, %v3412_v50 }
 0x8f6   :  { %3327 = vmatmul.bf16.vlgmr.msra.gmra.mxu3 %v4757_v54 }
 0x8f7   :  { %3591 = vmatpush.bf16.msrb.mxu3 %v4797_v12  ;;  %v3418_v37 = vpop.trf.xlu2 }
 0x8f8   :  { %v3175_v63 = vpop.f32.mrf.mxu2 }
 0x8f9   :  { %v3130_v15 = vpop.f32.mrf.mxu3 }
 0x8fa   :  { %v3131_v52 = vadd.f32 %v3130_v15, %v3117_v19 }
 0x8fb   :  { %3592 = vmatpush.bf16.msrb.mxu3 %v4789_v21 }
 0x8fc   :  { %5369 = vrcp.f32 %v3131_v52 }
 0x8ff   :  { %v7503_v62 = vpop.trf.xlu2 }
 0x900   :  { %v3177_v8 = vpop.f32.mrf.mxu2 }
 0x901   :  { %v3132_v7 = vpop.f32.mrf.mxu3 }
 0x902   :  { %v5370_v61 = vpop.eup %5369 }
 0x903   :  { %v7508_v59 = vperm.slane %v5370_v61, 0 }
 0x905   :  { %4799 = vmatmul.msk.bf16.gmra.mxu2 %vm195_vm0, %v3414_v20 }
 0x906   :  { %3332 = vmatmul.bf16.gmra.mxu3 %v4765_v13 }
 0x907   :  { %v3420_v44 = vpop.trf.xlu2 }
 0x908   :  { %v3180_v9 = vpop.f32.mrf.mxu2 }
 0x90f   :  { %v7511_v42 = vpop.trf.xlu2 }
 0x910   :  { %v3182_v53 = vpop.f32.mrf.mxu2 }
 0x915   :  { %4800 = vmatmul.msk.bf16.gmra.mxu2 %vm195_vm0, %v3416_v27 }
 0x916   :  { %4814 = vmatmul.msk.bf16.vlgmr.msrb.gmra.mxu3 %vm195_vm0, %v3412_v50 }
 0x917   :  { %v3422_v35 = vpop.trf.xlu2 }
 0x918   :  { %v3213_v47 = vpop.f32.mrf.mxu2 }
 0x919   :  { %v3194_v1 = vpop.f32.mrf.mxu3 }
 0x91a   :  { %v3195_v16 = vadd.f32 %v3194_v1, %v3175_v63 }
 0x91c   :  { %v3340_v51 = vmul.f32 %v7494_v3, %v3195_v16 }
 0x91e   :  { %3349 = vst [vmem:[#allocation9 + $0x20] sm:$0xff] %v3340_v51 }
 0x91f   :  { %v7517_v26 = vpop.trf.xlu2 }
 0x920   :  { %v3215_v29 = vpop.f32.mrf.mxu2 }
 0x921   :  { %v3196_v10 = vpop.f32.mrf.mxu3 }
 0x922   :  { %v3197_v11 = vadd.f32 %v3196_v10, %v3177_v8 }
 0x924   :  { %v3342_v56 = vmul.f32 %v7494_v3, %v3197_v11 }
 0x925   :  { %4801 = vmatmul.msk.bf16.gmra.mxu2 %vm195_vm0, %v3418_v37 }
 0x926   :  { %3351 = vst [vmem:[#allocation9 + $0x60] sm:$0xff] %v3342_v56  ;;  %4815 = vmatmul.msk.bf16.gmra.mxu3 %vm195_vm0, %v3414_v20 }
 0x927   :  { %v3424_v18 = vpop.trf.xlu2 }
 0x928   :  { %v3218_v31 = vpop.f32.mrf.mxu2 }
 0x929   :  { %v3199_v22 = vpop.f32.mrf.mxu3 }
 0x92a   :  { %v3200_v24 = vadd.f32 %v3199_v22, %v3180_v9 }
 0x92c   :  { %v3344_v48 = vmul.f32 %v7494_v3, %v3200_v24 }
 0x92e   :  { %3353 = vst [vmem:[#allocation9 + $0xa0] sm:$0xff] %v3344_v48 }
 0x92f   :  { %v7523_v58 = vpop.trf.xlu2 }
 0x930   :  { %v3220_v38 = vpop.f32.mrf.mxu2 }
 0x931   :  { %v3201_v49 = vpop.f32.mrf.mxu3 }
 0x932   :  { %v3202_v2 = vadd.f32 %v3201_v49, %v3182_v53 }
 0x934   :  { %v3346_v40 = vmul.f32 %v7494_v3, %v3202_v2 }
 0x935   :  { %4802 = vmatmul.msk.bf16.gmra.mxu2 %vm195_vm0, %v3420_v44 }
 0x936   :  { %3355 = vst [vmem:[#allocation9 + $0xe0] sm:$0xff] %v3346_v40  ;;  %4816 = vmatmul.msk.bf16.gmra.mxu3 %vm195_vm0, %v3416_v27 }
 0x937   :  { %v3426_v8 = vpop.trf.xlu2 }
 0x938   :  { %v3271_v17 = vpop.f32.mrf.mxu2 }
 0x939   :  { %v3232_v46 = vpop.f32.mrf.mxu3 }
 0x93a   :  { %v3233_v55 = vadd.f32 %v3232_v46, %v3213_v47 }
 0x93c   :  { %v3341_v5 = vmul.f32 %v7508_v59, %v3233_v55 }
 0x93e   :  { %3350 = vst [vmem:[#allocation9 + $0x28] sm:$0xff] %v3341_v5 }
 0x940   :  { %v3273_v60 = vpop.f32.mrf.mxu2 }
 0x941   :  { %v3234_v45 = vpop.f32.mrf.mxu3 }
 0x942   :  { %v3235_v25 = vadd.f32 %v3234_v45, %v3215_v29 }
 0x944   :  { %v3343_v36 = vmul.f32 %v7508_v59, %v3235_v25 }
 0x945   :  { %4803 = vmatmul.msk.bf16.gmra.mxu2 %vm195_vm0, %v3422_v35 }
 0x946   :  { %3352 = vst [vmem:[#allocation9 + $0x68] sm:$0xff] %v3343_v36  ;;  %4817 = vmatmul.msk.bf16.gmra.mxu3 %vm195_vm0, %v3418_v37 }
 0x948   :  { %v3276_v41 = vpop.f32.mrf.mxu2 }
 0x949   :  { %v3237_v57 = vpop.f32.mrf.mxu3 }
 0x94a   :  { %v3238_v54 = vadd.f32 %v3237_v57, %v3218_v31 }
 0x94c   :  { %v3345_v4 = vmul.f32 %v7508_v59, %v3238_v54 }
 0x94e   :  { %3354 = vst [vmem:[#allocation9 + $0xa8] sm:$0xff] %v3345_v4 }
 0x950   :  { %v3278_v13 = vpop.f32.mrf.mxu2 }
 0x951   :  { %v3239_v23 = vpop.f32.mrf.mxu3 }
 0x952   :  { %v3240_v19 = vadd.f32 %v3239_v23, %v3220_v38 }
 0x954   :  { %v3347_v30 = vmul.f32 %v7508_v59, %v3240_v19 }
 0x955   :  { %4804 = vmatmul.msk.bf16.gmra.mxu2 %vm195_vm0, %v3424_v18 }
 0x956   :  { %3356 = vst [vmem:[#allocation9 + $0xe8] sm:$0xff] %v3347_v30  ;;  %4818 = vmatmul.msk.bf16.gmra.mxu3 %vm195_vm0, %v3420_v44 }
 0x958   :  { %v3309_v12 = vpop.f32.mrf.mxu2 }
 0x959   :  { %v3290_v39 = vpop.f32.mrf.mxu3 }
 0x95a   :  { %v3291_v0 = vadd.f32 %v3290_v39, %v3271_v17 }
 0x95c   :  { %v3357_v32 = vmul.f32 %v7494_v3, %v3291_v0 }
 0x95e   :  { %3366 = vst [vmem:[#allocation10 + $0x20] sm:$0xff] %v3357_v32 }
 0x960   :  { %v3311_v63 = vpop.f32.mrf.mxu2 }
 0x961   :  { %v3292_v21 = vpop.f32.mrf.mxu3 }
 0x962   :  { %v3293_v50 = vadd.f32 %v3292_v21, %v3273_v60 }
 0x964   :  { %v3359_v15 = vmul.f32 %v7494_v3, %v3293_v50 }
 0x965   :  { %4805 = vmatmul.msk.bf16.gmra.mxu2 %vm195_vm0, %v3426_v8 }
 0x966   :  { %3368 = vst [vmem:[#allocation10 + $0x60] sm:$0xff] %v3359_v15  ;;  %4819 = vmatmul.msk.bf16.gmra.mxu3 %vm195_vm0, %v3422_v35 }
 0x968   :  { %v3314_v9 = vpop.f32.mrf.mxu2 }
 0x969   :  { %v3295_v7 = vpop.f32.mrf.mxu3 }
 0x96a   :  { %v3296_v20 = vadd.f32 %v3295_v7, %v3276_v41  ;;  %v3427_v41 = vpop.trf.xlu2 }
 0x96c   :  { %v3361_v33 = vmul.f32 %v7494_v3, %v3296_v20 }
 0x96e   :  { %3370 = vst [vmem:[#allocation10 + $0xa0] sm:$0xff] %v3361_v33 }
 0x970   :  { %v3316_v43 = vpop.f32.mrf.mxu2 }
 0x971   :  { %v3297_v53 = vpop.f32.mrf.mxu3 }
 0x972   :  { %v3298_v27 = vadd.f32 %v3297_v53, %v3278_v13 }
 0x974   :  { %v3363_v1 = vmul.f32 %v7494_v3, %v3298_v27 }
 0x975   :  { %4806 = vmatmul.msk.bf16.gmra.mxu2 %vm195_vm0, %v7487_v14 }
 0x976   :  { %3372 = vst [vmem:[#allocation10 + $0xe0] sm:$0xff] %v3363_v1  ;;  %4820 = vmatmul.msk.bf16.gmra.mxu3 %vm195_vm0, %v3424_v18 }
 0x978   :  { %v7533_v51 = vpop.f32.mrf.mxu2 }
 0x979   :  { %v3328_v16 = vpop.f32.mrf.mxu3  ;;  %8269 = vst [vmem:[#allocation26_spill] sm:$0xff] %v7533_v51 }
 0x97a   :  { %v3329_v47 = vadd.f32 %v3328_v16, %v3309_v12 }
 0x97c   :  { %v3358_v10 = vmul.f32 %v7508_v59, %v3329_v47 }
 0x97e   :  { %3367 = vst [vmem:[#allocation10 + $0x28] sm:$0xff] %v3358_v10 }
 0x980   :  { %v7536_v56 = vpop.f32.mrf.mxu2 }
 0x981   :  { %v3330_v11 = vpop.f32.mrf.mxu3  ;;  %8270 = vst [vmem:[#allocation25_spill] sm:$0xff] %v7536_v56 }
 0x982   :  { %v3331_v29 = vadd.f32 %v3330_v11, %v3311_v63 }
 0x984   :  { %v3360_v37 = vmul.f32 %v7508_v59, %v3331_v29 }
 0x985   :  { %4807 = vmatmul.msk.bf16.gmra.mxu2 %vm195_vm0, %v7490_v6 }
 0x986   :  { %3369 = vst [vmem:[#allocation10 + $0x68] sm:$0xff] %v3360_v37  ;;  %4821 = vmatmul.msk.bf16.gmra.mxu3 %vm195_vm0, %v3426_v8 }
 0x988   :  { %v7542_v24 = vpop.f32.mrf.mxu2 }
 0x989   :  { %v3333_v3 = vpop.f32.mrf.mxu3  ;;  %8271 = vst [vmem:[#allocation24_spill] sm:$0xff] %v7542_v24 }
 0x98a   :  { %v3334_v22 = vadd.f32 %v3333_v3, %v3314_v9  ;;  %v3674_v3 = vmax.f32 %v7533_v51, %v7542_v24 }
 0x98c   :  { %v3362_v31 = vmul.f32 %v7508_v59, %v3334_v22 }
 0x98e   :  { %3371 = vst [vmem:[#allocation10 + $0xa8] sm:$0xff] %v3362_v31 }
 0x990   :  { %v7545_v49 = vpop.f32.mrf.mxu2 }
 0x991   :  { %v3335_v48 = vpop.f32.mrf.mxu3  ;;  %8272 = vst [vmem:[#allocation20_spill] sm:$0xff] %v7545_v49  ;;  %v3675_v37 = vmax.f32 %v7536_v56, %v7545_v49 }
 0x992   :  { %v3336_v52 = vadd.f32 %v3335_v48, %v3316_v43 }
 0x994   :  { %v3364_v2 = vmul.f32 %v7508_v59, %v3336_v52 }
 0x995   :  { %4808 = vmatmul.msk.bf16.gmra.mxu2 %vm195_vm0, %v7497_v28 }
 0x996   :  { %3373 = vst [vmem:[#allocation10 + $0xe8] sm:$0xff] %v3364_v2  ;;  %4822 = vmatmul.msk.bf16.gmra.mxu3 %vm195_vm0, %v7487_v14 }
 0x998   :  { %v7554_v40 = vpop.f32.mrf.mxu2 }
 0x999   :  { %v7552_v38 = vpop.f32.mrf.mxu3  ;;  %8274 = vst [vmem:[#allocation18_spill] sm:$0xff] %v7554_v40  ;;  %v3676_v48 = vmax.f32 %v3674_v3, %v7554_v40 }
 0x99a   :  { %8273 = vst [vmem:[#allocation30_spill] sm:$0xff] %v7552_v38 }
 0x9a0   :  { %v7558_v61 = vpop.f32.mrf.mxu2 }
 0x9a1   :  { %v7556_v44 = vpop.f32.mrf.mxu3  ;;  %8276 = vst [vmem:[#allocation19_spill] sm:$0xff] %v7558_v61  ;;  %v3677_v22 = vmax.f32 %v3675_v37, %v7558_v61 }
 0x9a2   :  { %8275 = vst [vmem:[#allocation22_spill] sm:$0xff] %v7556_v44 }
 0x9a5   :  { %4809 = vmatmul.msk.bf16.gmra.mxu2 %vm195_vm0, %v7503_v62 }
 0x9a6   :  { %4823 = vmatmul.msk.bf16.gmra.mxu3 %vm195_vm0, %v7490_v6 }
 0x9a8   :  { %v7566_v14 = vpop.f32.mrf.mxu2 }
 0x9a9   :  { %v7564_v46 = vpop.f32.mrf.mxu3 }
 0x9b0   :  { %v7570_v55 = vpop.f32.mrf.mxu2 }
 0x9b1   :  { %v7568_v59 = vpop.f32.mrf.mxu3  ;;  %v3679_v52 = vmax.f32 %v3677_v22, %v7570_v55 }
 0x9b5   :  { %4810 = vmatmul.msk.bf16.gmra.mxu2 %vm195_vm0, %v7511_v42 }
 0x9b6   :  { %4824 = vmatmul.msk.bf16.gmra.mxu3 %vm195_vm0, %v7497_v28 }
 0x9b8   :  { %v7578_v6 = vpop.f32.mrf.mxu2 }
 0x9b9   :  { %v7576_v17 = vpop.f32.mrf.mxu3 }
 0x9c0   :  { %v7582_v45 = vpop.f32.mrf.mxu2 }
 0x9c1   :  { %v7580_v5 = vpop.f32.mrf.mxu3  ;;  %v3681_v34 = vmax.f32 %v3679_v52, %v7582_v45 }
 0x9c5   :  { %4811 = vmatmul.msk.bf16.gmra.mxu2 %vm195_vm0, %v7517_v26 }
 0x9c6   :  { %4825 = vmatmul.msk.bf16.gmra.mxu3 %vm195_vm0, %v7503_v62 }
 0x9c8   :  { %v7590_v28 = vpop.f32.mrf.mxu2 }
 0x9c9   :  { %v7588_v25 = vpop.f32.mrf.mxu3 }
 0x9d0   :  { %v7594_v36 = vpop.f32.mrf.mxu2 }
 0x9d1   :  { %v7592_v60 = vpop.f32.mrf.mxu3  ;;  %v3683_v49 = vmax.f32 %v3681_v34, %v7594_v36 }
 0x9d5   :  { %4812 = vmatmul.msk.bf16.gmra.mxu2 %vm195_vm0, %v7523_v58 }
 0x9d6   :  { %4826 = vmatmul.msk.bf16.gmra.mxu3 %vm195_vm0, %v7511_v42 }
 0x9d8   :  { %v7602_v62 = vpop.f32.mrf.mxu2 }
 0x9d9   :  { %v7600_v35 = vpop.f32.mrf.mxu3 }
 0x9e0   :  { %v7606_v54 = vpop.f32.mrf.mxu2 }
 0x9e1   :  { %v7604_v57 = vpop.f32.mrf.mxu3  ;;  %v3685_v37 = vmax.f32 %v3683_v49, %v7606_v54 }
 0x9e5   :  { %4813 = vmatmul.msk.bf16.gmra.mxu2 %vm195_vm0, %v3427_v41 }
 0x9e6   :  { %4827 = vmatmul.msk.bf16.gmra.mxu3 %vm195_vm0, %v7517_v26 }
 0x9e8   :  { %v7613_v42 = vpop.f32.mrf.mxu2 }
 0x9e9   :  { %v7611_v4 = vpop.f32.mrf.mxu3 }
 0x9f0   :  { %v7617_v19 = vpop.f32.mrf.mxu2 }
 0x9f1   :  { %v7615_v23 = vpop.f32.mrf.mxu3  ;;  %v3687_v3 = vmax.f32 %v3685_v37, %v7617_v19 }
 0x9f6   :  { %4828 = vmatmul.msk.bf16.gmra.mxu3 %vm195_vm0, %v7523_v58 }
 0x9f8   :  { %v7623_v30 = vpop.f32.mrf.mxu2 }
 0x9f9   :  { %v7621_v13 = vpop.f32.mrf.mxu3  ;;  %8277 = vst [vmem:[#allocation31_spill] sm:$0xff] %v7623_v30 }
 0xa00   :  { %v7627_v26 = vpop.f32.mrf.mxu2 }
 0xa01   :  { %v7625_v18 = vpop.f32.mrf.mxu3  ;;  %8278 = vst [vmem:[#allocation23_spill] sm:$0xff] %v7627_v26 }
 0xa06   :  { %4829 = vmatmul.msk.bf16.gmra.mxu3 %vm195_vm0, %v3427_v41  ;;  %v3678_v41 = vmax.f32 %v3676_v48, %v7566_v14  ;;  %v3689_v48 = vmax.f32 %v3687_v3, %v7627_v26 }
 0xa08   :  { %v7632_v0 = vpop.f32.mrf.mxu2 }
 0xa09   :  { %v7630_v39 = vpop.f32.mrf.mxu3  ;;  %8279 = vst [vmem:[#allocation16_spill] sm:$0xff] %v7632_v0 }
 0xa10   :  { %v7636_v32 = vpop.f32.mrf.mxu2 }
 0xa11   :  { %v7634_v12 = vpop.f32.mrf.mxu3  ;;  %8280 = vst [vmem:[#allocation29_spill] sm:$0xff] %v7636_v32  ;;  %v3691_v34 = vmax.f32 %v3689_v48, %v7636_v32 }
 0xa18   :  { %v7640_v58 = vpop.f32.mrf.mxu2 }
 0xa19   :  { %v7638_v21 = vpop.f32.mrf.mxu3 }
 0xa1a   :  { %8281 = vst [vmem:[#allocation27_spill] sm:$0xff] %v7638_v21 }
 0xa20   :  { %v7644_v63 = vpop.f32.mrf.mxu2 }
 0xa21   :  { %v7642_v50 = vpop.f32.mrf.mxu3  ;;  %v3693_v49 = vmax.f32 %v3691_v34, %v7644_v63  ;;  %v3712_v34 = vmax.f32 %v7556_v44, %v7568_v59 }
 0xa22   :  { %8282 = vst [vmem:[#allocation21_spill] sm:$0xff] %v7642_v50 }
 0xa28   :  { %v7648_v8 = vpop.f32.mrf.mxu2 }
 0xa29   :  { %v7646_v15 = vpop.f32.mrf.mxu3 }
 0xa30   :  { %v7652_v20 = vpop.f32.mrf.mxu2 }
 0xa31   :  { %v7650_v7 = vpop.f32.mrf.mxu3 }
 0xa32   :  { %8283 = vst [vmem:[#allocation17_spill] sm:$0xff] %v7650_v7 }
 0xa38   :  { %v7656_v33 = vpop.f32.mrf.mxu2 }
 0xa39   :  { %v7654_v9 = vpop.f32.mrf.mxu3 }
 0xa40   :  { %v7660_v27 = vpop.f32.mrf.mxu2 }
 0xa41   :  { %v7658_v53 = vpop.f32.mrf.mxu3 }
 0xa48   :  { %v7664_v1 = vpop.f32.mrf.mxu2 }
 0xa49   :  { %v7662_v43 = vpop.f32.mrf.mxu3 }
 0xa50   :  { %v7668_v47 = vpop.f32.mrf.mxu2 }
 0xa51   :  { %v7666_v16 = vpop.f32.mrf.mxu3 }
 0xa58   :  { %v7674_v29 = vpop.f32.mrf.mxu2 }
 0xa59   :  { %v7670_v10 = vpop.f32.mrf.mxu3 }
 0xa5a   :  { %8284 = vst [vmem:[#allocation28_spill] sm:$0xff] %v7670_v10  ;;  %v3680_v10 = vmax.f32 %v3678_v41, %v7578_v6  ;;  %v3695_v41 = vmax.f32 %v3693_v49, %v7652_v20 }
 0xa5c   :  { %v3682_v24 = vmax.f32 %v3680_v10, %v7590_v28 }
 0xa5e   :  { %v3684_v61 = vmax.f32 %v3682_v24, %v7602_v62 }
 0xa60   :  { %v7685_v2 = vpop.f32.mrf.mxu2  ;;  %v3686_v22 = vmax.f32 %v3684_v61, %v7613_v42  ;;  %v3697_v61 = vmax.f32 %v3695_v41, %v7660_v27  ;;  %v3714_v41 = vmax.f32 %v3712_v34, %v7580_v5 }
 0xa61   :  { %v7672_v11 = vpop.f32.mrf.mxu3 }
 0xa62   :  { %v3688_v52 = vmax.f32 %v3686_v22, %v7623_v30  ;;  %v3699_v22 = vmax.f32 %v3697_v61, %v7668_v47 }
 0xa64   :  { %v3690_v10 = vmax.f32 %v3688_v52, %v7632_v0  ;;  %v3701_v52 = vmax.f32 %v3699_v22, %v7685_v2 }
 0xa66   :  { %v3692_v24 = vmax.f32 %v3690_v10, %v7640_v58 }
 0xa68   :  { %v7699_v56 = vpop.f32.mrf.mxu2  ;;  %v3694_v37 = vmax.f32 %v3692_v24, %v7648_v8  ;;  %v3711_v24 = vmax.f32 %v7552_v38, %v7564_v46 }
 0xa69   :  { %v7681_v31 = vpop.f32.mrf.mxu3 }
 0xa6a   :  { %v3696_v3 = vmax.f32 %v3694_v37, %v7656_v33  ;;  %v3713_v61 = vmax.f32 %v3711_v24, %v7576_v17 }
 0xa6c   :  { %v3698_v48 = vmax.f32 %v3696_v3, %v7664_v1  ;;  %v3716_v3 = vmax.f32 %v3714_v41, %v7592_v60  ;;  %v3715_v32 = vmax.f32 %v3713_v61, %v7588_v25 }
 0xa6e   :  { %v3700_v10 = vmax.f32 %v3698_v48, %v7674_v29  ;;  %v3718_v48 = vmax.f32 %v3716_v3, %v7604_v57 }
 0xa70   :  { %v7713_v26 = vpop.f32.mrf.mxu2  ;;  %v3702_v37 = vmax.f32 %v3700_v10, %v7699_v56  ;;  %v3720_v0 = vmax.f32 %v3718_v48, %v7615_v23 }
 0xa71   :  { %v7695_v40 = vpop.f32.mrf.mxu3  ;;  %v3703_v49 = vmax.f32 %v3701_v52, %v7713_v26  ;;  %v3717_v52 = vmax.f32 %v3715_v32, %v7600_v35 }
 0xa72   :  { %v3722_v10 = vmax.f32 %v3720_v0, %v7625_v18 }
 0xa73   :  { %v3704_v22 = vmax.f32 %v3702_v37, %v3703_v49  ;;  %v3719_v34 = vmax.f32 %v3717_v52, %v7611_v4 }
 0xa74   :  { %v3724_v41 = vmax.f32 %v3722_v10, %v7634_v12 }
 0xa75   :  { %v3705_v44 = vrot.slane %v3704_v22, 4  ;;  %v3721_v24 = vmax.f32 %v3719_v34, %v7621_v13 }
 0xa76   :  { %v3726_v37 = vmax.f32 %v3724_v41, %v7642_v50  ;;  %v8285_v41 = vld [vmem:[#allocation28_spill] sm:$0xff] }
 0xa77   :  { %v3706_v38 = vmax.f32 %v3704_v22, %v3705_v44  ;;  %v3723_v49 = vmax.f32 %v3721_v24, %v7630_v39 }
 0xa78   :  { %v3728_v3 = vmax.f32 %v3726_v37, %v7650_v7 }
 0xa79   :  { %v7709_v51 = vpop.f32.mrf.mxu3  ;;  %v3725_v32 = vmax.f32 %v3723_v49, %v7638_v21  ;;  %v3707_v48 = vrot.slane %v3706_v38, 2 }
 0xa7a   :  { %v3730_v0 = vmax.f32 %v3728_v3, %v7658_v53 }
 0xa7b   :  { %v3727_v52 = vmax.f32 %v3725_v32, %v7646_v15  ;;  %v3708_v44 = vmax.f32 %v3706_v38, %v3707_v48 }
 0xa7c   :  { %v3732_v10 = vmax.f32 %v3730_v0, %v7666_v16 }
 0xa7d   :  { %v3729_v34 = vmax.f32 %v3727_v52, %v7654_v9  ;;  %v3709_v21 = vrot.slane %v3708_v44, 1 }
 0xa7e   :  { %v3734_v24 = vmax.f32 %v3732_v10, %v7672_v11 }
 0xa7f   :  { %v3731_v22 = vmax.f32 %v3729_v34, %v7662_v43  ;;  %v7757_v38 = vmax.f32 %v3708_v44, %v3709_v21 }
 0xa80   :  { %v3736_v49 = vmax.f32 %v3734_v24, %v7695_v40 }
 0xa81   :  { %v7727_v30 = vpop.f32.mrf.mxu3  ;;  %v3733_v50 = vmax.f32 %v3731_v22, %v8285_v41  ;;  %v3776_v10 = vsub.f32 %v7613_v42, %v7757_v38  ;;  %v3778_v22 = vsub.f32 %v7617_v19, %v7757_v38  ;;  %v3774_v21 = vsub.f32 %v7606_v54, %v7757_v38 }
 0xa82   :  { %v3738_v3 = vmax.f32 %v3736_v49, %v7727_v30  ;;  %v3772_v49 = vsub.f32 %v7602_v62, %v7757_v38  ;;  %v3768_v44 = vsub.f32 %v7590_v28, %v7757_v38  ;;  %v3770_v19 = vsub.f32 %v7594_v36, %v7757_v38 }
 0xa83   :  { %v3735_v32 = vmax.f32 %v3733_v50, %v7681_v31  ;;  %v3868_v7 = vmul.f32 1.442695, %v3776_v10  ;;  %v3872_v50 = vmul.f32 1.442695, %v3778_v22  ;;  %v3764_v62 = vsub.f32 %v7578_v6, %v7757_v38 }
 0xa84   :  { %v3860_v42 = vmul.f32 1.442695, %v3772_v49  ;;  %v3852_v10 = vmul.f32 1.442695, %v3768_v44  ;;  %v3766_v54 = vsub.f32 %v7582_v45, %v7757_v38  ;;  %v3810_v28 = vsub.f32 %v7713_v26, %v7757_v38 }
 0xa85   :  { %v3737_v52 = vmax.f32 %v3735_v32, %v7709_v51  ;;  %5371 = vpow2.f32 %v3868_v7  ;;  %v3856_v7 = vmul.f32 1.442695, %v3770_v19  ;;  %v3760_v36 = vsub.f32 %v7566_v14, %v7757_v38  ;;  %v8288_v14 = vld [vmem:[#allocation18_spill] sm:$0xff] }
 0xa86   :  { %5373 = vpow2.f32 %v3872_v50  ;;  %v3844_v50 = vmul.f32 1.442695, %v3764_v62  ;;  %v3762_v6 = vsub.f32 %v7570_v55, %v7757_v38  ;;  %v3848_v49 = vmul.f32 1.442695, %v3766_v54  ;;  %v8289_v55 = vld [vmem:[#allocation19_spill] sm:$0xff]  ;;  %v8290_v54 = vld [vmem:[#allocation24_spill] sm:$0xff] }
 0xa87   :  { %5375 = vpow2.f32 %v3860_v42  ;;  %v3936_v44 = vmul.f32 1.442695, %v3810_v28  ;;  %v3756_v19 = vsub.f32 %v8288_v14, %v7757_v38  ;;  %v8291_v14 = vld [vmem:[#allocation20_spill] sm:$0xff] }
 0xa88   :  { %v3840_v62 = vmul.f32 1.442695, %v3762_v6 }
 0xa89   :  { %v7739_v61 = vpop.f32.mrf.mxu3 }
 0xa8a   :  { %v3739_v48 = vmax.f32 %v3737_v52, %v7739_v61  ;;  %v3864_v52 = vmul.f32 1.442695, %v3774_v21 }
 0xa8c   :  { %5377 = vpow2.f32 %v3864_v52 }
 0xa8d   :  { %5379 = vpow2.f32 %v3852_v10 }
 0xa8e   :  { %5381 = vpow2.f32 %v3856_v7  ;;  %v3752_v7 = vsub.f32 %v8290_v54, %v7757_v38 }
 0xa8f   :  { %5383 = vpow2.f32 %v3844_v50  ;;  %v3828_v50 = vmul.f32 1.442695, %v3756_v19 }
 0xa90   :  { %5385 = vpow2.f32 %v3848_v49 }
 0xa91   :  { %v7751_v37 = vpop.f32.mrf.mxu3  ;;  %5387 = vpow2.f32 %v3936_v44 }
 0xa92   :  { %v3740_v0 = vmax.f32 %v3738_v3, %v7751_v37 }
 0xa94   :  { %v3741_v34 = vmax.f32 %v3739_v48, %v3740_v0  ;;  %v5372_v0 = vpop.eup %5371 }
 0xa95   :  { %v5374_v48 = vpop.eup %5373 }
 0xa96   :  { %v3742_v24 = vrot.slane %v3741_v34, 4  ;;  %v7778_v22 = vpack.c.bf16 %v5374_v48, %v5372_v0  ;;  %v5376_v45 = vpop.eup %5375  ;;  %v3836_v0 = vmul.f32 1.442695, %v3760_v36  ;;  %v3758_v48 = vsub.f32 %v8289_v55, %v7757_v38 }
 0xa97   :  { %v5378_v26 = vpop.eup %5377 }
 0xa98   :  { %v3743_v32 = vmax.f32 %v3741_v34, %v3742_v24  ;;  %3972 = vmatpush.bf16.msra.mxu0 %v7778_v22  ;;  %v5380_v10 = vpop.eup %5379  ;;  %5389 = vpow2.f32 %v3836_v0  ;;  %v3832_v49 = vmul.f32 1.442695, %v3758_v48 }
 0xa99   :  { %5391 = vpow2.f32 %v3840_v62 }
 0xa9a   :  { %v3744_v3 = vrot.slane %v3743_v32, 2 }
 0xa9c   :  { %v3745_v34 = vmax.f32 %v3743_v32, %v3744_v3  ;;  %v8286_v32 = vld [vmem:[#allocation26_spill] sm:$0xff]  ;;  %v8287_v3 = vld [vmem:[#allocation25_spill] sm:$0xff] }
 0xa9d   :  { %v3748_v21 = vsub.f32 %v8286_v32, %v7757_v38  ;;  %v3750_v42 = vsub.f32 %v8287_v3, %v7757_v38  ;;  %v7797_v32 = vpack.c.bf16 %v5378_v26, %v5376_v45  ;;  %v5382_v3 = vpop.eup %5381  ;;  %v3820_v26 = vmul.f32 1.442695, %v3752_v7 }
 0xa9e   :  { %v3746_v24 = vrot.slane %v3745_v34, 1  ;;  %v5384_v45 = vpop.eup %5383  ;;  %v7808_v44 = vpack.c.bf16 %v5382_v3, %v5380_v10 }
 0xa9f   :  { %v3812_v28 = vmul.f32 1.442695, %v3748_v21  ;;  %3973 = vmatpush.bf16.msra.mxu0 %v7797_v32 }
 0xaa0   :  { %v7791_v52 = vmax.f32 %v3745_v34, %v3746_v24  ;;  %v3754_v34 = vsub.f32 %v8291_v14, %v7757_v38  ;;  %v3816_v24 = vmul.f32 1.442695, %v3750_v42  ;;  %v5386_v42 = vpop.eup %5385 }
 0xaa1   :  { %5393 = vpow2.f32 %v3812_v28  ;;  %v7815_v55 = vpop.eup %5387  ;;  %v7821_v54 = vpack.c.bf16 %v5386_v42, %v5384_v45 }
 0xaa2   :  { %v3769_v36 = vsub.f32 %v7611_v4, %v7791_v52  ;;  %v3771_v6 = vsub.f32 %v7615_v23, %v7791_v52  ;;  %v3773_v21 = vsub.f32 %v7621_v13, %v7791_v52  ;;  %v3775_v4 = vsub.f32 %v7625_v18, %v7791_v52  ;;  %v5390_v62 = vpop.eup %5389 }
 0xaa3   :  { %v3824_v19 = vmul.f32 1.442695, %v3754_v34  ;;  %5395 = vpow2.f32 %v3816_v24  ;;  %v3777_v0 = vsub.f32 %v7630_v39, %v7791_v52  ;;  %3974 = vmatpush.bf16.msra.mxu0 %v7808_v44  ;;  %v3779_v13 = vsub.f32 %v7634_v12, %v7791_v52  ;;  %v5392_v39 = vpop.eup %5391 }
 0xaa4   :  { %5397 = vpow2.f32 %v3828_v50  ;;  %v3854_v23 = vmul.f32 1.442695, %v3769_v36  ;;  %v3858_v48 = vmul.f32 1.442695, %v3771_v6  ;;  %v3800_v18 = vsub.f32 %v7664_v1, %v7757_v38 }
 0xaa5   :  { %5399 = vpow2.f32 %v3832_v49  ;;  %v3862_v10 = vmul.f32 1.442695, %v3773_v21  ;;  %v3801_v7 = vsub.f32 %v7681_v31, %v7791_v52  ;;  %v3866_v28 = vmul.f32 1.442695, %v3775_v4 }
 0xaa6   :  { %5401 = vpow2.f32 %v3820_v26  ;;  %v3802_v12 = vsub.f32 %v7668_v47, %v7757_v38  ;;  %v3870_v14 = vmul.f32 1.442695, %v3777_v0  ;;  %v3803_v1 = vsub.f32 %v7695_v40, %v7791_v52 }
 0xaa7   :  { %5403 = vpow2.f32 %v3824_v19  ;;  %v5394_v3 = vpop.eup %5393  ;;  %3975 = vmatpush.bf16.msra.mxu0 %v7821_v54  ;;  %v3874_v24 = vmul.f32 1.442695, %v3779_v13  ;;  %v3804_v31 = vsub.f32 %v7674_v29, %v7757_v38  ;;  %v3916_v50 = vmul.f32 1.442695, %v3800_v18 }
 0xaa8   :  { %5405 = vpow2.f32 %v3854_v23  ;;  %v7832_v6 = vpack.c.bf16 %v5392_v39, %v5390_v62  ;;  %v3805_v47 = vsub.f32 %v7709_v51, %v7791_v52  ;;  %v3918_v45 = vmul.f32 1.442695, %v3801_v7 }
 0xaa9   :  { %v5396_v34 = vpop.eup %5395  ;;  %5407 = vpow2.f32 %v3858_v48  ;;  %v3806_v40 = vsub.f32 %v7685_v2, %v7757_v38  ;;  %v3920_v26 = vmul.f32 1.442695, %v3802_v12  ;;  %v3807_v29 = vsub.f32 %v7727_v30, %v7791_v52 }
 0xaaa   :  { %v5398_v36 = vpop.eup %5397  ;;  %5409 = vpow2.f32 %v3862_v10  ;;  %v3922_v4 = vmul.f32 1.442695, %v3803_v1  ;;  %v3808_v51 = vsub.f32 %v7699_v56, %v7757_v38  ;;  %v3924_v0 = vmul.f32 1.442695, %v3804_v31 }
 0xaab   :  { %v5400_v49 = vpop.eup %5399  ;;  %5411 = vpow2.f32 %v3866_v28  ;;  %3976 = vmatpush.bf16.msra.mxu0 %v7832_v6  ;;  %v3926_v13 = vmul.f32 1.442695, %v3805_v47  ;;  %v3928_v62 = vmul.f32 1.442695, %v3806_v40  ;;  %v3765_v18 = vsub.f32 %v7600_v35, %v7791_v52 }
 0xaac   :  { %v5402_v21 = vpop.eup %5401  ;;  %5413 = vpow2.f32 %v3870_v14  ;;  %v7845_v23 = vpack.c.bf16 %v5400_v49, %v5398_v36  ;;  %v3930_v10 = vmul.f32 1.442695, %v3807_v29  ;;  %v3767_v39 = vsub.f32 %v7604_v57, %v7791_v52 }
 0xaad   :  { %v5404_v42 = vpop.eup %5403  ;;  %5415 = vpow2.f32 %v3874_v24  ;;  %v3932_v7 = vmul.f32 1.442695, %v3808_v51  ;;  %v3761_v35 = vsub.f32 %v7588_v25, %v7791_v52  ;;  %v3846_v24 = vmul.f32 1.442695, %v3765_v18 }
 0xaae   :  { %v7841_v19 = vpop.eup %5405  ;;  %5417 = vpow2.f32 %v3916_v50  ;;  %v7854_v28 = vpack.c.bf16 %v5404_v42, %v5402_v21  ;;  %v3763_v57 = vsub.f32 %v7592_v60, %v7791_v52  ;;  %v3850_v31 = vmul.f32 1.442695, %v3767_v39 }
 0xaaf   :  { %v7847_v2 = vpop.eup %5407  ;;  %5419 = vpow2.f32 %v3918_v45  ;;  %3977 = vmatpush.bf16.msra.mxu0 %v7845_v23  ;;  %v7861_v50 = vpack.c.bf16 %v5396_v34, %v5394_v3  ;;  %v3796_v47 = vsub.f32 %v7656_v33, %v7757_v38  ;;  %v3798_v25 = vsub.f32 %v7660_v27, %v7757_v38 }
 0xab0   :  { %v5410_v48 = vpop.eup %5409  ;;  %5421 = vpow2.f32 %v3920_v26  ;;  %v3757_v3 = vsub.f32 %v7576_v17, %v7791_v52  ;;  %v3838_v34 = vmul.f32 1.442695, %v3761_v35  ;;  %v3759_v42 = vsub.f32 %v7580_v5, %v7791_v52 }
 0xab1   :  { %v5412_v30 = vpop.eup %5411  ;;  %5423 = vpow2.f32 %v3922_v4  ;;  %v3842_v29 = vmul.f32 1.442695, %v3763_v57  ;;  %v3792_v27 = vsub.f32 %v7648_v8, %v7757_v38  ;;  %v3908_v51 = vmul.f32 1.442695, %v3796_v47 }
 0xab2   :  { %v5414_v56 = vpop.eup %5413  ;;  %5425 = vpow2.f32 %v3924_v0  ;;  %v8292_v17 = vmov 1065369472   ;;  %v3794_v18 = vsub.f32 %v7652_v20, %v7757_v38  ;;  %v3753_v5 = vsub.f32 %v7564_v46, %v7791_v52 }
 0xab3   :  { %v5416_v12 = vpop.eup %5415  ;;  %5427 = vpow2.f32 %v3926_v13  ;;  %3978 = vmatpush.bf16.msra.mxu0 %v7854_v28  ;;  %v7883_v13 = vpack.c.bf16 %v5412_v30, %v5410_v48  ;;  %v3830_v39 = vmul.f32 1.442695, %v3757_v3  ;;  %v3755_v48 = vsub.f32 %v7568_v59, %v7791_v52  ;;  %v8293_v59 = vld [vmem:[#allocation30_spill] sm:$0xff] }
 0xab4   :  { %v5418_v14 = vpop.eup %5417  ;;  %5429 = vpow2.f32 %v3928_v62  ;;  %v7867_v21 = vpack.c.bf16 %v5416_v12, %v5414_v56  ;;  %v3834_v30 = vmul.f32 1.442695, %v3759_v42  ;;  %v3788_v20 = vsub.f32 %v7640_v58, %v7757_v38  ;;  %v8294_v58 = vld [vmem:[#allocation22_spill] sm:$0xff]  ;;  %v8297_v42 = vld [vmem:[#allocation31_spill] sm:$0xff] }
 0xab5   :  { %v5420_v1 = vpop.eup %5419  ;;  %5431 = vpow2.f32 %v3930_v10  ;;  %v3912_v10 = vmul.f32 1.442695, %v3798_v25  ;;  %v3900_v12 = vmul.f32 1.442695, %v3792_v27  ;;  %v7903_v46 = vpack.c.bf16 %v7847_v2, %v7841_v19  ;;  %v8295_v2 = vld [vmem:[#allocation16_spill] sm:$0xff] }
 0xab6   :  { %v5422_v36 = vpop.eup %5421  ;;  %5433 = vpow2.f32 %v3932_v7  ;;  %v3749_v35 = vsub.f32 %v8293_v59, %v7791_v52  ;;  %v3826_v57 = vmul.f32 1.442695, %v3755_v48 }
 0xab7   :  { %v5424_v49 = vpop.eup %5423  ;;  %v7865_v45 = vpack.c.bf16 %v5422_v36, %v5418_v14  ;;  %3979 = vmatpush.bf16.msra.mxu0 %v7861_v50  ;;  %5435 = vpow2.f32 %v3846_v24  ;;  %v3790_v14 = vsub.f32 %v7644_v63, %v7757_v38  ;;  %v3822_v24 = vmul.f32 1.442695, %v3753_v5 }
 0xab8   :  { %v5426_v40 = vpop.eup %5425  ;;  %v7872_v26 = vpack.c.bf16 %v5424_v49, %v5420_v1  ;;  %5437 = vpow2.f32 %v3850_v31  ;;  %v3904_v1 = vmul.f32 1.442695, %v3794_v18  ;;  %v3751_v36 = vsub.f32 %v8294_v58, %v7791_v52 }
 0xab9   :  { %v5428_v60 = vpop.eup %5427  ;;  %5439 = vpow2.f32 %v3838_v34  ;;  %v3784_v31 = vsub.f32 %v8295_v2, %v7757_v38  ;;  %v3892_v49 = vmul.f32 1.442695, %v3788_v20  ;;  %v3814_v34 = vmul.f32 1.442695, %v3749_v35 }
 0xaba   :  { %v5430_v33 = vpop.eup %5429  ;;  %3980 = vmatmul.bf16.vlgmr.msra.gmra.mxu0 %v8292_v17  ;;  %5441 = vpow2.f32 %v3842_v29  ;;  %v3780_v29 = vsub.f32 %v8297_v42, %v7757_v38 }
 0xabb   :  { %3998 = vmatpush.bf16.msrb.mxu0 %v7867_v21  ;;  %v5432_v4 = vpop.eup %5431  ;;  %v7881_v0 = vpack.c.bf16 %v5430_v33, %v5426_v40  ;;  %5443 = vpow2.f32 %v3908_v51  ;;  %v8296_v40 = vld [vmem:[#allocation29_spill] sm:$0xff]  ;;  %v8298_v51 = vld [vmem:[#allocation23_spill] sm:$0xff]  ;;  %v3884_v18 = vmul.f32 1.442695, %v3784_v31 }
 0xabc   :  { %v5434_v62 = vpop.eup %5433  ;;  %v7888_v56 = vpack.c.bf16 %v5432_v4, %v5428_v60  ;;  %5445 = vpow2.f32 %v3912_v10  ;;  %v3786_v25 = vsub.f32 %v8296_v40, %v7757_v38  ;;  %v3896_v60 = vmul.f32 1.442695, %v3790_v14 }
 0xabd   :  { %v7893_v8 = vpack.c.bf16 %v7815_v55, %v5434_v62  ;;  %v5436_v7 = vpop.eup %5435  ;;  %5447 = vpow2.f32 %v3830_v39  ;;  %v3818_v4 = vmul.f32 1.442695, %v3751_v36  ;;  %v3782_v62 = vsub.f32 %v8298_v51, %v7757_v38 }
 0xabe   :  { %v5438_v55 = vpop.eup %5437  ;;  %5449 = vpow2.f32 %v3834_v30  ;;  %v3811_v39 = vsub.f32 %v7751_v37, %v7791_v52  ;;  %v3888_v48 = vmul.f32 1.442695, %v3786_v25  ;;  %v3797_v25 = vsub.f32 %v8285_v41, %v7791_v52 }
 0xabf   :  { %3999 = vmatpush.bf16.msrb.mxu0 %v7883_v13  ;;  %3985 = vmatpush.bf16.msra.mxu1 %v7893_v8  ;;  %v5440_v19 = vpop.eup %5439  ;;  %5451 = vpow2.f32 %v3900_v12  ;;  %v7915_v63 = vpack.c.bf16 %v5438_v55, %v5436_v7  ;;  %v3809_v7 = vsub.f32 %v7739_v61, %v7791_v52  ;;  %v3876_v12 = vmul.f32 1.442695, %v3780_v29 }
 0xac0   :  { %v5442_v47 = vpop.eup %5441  ;;  %5453 = vpow2.f32 %v3904_v1  ;;  %v3880_v14 = vmul.f32 1.442695, %v3782_v62  ;;  %v3938_v59 = vmul.f32 1.442695, %v3811_v39  ;;  %v3793_v29 = vsub.f32 %v7662_v43, %v7791_v52 }
 0xac1   :  { %v5444_v3 = vpop.eup %5443  ;;  %5455 = vpow2.f32 %v3822_v24  ;;  %v7925_v10 = vpack.c.bf16 %v5442_v47, %v5440_v19  ;;  %v3934_v61 = vmul.f32 1.442695, %v3809_v7  ;;  %v3795_v41 = vsub.f32 %v7666_v16, %v7791_v52 }
 0xac2   :  { %v5446_v33 = vpop.eup %5445  ;;  %5457 = vpow2.f32 %v3826_v57  ;;  %v3789_v62 = vsub.f32 %v7654_v9, %v7791_v52  ;;  %v3791_v43 = vsub.f32 %v7658_v53, %v7791_v52  ;;  %v8299_v9 = vld [vmem:[#allocation17_spill] sm:$0xff] }
 0xac3   :  { %4000 = vmatpush.bf16.msrb.mxu0 %v7903_v46  ;;  %3986 = vmatpush.bf16.msra.mxu1 %v7881_v0  ;;  %v5448_v27 = vpop.eup %5447  ;;  %5459 = vpow2.f32 %v3892_v49  ;;  %v7931_v20 = vpack.c.bf16 %v5446_v33, %v5444_v3  ;;  %v3799_v3 = vsub.f32 %v7672_v11, %v7791_v52  ;;  %v3906_v16 = vmul.f32 1.442695, %v3795_v41 }
 0xac4   :  { %v5450_v5 = vpop.eup %5449  ;;  %5461 = vpow2.f32 %v3896_v60  ;;  %v3894_v39 = vmul.f32 1.442695, %v3789_v62  ;;  %v4957_v62 = vld [vmem:[#allocation4 + $0x74] sm:$0xf0] }
 0xac5   :  { %v5452_v30 = vpop.eup %5451  ;;  %5463 = vpow2.f32 %v3814_v34  ;;  %v7935_v37 = vpack.c.bf16 %v5450_v5, %v5448_v27  ;;  %v3914_v11 = vmul.f32 1.442695, %v3799_v3  ;;  %v3785_v5 = vsub.f32 %v7646_v15, %v7791_v52  ;;  %v8301_v15 = vld [vmem:[#allocation21_spill] sm:$0xff] }
 0xac6   :  { %v5454_v38 = vpop.eup %5453  ;;  %5465 = vpow2.f32 %v3818_v4  ;;  %v3910_v4 = vmul.f32 1.442695, %v3797_v25 }
 0xac7   :  { %4001 = vmatpush.bf16.msrb.mxu0 %v7915_v63  ;;  %3987 = vmatpush.bf16.msra.mxu1 %v7865_v45  ;;  %v5456_v55 = vpop.eup %5455  ;;  %5467 = vpow2.f32 %v3884_v18  ;;  %v7937_v24 = vpack.c.bf16 %v5454_v38, %v5452_v30  ;;  %v3902_v18 = vmul.f32 1.442695, %v3793_v29  ;;  %v3898_v30 = vmul.f32 1.442695, %v3791_v43  ;;  %v8300_v38 = vld [vmem:[#allocation27_spill] sm:$0xff] }
 0xac8   :  { %v5458_v1 = vpop.eup %5457  ;;  %5469 = vpow2.f32 %v3888_v48  ;;  %v3787_v48 = vsub.f32 %v8299_v9, %v7791_v52  ;;  %v4832_v29 = vld [vmem:[#allocation4 + $0x18] sm:$0xf]  ;;  %v4834_v43 = vld [vmem:[#allocation4 + $0x38] sm:$0xf0] }
 0xac9   :  { %v5460_v35 = vpop.eup %5459  ;;  %5471 = vpow2.f32 %v3876_v12  ;;  %v7941_v57 = vpack.c.bf16 %v5458_v1, %v5456_v55  ;;  %v3781_v12 = vsub.f32 %v8300_v38, %v7791_v52  ;;  %v3886_v55 = vmul.f32 1.442695, %v3785_v5  ;;  %v4842_v5 = vld [vmem:[#allocation4 + $0x78] sm:$0xf0] }
 0xaca   :  { %v5462_v58 = vpop.eup %5461  ;;  %5473 = vpow2.f32 %v3880_v14  ;;  %v3783_v14 = vsub.f32 %v8301_v15, %v7791_v52  ;;  %v3890_v1 = vmul.f32 1.442695, %v3787_v48 }
 0xacb   :  { %4002 = vmatpush.bf16.msrb.mxu0 %v7925_v10  ;;  %3988 = vmatpush.bf16.msra.mxu1 %v7931_v20  ;;  %v5464_v36 = vpop.eup %5463  ;;  %5475 = vpow2.f32 %v3938_v59  ;;  %v7943_v31 = vpack.c.bf16 %v5462_v58, %v5460_v35  ;;  %v3878_v58 = vmul.f32 1.442695, %v3781_v12 }
 0xacc   :  { %v5466_v19 = vpop.eup %5465  ;;  %5477 = vpow2.f32 %v3934_v61 }
 0xacd   :  { %v5468_v2 = vpop.eup %5467  ;;  %v7947_v47 = vpack.c.bf16 %v5466_v19, %v5464_v36  ;;  %5479 = vpow2.f32 %v3910_v4  ;;  %v3882_v36 = vmul.f32 1.442695, %v3783_v14  ;;  %v4955_v4 = vld [vmem:[#allocation4 + $0x34] sm:$0xf0] }
 0xace   :  { %v5470_v49 = vpop.eup %5469  ;;  %5481 = vpow2.f32 %v3914_v11  ;;  %v4833_v41 = vor.u32 %v4955_v4, %v4832_v29  ;;  %v4840_v11 = vld [vmem:[#allocation4 + $0x58] sm:$0xf] }
 0xacf   :  { %4003 = vmatpush.bf16.msrb.mxu0 %v7935_v37  ;;  %3989 = vmatpush.bf16.msra.mxu1 %v7937_v24  ;;  %v5472_v40 = vpop.eup %5471  ;;  %v7953_v34 = vpack.c.bf16 %v5470_v49, %v5468_v2  ;;  %5483 = vpow2.f32 %v3902_v18  ;;  %v4841_v18 = vor.u32 %v4957_v62, %v4840_v11 }
 0xad0   :  { %v5474_v60 = vpop.eup %5473  ;;  %5485 = vpow2.f32 %v3906_v16 }
 0xad1   :  { %v5476_v33 = vpop.eup %5475  ;;  %v7963_v27 = vpack.c.bf16 %v5474_v60, %v5472_v40  ;;  %5487 = vpow2.f32 %v3894_v39 }
 0xad2   :  { %v5478_v42 = vpop.eup %5477  ;;  %5489 = vpow2.f32 %v3898_v30 }
 0xad3   :  { %4004 = vmatpush.bf16.msrb.mxu0 %v7941_v57  ;;  %3990 = vmatpush.bf16.msra.mxu1 %v7943_v31  ;;  %v7965_v51 = vpack.c.bf16 %v5476_v33, %v5478_v42  ;;  %v5480_v7 = vpop.eup %5479  ;;  %5491 = vpow2.f32 %v3886_v55 }
 0xad4   :  { %v5482_v53 = vpop.eup %5481  ;;  %5493 = vpow2.f32 %v3890_v1 }
 0xad5   :  { %v5484_v59 = vpop.eup %5483  ;;  %v7987_v35 = vpack.c.bf16 %v5482_v53, %v5480_v7  ;;  %5495 = vpow2.f32 %v3878_v58 }
 0xad6   :  { %v5486_v61 = vpop.eup %5485  ;;  %5497 = vpow2.f32 %v3882_v36 }
 0xad7   :  { %4005 = vmatpush.bf16.msrb.mxu0 %v7947_v47  ;;  %3991 = vmatpush.bf16.msra.mxu1 %v7953_v34  ;;  %v5488_v19 = vpop.eup %5487  ;;  %v7991_v2 = vpack.c.bf16 %v5486_v61, %v5484_v59 }
 0xad8   :  { %v5490_v52 = vpop.eup %5489 }
 0xad9   :  { %v5492_v49 = vpop.eup %5491  ;;  %v7995_v40 = vpack.c.bf16 %v5490_v52, %v5488_v19 }
 0xada   :  { %4006 = vmatmul.bf16.vlgmr.msrb.gmra.mxu0 %v8292_v17  ;;  %v5494_v25 = vpop.eup %5493 }
 0xadb   :  { %4056 = vmatpush.bf16.msra.mxu0 %v7778_v22  ;;  %3992 = vmatpush.bf16.msra.mxu1 %v7963_v27  ;;  %v5496_v60 = vpop.eup %5495  ;;  %v7999_v3 = vpack.c.bf16 %v5494_v25, %v5492_v49 }
 0xadc   :  { %v5498_v33 = vpop.eup %5497 }
 0xadd   :  { %v8004_v42 = vpack.c.bf16 %v5498_v33, %v5496_v60 }
 0xade   :  { %3993 = vmatmul.bf16.vlgmr.msra.gmra.mxu1 %v8292_v17 }
 0xadf   :  { %4057 = vmatpush.bf16.msra.mxu0 %v7797_v32  ;;  %4011 = vmatpush.bf16.msrb.mxu1 %v7965_v51 }
 0xae3   :  { %4058 = vmatpush.bf16.msra.mxu0 %v7808_v44  ;;  %4012 = vmatpush.bf16.msrb.mxu1 %v7888_v56 }
 0xae7   :  { %4059 = vmatpush.bf16.msra.mxu0 %v7821_v54  ;;  %4013 = vmatpush.bf16.msrb.mxu1 %v7872_v26 }
 0xaeb   :  { %4060 = vmatpush.bf16.msra.mxu0 %v7832_v6  ;;  %4014 = vmatpush.bf16.msrb.mxu1 %v7987_v35 }
 0xaef   :  { %4061 = vmatpush.bf16.msra.mxu0 %v7845_v23  ;;  %4015 = vmatpush.bf16.msrb.mxu1 %v7991_v2 }
 0xaf3   :  { %4062 = vmatpush.bf16.msra.mxu0 %v7854_v28  ;;  %4016 = vmatpush.bf16.msrb.mxu1 %v7995_v40 }
 0xaf7   :  { %4063 = vmatpush.bf16.msra.mxu0 %v7861_v50  ;;  %4017 = vmatpush.bf16.msrb.mxu1 %v7999_v3 }
 0xafa   :  { %4064 = vmatmul.bf16.vlgmr.msra.gmra.mxu0 %v4833_v41 }
 0xafb   :  { %4094 = vmatpush.bf16.msrb.mxu0 %v7867_v21  ;;  %4018 = vmatpush.bf16.msrb.mxu1 %v8004_v42 }
 0xafe   :  { %4019 = vmatmul.bf16.vlgmr.msrb.gmra.mxu1 %v8292_v17  ;;  %v4954_v17 = vld [vmem:[#allocation4 + $0x1c] sm:$0xf] }
 0xaff   :  { %4095 = vmatpush.bf16.msrb.mxu0 %v7883_v13  ;;  %4075 = vmatpush.bf16.msra.mxu1 %v7893_v8  ;;  %v4837_v16 = vor.u32 %v4954_v17, %v4834_v43 }
 0xb03   :  { %4096 = vmatpush.bf16.msrb.mxu0 %v7903_v46  ;;  %4076 = vmatpush.bf16.msra.mxu1 %v7881_v0 }
 0xb07   :  { %4097 = vmatpush.bf16.msrb.mxu0 %v7915_v63  ;;  %4077 = vmatpush.bf16.msra.mxu1 %v7865_v45 }
 0xb0a   :  { %4069 = vmatmul.bf16.gmra.mxu0 %v4841_v18 }
 0xb0b   :  { %4098 = vmatpush.bf16.msrb.mxu0 %v7925_v10  ;;  %4078 = vmatpush.bf16.msra.mxu1 %v7931_v20 }
 0xb0f   :  { %4099 = vmatpush.bf16.msrb.mxu0 %v7935_v37  ;;  %4079 = vmatpush.bf16.msra.mxu1 %v7937_v24 }
 0xb13   :  { %4100 = vmatpush.bf16.msrb.mxu0 %v7941_v57  ;;  %4080 = vmatpush.bf16.msra.mxu1 %v7943_v31 }
 0xb17   :  { %4101 = vmatpush.bf16.msrb.mxu0 %v7947_v47  ;;  %4081 = vmatpush.bf16.msra.mxu1 %v7953_v34 }
 0xb1a   :  { %4102 = vmatmul.bf16.vlgmr.msrb.gmra.mxu0 %v4833_v41 }
 0xb1b   :  { %4152 = vmatpush.bf16.msra.mxu0 %v7778_v22  ;;  %4082 = vmatpush.bf16.msra.mxu1 %v7963_v27  ;;  %v4956_v22 = vld [vmem:[#allocation4 + $0x5c] sm:$0xf] }
 0xb1e   :  { %4083 = vmatmul.bf16.vlgmr.msra.gmra.mxu1 %v4837_v16 }
 0xb1f   :  { %4153 = vmatpush.bf16.msra.mxu0 %v7797_v32  ;;  %4113 = vmatpush.bf16.msrb.mxu1 %v7965_v51  ;;  %v4845_v32 = vor.u32 %v4956_v22, %v4842_v5 }
 0xb23   :  { %4154 = vmatpush.bf16.msra.mxu0 %v7808_v44  ;;  %4114 = vmatpush.bf16.msrb.mxu1 %v7888_v56  ;;  %v4848_v44 = vld [vmem:[#allocation7 + $0x18] sm:$0xf] }
 0xb27   :  { %4155 = vmatpush.bf16.msra.mxu0 %v7821_v54  ;;  %4115 = vmatpush.bf16.msrb.mxu1 %v7872_v26  ;;  %v4959_v54 = vld [vmem:[#allocation7 + $0x34] sm:$0xf0] }
 0xb2a   :  { %4107 = vmatmul.bf16.gmra.mxu0 %v4841_v18 }
 0xb2b   :  { %4156 = vmatpush.bf16.msra.mxu0 %v7832_v6  ;;  %4116 = vmatpush.bf16.msrb.mxu1 %v7987_v35  ;;  %v4849_v6 = vor.u32 %v4959_v54, %v4848_v44 }
 0xb2e   :  { %4088 = vmatmul.bf16.gmra.mxu1 %v4845_v32 }
 0xb2f   :  { %4157 = vmatpush.bf16.msra.mxu0 %v7845_v23  ;;  %4117 = vmatpush.bf16.msrb.mxu1 %v7991_v2  ;;  %v4856_v23 = vld [vmem:[#allocation7 + $0x58] sm:$0xf] }
 0xb33   :  { %4158 = vmatpush.bf16.msra.mxu0 %v7854_v28  ;;  %4118 = vmatpush.bf16.msrb.mxu1 %v7995_v40  ;;  %v4961_v28 = vld [vmem:[#allocation7 + $0x74] sm:$0xf0] }
 0xb37   :  { %4159 = vmatpush.bf16.msra.mxu0 %v7861_v50  ;;  %4119 = vmatpush.bf16.msrb.mxu1 %v7999_v3  ;;  %v4857_v50 = vor.u32 %v4961_v28, %v4856_v23 }
 0xb3a   :  { %4160 = vmatmul.bf16.vlgmr.msra.gmra.mxu0 %v4849_v6 }
 0xb3b   :  { %4190 = vmatpush.bf16.msrb.mxu0 %v7867_v21  ;;  %4120 = vmatpush.bf16.msrb.mxu1 %v8004_v42  ;;  %v4958_v21 = vld [vmem:[#allocation7 + $0x1c] sm:$0xf] }
 0xb3e   :  { %4121 = vmatmul.bf16.vlgmr.msrb.gmra.mxu1 %v4837_v16 }
 0xb3f   :  { %4191 = vmatpush.bf16.msrb.mxu0 %v7883_v13  ;;  %4171 = vmatpush.bf16.msra.mxu1 %v7893_v8 }
 0xb43   :  { %4192 = vmatpush.bf16.msrb.mxu0 %v7903_v46  ;;  %4172 = vmatpush.bf16.msra.mxu1 %v7881_v0  ;;  %v4850_v0 = vld [vmem:[#allocation7 + $0x38] sm:$0xf0] }
 0xb44   :  { %v4853_v8 = vor.u32 %v4958_v21, %v4850_v0 }
 0xb47   :  { %4193 = vmatpush.bf16.msrb.mxu0 %v7915_v63  ;;  %4173 = vmatpush.bf16.msra.mxu1 %v7865_v45  ;;  %v3981_v45 = vpop.f32.mrf.mxu0 }
 0xb4a   :  { %4165 = vmatmul.bf16.gmra.mxu0 %v4857_v50 }
 0xb4b   :  { %4194 = vmatpush.bf16.msrb.mxu0 %v7925_v10  ;;  %4174 = vmatpush.bf16.msra.mxu1 %v7931_v20  ;;  %v4960_v10 = vld [vmem:[#allocation7 + $0x5c] sm:$0xf] }
 0xb4c   :  { %v4858_v20 = vld [vmem:[#allocation7 + $0x78] sm:$0xf0] }
 0xb4e   :  { %4126 = vmatmul.bf16.gmra.mxu1 %v4845_v32 }
 0xb4f   :  { %4195 = vmatpush.bf16.msrb.mxu0 %v7935_v37  ;;  %4175 = vmatpush.bf16.msra.mxu1 %v7937_v24  ;;  %v3983_v13 = vpop.f32.mrf.mxu0 }
 0xb53   :  { %4196 = vmatpush.bf16.msrb.mxu0 %v7941_v57  ;;  %4176 = vmatpush.bf16.msra.mxu1 %v7943_v31  ;;  %v4861_v57 = vor.u32 %v4960_v10, %v4858_v20 }
 0xb57   :  { %4197 = vmatpush.bf16.msrb.mxu0 %v7947_v47  ;;  %4177 = vmatpush.bf16.msra.mxu1 %v7953_v34  ;;  %v4007_v63 = vpop.f32.mrf.mxu0 }
 0xb5a   :  { %4198 = vmatmul.bf16.vlgmr.msrb.gmra.mxu0 %v4849_v6 }
 0xb5b   :  { %4178 = vmatpush.bf16.msra.mxu1 %v7963_v27  ;;  %v3994_v46 = vpop.f32.mrf.mxu1 }
 0xb5c   :  { %v3995_v34 = vadd.f32 %v3994_v46, %v3981_v45 }
 0xb5e   :  { %4179 = vmatmul.bf16.vlgmr.msra.gmra.mxu1 %v4853_v8  ;;  %5499 = vrcp.f32 %v3995_v34 }
 0xb5f   :  { %4209 = vmatpush.bf16.msrb.mxu1 %v7965_v51  ;;  %v4009_v24 = vpop.f32.mrf.mxu0 }
 0xb63   :  { %4210 = vmatpush.bf16.msrb.mxu1 %v7888_v56  ;;  %v3996_v37 = vpop.f32.mrf.mxu1 }
 0xb64   :  { %v5500_v51 = vpop.eup %5499 }
 0xb65   :  { %v8063_v48 = vperm.slane %v5500_v51, 0 }
 0xb67   :  { %4211 = vmatpush.bf16.msrb.mxu1 %v7872_v26 }
 0xb6a   :  { %4203 = vmatmul.bf16.gmra.mxu0 %v4857_v50 }
 0xb6b   :  { %4212 = vmatpush.bf16.msrb.mxu1 %v7987_v35 }
 0xb6e   :  { %4184 = vmatmul.bf16.gmra.mxu1 %v4861_v57 }
 0xb6f   :  { %4213 = vmatpush.bf16.msrb.mxu1 %v7991_v2 }
 0xb73   :  { %4214 = vmatpush.bf16.msrb.mxu1 %v7995_v40 }
 0xb77   :  { %4215 = vmatpush.bf16.msrb.mxu1 %v7999_v3  ;;  %v4065_v26 = vpop.f32.mrf.mxu0 }
 0xb7b   :  { %4216 = vmatpush.bf16.msrb.mxu1 %v8004_v42  ;;  %v4020_v56 = vpop.f32.mrf.mxu1 }
 0xb7c   :  { %v4021_v35 = vadd.f32 %v4020_v56, %v4007_v63 }
 0xb7e   :  { %4217 = vmatmul.bf16.vlgmr.msrb.gmra.mxu1 %v4853_v8  ;;  %5501 = vrcp.f32 %v4021_v35 }
 0xb7f   :  { %v4067_v47 = vpop.f32.mrf.mxu0 }
 0xb83   :  { %v4022_v31 = vpop.f32.mrf.mxu1 }
 0xb84   :  { %v5502_v2 = vpop.eup %5501 }
 0xb85   :  { %v8069_v49 = vperm.slane %v5502_v2, 0 }
 0xb87   :  { %v4070_v27 = vpop.f32.mrf.mxu0 }
 0xb8e   :  { %4222 = vmatmul.bf16.gmra.mxu1 %v4861_v57 }
 0xb8f   :  { %v4072_v39 = vpop.f32.mrf.mxu0 }
 0xb97   :  { %v4103_v12 = vpop.f32.mrf.mxu0 }
 0xb9b   :  { %v4084_v9 = vpop.f32.mrf.mxu1 }
 0xb9c   :  { %v4085_v30 = vadd.f32 %v4084_v9, %v4065_v26 }
 0xb9e   :  { %v4230_v7 = vmul.f32 %v8063_v48, %v4085_v30 }
 0xb9f   :  { %v4105_v59 = vpop.f32.mrf.mxu0 }
 0xba0   :  { %4239 = vst [vmem:[#allocation9 + $0x30] sm:$0xff] %v4230_v7 }
 0xba3   :  { %v4086_v53 = vpop.f32.mrf.mxu1 }
 0xba4   :  { %v4087_v38 = vadd.f32 %v4086_v53, %v4067_v47 }
 0xba6   :  { %v4232_v55 = vmul.f32 %v8063_v48, %v4087_v38 }
 0xba7   :  { %v4108_v19 = vpop.f32.mrf.mxu0 }
 0xba8   :  { %4241 = vst [vmem:[#allocation9 + $0x70] sm:$0xff] %v4232_v55 }
 0xbab   :  { %v4089_v15 = vpop.f32.mrf.mxu1 }
 0xbac   :  { %v4090_v14 = vadd.f32 %v4089_v15, %v4070_v27 }
 0xbae   :  { %v4234_v1 = vmul.f32 %v8063_v48, %v4090_v14 }
 0xbaf   :  { %v4110_v60 = vpop.f32.mrf.mxu0 }
 0xbb0   :  { %4243 = vst [vmem:[#allocation9 + $0xb0] sm:$0xff] %v4234_v1 }
 0xbb3   :  { %v4091_v61 = vpop.f32.mrf.mxu1 }
 0xbb4   :  { %v4092_v58 = vadd.f32 %v4091_v61, %v4072_v39 }
 0xbb6   :  { %v4236_v36 = vmul.f32 %v8063_v48, %v4092_v58 }
 0xbb7   :  { %v4161_v41 = vpop.f32.mrf.mxu0 }
 0xbb8   :  { %4245 = vst [vmem:[#allocation9 + $0xf0] sm:$0xff] %v4236_v36 }
 0xbbb   :  { %v4122_v52 = vpop.f32.mrf.mxu1 }
 0xbbc   :  { %v4123_v40 = vadd.f32 %v4122_v52, %v4103_v12 }
 0xbbe   :  { %v4231_v25 = vmul.f32 %v8069_v49, %v4123_v40 }
 0xbbf   :  { %v4163_v43 = vpop.f32.mrf.mxu0 }
 0xbc0   :  { %4240 = vst [vmem:[#allocation9 + $0x38] sm:$0xff] %v4231_v25 }
 0xbc3   :  { %v4124_v3 = vpop.f32.mrf.mxu1 }
 0xbc4   :  { %v4125_v33 = vadd.f32 %v4124_v3, %v4105_v59 }
 0xbc6   :  { %v4233_v42 = vmul.f32 %v8069_v49, %v4125_v33 }
 0xbc7   :  { %v4166_v32 = vpop.f32.mrf.mxu0 }
 0xbc8   :  { %4242 = vst [vmem:[#allocation9 + $0x78] sm:$0xff] %v4233_v42 }
 0xbcb   :  { %v4127_v29 = vpop.f32.mrf.mxu1 }
 0xbcc   :  { %v4128_v4 = vadd.f32 %v4127_v29, %v4108_v19 }
 0xbce   :  { %v4235_v11 = vmul.f32 %v8069_v49, %v4128_v4 }
 0xbcf   :  { %v4168_v23 = vpop.f32.mrf.mxu0 }
 0xbd0   :  { %4244 = vst [vmem:[#allocation9 + $0xb8] sm:$0xff] %v4235_v11 }
 0xbd3   :  { %v4129_v62 = vpop.f32.mrf.mxu1 }
 0xbd4   :  { %v4130_v18 = vadd.f32 %v4129_v62, %v4110_v60 }
 0xbd6   :  { %v4237_v17 = vmul.f32 %v8069_v49, %v4130_v18 }
 0xbd7   :  { %v4199_v0 = vpop.f32.mrf.mxu0 }
 0xbd8   :  { %4246 = vst [vmem:[#allocation9 + $0xf8] sm:$0xff] %v4237_v17 }
 0xbd9   :  { %4276 = dma.vmem_to_hbm [thread:$0]  %s4269_s9, 4096, %s4271_s12, [#allocation6], %s5614_s0, %s5614_s0, %s5615_s1  }
 0xbdb   :  { %v4180_v16 = vpop.f32.mrf.mxu1 }
 0xbdc   :  { %v4181_v22 = vadd.f32 %v4180_v16, %v4161_v41 }
 0xbde   :  { %v4247_v5 = vmul.f32 %v8063_v48, %v4181_v22 }
 0xbdf   :  { %v4201_v10 = vpop.f32.mrf.mxu0 }
 0xbe0   :  { %4256 = vst [vmem:[#allocation10 + $0x30] sm:$0xff] %v4247_v5 }
 0xbe3   :  { %v4182_v44 = vpop.f32.mrf.mxu1 }
 0xbe4   :  { %v4183_v54 = vadd.f32 %v4182_v44, %v4163_v43 }
 0xbe6   :  { %v4249_v6 = vmul.f32 %v8063_v48, %v4183_v54 }
 0xbe7   :  { %v4204_v26 = vpop.f32.mrf.mxu0 }
 0xbe8   :  { %4258 = vst [vmem:[#allocation10 + $0x70] sm:$0xff] %v4249_v6 }
 0xbeb   :  { %v4185_v28 = vpop.f32.mrf.mxu1 }
 0xbec   :  { %v4186_v50 = vadd.f32 %v4185_v28, %v4166_v32 }
 0xbee   :  { %v4251_v45 = vmul.f32 %v8063_v48, %v4186_v50 }
 0xbef   :  { %v4206_v34 = vpop.f32.mrf.mxu0 }
 0xbf0   :  { %4260 = vst [vmem:[#allocation10 + $0xb0] sm:$0xff] %v4251_v45 }
 0xbf3   :  { %v4187_v21 = vpop.f32.mrf.mxu1 }
 0xbf4   :  { %v4188_v13 = vadd.f32 %v4187_v21, %v4168_v23 }
 0xbf6   :  { %v4253_v8 = vmul.f32 %v8063_v48, %v4188_v13 }
 0xbf8   :  { %4262 = vst [vmem:[#allocation10 + $0xf0] sm:$0xff] %v4253_v8 }
 0xbfb   :  { %v4218_v46 = vpop.f32.mrf.mxu1 }
 0xbfc   :  { %v4219_v63 = vadd.f32 %v4218_v46, %v4199_v0 }
 0xbfe   :  { %v4248_v20 = vmul.f32 %v8069_v49, %v4219_v63 }
 0xc00   :  { %4257 = vst [vmem:[#allocation10 + $0x38] sm:$0xff] %v4248_v20 }
 0xc03   :  { %v4220_v37 = vpop.f32.mrf.mxu1 }
 0xc04   :  { %v4221_v24 = vadd.f32 %v4220_v37, %v4201_v10 }
 0xc06   :  { %v4250_v57 = vmul.f32 %v8069_v49, %v4221_v24 }
 0xc08   :  { %4259 = vst [vmem:[#allocation10 + $0x78] sm:$0xff] %v4250_v57 }
 0xc0b   :  { %v4223_v56 = vpop.f32.mrf.mxu1 }
 0xc0c   :  { %v4224_v31 = vadd.f32 %v4223_v56, %v4204_v26 }
 0xc0e   :  { %v4252_v47 = vmul.f32 %v8069_v49, %v4224_v31 }
 0xc10   :  { %4261 = vst [vmem:[#allocation10 + $0xb8] sm:$0xff] %v4252_v47 }
 0xc13   :  { %v4225_v27 = vpop.f32.mrf.mxu1 }
 0xc14   :  { %v4226_v51 = vadd.f32 %v4225_v27, %v4206_v34 }
 0xc16   :  { %v4254_v39 = vmul.f32 %v8069_v49, %v4226_v51 }
 0xc18   :  { %4263 = vst [vmem:[#allocation10 + $0xf8] sm:$0xff] %v4254_v39 }
 0xc19   :  { %4289 = dma.vmem_to_hbm [thread:$0]  %s4282_s13, 4096, %s4284_s16, [#allocation11], %s5614_s0, %s5614_s0, %s5615_s1  }
 0xc1a   :  { %5603 = dma.done.wait [#allocation6], 4096  }
 0xc1b   :  { %5604 = vsyncadd [#allocation6], 4294963200 }
 0xc1c   :  { %5605 = dma.done.wait [#allocation11], 4096  }
 0xc1d   :  { %5606 = vsyncadd [#allocation11], 4294963200 }
 0xc1e   :  { %4298 = vsyncpa [#allocation5], 1 }
 0xc1f   :  { %4299 = vsyncpa [#allocation8], 1 }
 0xc20   :  { %4300 = vsyncpa [#allocation6], 1 }
 0xc21   :  { %4301 = vsyncpa [#allocation11], 1 }

</bundles_post_ra>
